<compile_context>
chip_gen: v7x
topology: tpu7x:2x2x1
jax: 0.10.0
libtpu: 0.0.40
codegen_flags: <defaults>
</compile_context>

<pallas_src>
import jax
import jax.numpy as jnp
from jax.experimental import pallas as pl
from jax.experimental.pallas import tpu as pltpu

NEG_SLOPE = 0.01          # nn.LeakyReLU default negative_slope
F_IN = 28 * 28            # 784 logical input features (passed unpadded)
H1, H2, H3 = 1024, 512, 256
OUT_PAD = 128             # lane-dense output block; real output is column 0


def _round_up(x, m):
    return (x + m - 1) // m * m


def _device_config():
    """(tile_max, vmem_limit_bytes, min_grid_steps) tuned per TPU generation."""
    tile_max, vmem_limit, min_tiles = 512, 48 * 1024 * 1024, 1   # safe defaults
    try:
        info = pltpu.get_tpu_info()
        vmem = getattr(info, "vmem_capacity_bytes", None)
        if vmem is not None:
            if vmem <= 80 * 1024 * 1024:
                # v7x-like: 64 MiB VMEM per TC, 2 TCs -> smaller tiles, >=2 grid steps
                tile_max, vmem_limit, min_tiles = 256, 40 * 1024 * 1024, 2
            else:
                # v5e / v6e: 128 MiB VMEM, single TC -> bigger tiles amortize per-step cost
                tile_max, vmem_limit, min_tiles = 1024, 64 * 1024 * 1024, 1
    except Exception:
        pass
    return tile_max, vmem_limit, min_tiles


def _bias_leaky_relu_bf16(acc_f32, bias_bf16):
    # bf16 epilogue: the result feeds the next MXU pass as bf16 anyway.
    h = acc_f32.astype(jnp.bfloat16) + bias_bf16
    return jnp.maximum(h, NEG_SLOPE * h)      # mul+max (cheaper than cmp+select+mul)


def discriminator_kernel(x_ref,
                         w1_ref, b1_ref,
                         w2_ref, b2_ref,
                         w3_ref, b3_ref,
                         w4_ref, b4_ref,
                         o_ref):
    # Cast x to bf16 in VMEM (no wrapper-side HBM copy).
    x = x_ref[...].astype(jnp.bfloat16)

    # Layer 1: (TB, 784) @ (784, 1024) -> f32 acc, bf16 bias + LeakyReLU
    h = jnp.dot(x, w1_ref[...], preferred_element_type=jnp.float32)
    h = _bias_leaky_relu_bf16(h, b1_ref[...])

    # Layer 2: (TB, 1024) @ (1024, 512)
    h = jnp.dot(h, w2_ref[...], preferred_element_type=jnp.float32)
    h = _bias_leaky_relu_bf16(h, b2_ref[...])

    # Layer 3: (TB, 512) @ (512, 256)
    h = jnp.dot(h, w3_ref[...], preferred_element_type=jnp.float32)
    h = _bias_leaky_relu_bf16(h, b3_ref[...])

    # Output: (TB, 256) @ (256, 128) -> f32 bias + sigmoid; only column 0 is
    # meaningful (padded weight/bias columns are zero -> sigmoid(0)=0.5, sliced off).
    logits = jnp.dot(h, w4_ref[...], preferred_element_type=jnp.float32)
    o_ref[...] = jax.nn.sigmoid(logits + b4_ref[...])


def _resident_spec(shape):
    """Weights/biases: same block every grid step -> fetched once, single-buffered."""
    return pl.BlockSpec(shape, lambda i: (0, 0), pipeline_mode=pl.Buffered(1))


def discriminator_forward(x, params):
    """x: (B, 784) float32. params: dict with bf16 weights (in,out), bf16/f32 biases."""
    B, F = x.shape
    assert F == F_IN, F

    tile_max, vmem_limit, min_tiles = _device_config()

    # Balanced batch tiling: pad each tile by at most 7 rows (f32 sublane = 8).
    num_tiles = max(1, pl.cdiv(B, tile_max))
    if min_tiles > 1 and B >= 8 * min_tiles:
        num_tiles = max(num_tiles, min_tiles)
        rem = num_tiles % min_tiles
        if rem:                      # keep grid steps evenly splittable across TCs
            num_tiles += min_tiles - rem
    tile_b = _round_up(pl.cdiv(B, num_tiles), 8)
    b_pad = num_tiles * tile_b

    xp = x.astype(jnp.float32)
    if b_pad != B:                   # batch-row pad only when unavoidable
        xp = jnp.pad(xp, ((0, b_pad - B), (0, 0)))

    in_specs = [
        pl.BlockSpec((tile_b, F_IN), lambda i: (i, 0)),   # x tile (double-buffered)
        _resident_spec((F_IN, H1)),
        _resident_spec((1, H1)),
        _resident_spec((H1, H2)),
        _resident_spec((1, H2)),
        _resident_spec((H2, H3)),
        _resident_spec((1, H3)),
        _resident_spec((H3, OUT_PAD)),
        _resident_spec((1, OUT_PAD)),
    ]
    out_specs = pl.BlockSpec((tile_b, OUT_PAD), lambda i: (i, 0))

    weight_bytes = sum(int(params[k].size) * params[k].dtype.itemsize for k in params)
    cost = pl.CostEstimate(
        flops=2 * b_pad * (F_IN * H1 + H1 * H2 + H2 * H3 + H3 * OUT_PAD),
        transcendentals=b_pad * OUT_PAD,
        bytes_accessed=b_pad * F_IN * 4 + weight_bytes + b_pad * OUT_PAD * 4,
    )

    out = pl.pallas_call(
        discriminator_kernel,
        out_shape=jax.ShapeDtypeStruct((b_pad, OUT_PAD), jnp.float32),
        grid_spec=pltpu.PrefetchScalarGridSpec(
            num_scalar_prefetch=0,
            grid=(num_tiles,),
            in_specs=in_specs,
            out_specs=out_specs,
        ),
        compiler_params=pltpu.CompilerParams(
            dimension_semantics=("parallel",),   # batch tiles shard across TCs (v7x)
            vmem_limit_bytes=vmem_limit,
        ),
        cost_estimate=cost,
    )(xp,
      params["w1"], params["b1"],
      params["w2"], params["b2"],
      params["w3"], params["b3"],
      params["w4"], params["b4"])

    # Strip batch padding and the lane-padded output columns.
    return out[:B, :1]


def init_params(key):
    """PyTorch-Linear-style init (U[-1/sqrt(fan_in), +]); weights stored transposed
    as (in, out) bf16. Biases bf16 for layers 1-3 (bf16 epilogue), f32 for the
    output layer (f32 sigmoid path); output layer padded to 128 lane-dense columns."""
    dims = [(F_IN, H1), (H1, H2), (H2, H3), (H3, 1)]
    out_pads = [H1, H2, H3, OUT_PAD]
    params = {}
    for i, ((fi, fo), po) in enumerate(zip(dims, out_pads), start=1):
        key, kw, kb = jax.random.split(key, 3)
        bound = 1.0 / (fi ** 0.5)
        w = jax.random.uniform(kw, (fi, fo), jnp.float32, -bound, bound)
        b = jax.random.uniform(kb, (1, fo), jnp.float32, -bound, bound)
        wp = jnp.zeros((fi, po), jnp.bfloat16).at[:, :fo].set(w.astype(jnp.bfloat16))
        if i < 4:
            bp = b.astype(jnp.bfloat16)                    # fo == po for layers 1-3
        else:
            bp = jnp.zeros((1, po), jnp.float32).at[:, :fo].set(b)
        params[f"w{i}"] = wp
        params[f"b{i}"] = bp
    return params


def reference_forward(x, params):
    """f32 reference using the same bf16-stored weights."""
    h = x.astype(jnp.float32)
    for i in range(1, 4):
        h = h @ params[f"w{i}"].astype(jnp.float32) + params[f"b{i}"].astype(jnp.float32)
        h = jnp.where(h > 0, h, NEG_SLOPE * h)
    logits = h @ params["w4"].astype(jnp.float32) + params["b4"]
    return jax.nn.sigmoid(logits)[:, :1]


if __name__ == "__main__":
    key = jax.random.PRNGKey(0)
    key, kx = jax.random.split(key)

    B = 8
    x = jax.random.normal(kx, (B, F_IN), dtype=jnp.float32)
    params = init_params(key)

    out = discriminator_forward(x, params)
    out = jax.block_until_ready(out)

    ref = reference_forward(x, params)
    assert out.shape == (B, 1), out.shape
    err = float(jnp.max(jnp.abs(out - ref)))
    # bf16 weights + bf16 inter-layer activations/bias-add -> loosened tolerance
    # (sigmoid output, errors in practice are well below this bound).
    assert err < 2e-2, f"max err {err}"

    print("KERNEL_OK")
</pallas_src>

<mosaic_0001>
module attributes {stable_mosaic.version = 11 : i64} {
  func.func @discriminator_kernel(%arg0: i32, %arg1: memref<8x784xf32, #tpu.memory_space<vmem>>, %arg2: memref<784x1024xbf16, #tpu.memory_space<vmem>>, %arg3: memref<1x1024xbf16, #tpu.memory_space<vmem>>, %arg4: memref<1024x512xbf16, #tpu.memory_space<vmem>>, %arg5: memref<1x512xbf16, #tpu.memory_space<vmem>>, %arg6: memref<512x256xbf16, #tpu.memory_space<vmem>>, %arg7: memref<1x256xbf16, #tpu.memory_space<vmem>>, %arg8: memref<256x128xbf16, #tpu.memory_space<vmem>>, %arg9: memref<1x128xf32, #tpu.memory_space<vmem>>, %arg10: memref<8x128xf32, #tpu.memory_space<vmem>>) attributes {dimension_semantics = [#tpu.dimension_semantics<parallel>], iteration_bounds = array<i64: 1>, scalar_prefetch = 0 : i64, scratch_operands = 0 : i64, tpu.core_type = #tpu.core_type<tc>, window_params = [{transform_indices = @transform_0, window_bounds = array<i64: 8, 784>}, {pipeline_mode = #tpu.pipeline_mode<synchronous>, transform_indices = @transform_1, window_bounds = array<i64: 784, 1024>}, {pipeline_mode = #tpu.pipeline_mode<synchronous>, transform_indices = @transform_2, window_bounds = array<i64: 1, 1024>}, {pipeline_mode = #tpu.pipeline_mode<synchronous>, transform_indices = @transform_3, window_bounds = array<i64: 1024, 512>}, {pipeline_mode = #tpu.pipeline_mode<synchronous>, transform_indices = @transform_4, window_bounds = array<i64: 1, 512>}, {pipeline_mode = #tpu.pipeline_mode<synchronous>, transform_indices = @transform_5, window_bounds = array<i64: 512, 256>}, {pipeline_mode = #tpu.pipeline_mode<synchronous>, transform_indices = @transform_6, window_bounds = array<i64: 1, 256>}, {pipeline_mode = #tpu.pipeline_mode<synchronous>, transform_indices = @transform_7, window_bounds = array<i64: 256, 128>}, {pipeline_mode = #tpu.pipeline_mode<synchronous>, transform_indices = @transform_8, window_bounds = array<i64: 1, 128>}, {transform_indices = @transform_9, window_bounds = array<i64: 8, 128>}]} {
    %c0 = arith.constant 0 : index
    %c0_0 = arith.constant 0 : index
    %0 = vector.load %arg1[%c0, %c0_0] : memref<8x784xf32, #tpu.memory_space<vmem>>, vector<8x784xf32>
    %1 = arith.truncf %0 : vector<8x784xf32> to vector<8x784xbf16>
    %c0_1 = arith.constant 0 : index
    %c0_2 = arith.constant 0 : index
    %2 = vector.load %arg2[%c0_1, %c0_2] : memref<784x1024xbf16, #tpu.memory_space<vmem>>, vector<784x1024xbf16>
    %cst = arith.constant dense<0.000000e+00> : vector<8x1024xf32>
    %3 = tpu.matmul %1, %2, %cst {dimension_numbers = #tpu.dot_dimension_numbers<[1], [0], [0], [1], [0, 0, 1, 1], [], []>} : vector<8x784xbf16>, vector<784x1024xbf16>, vector<8x1024xf32> -> vector<8x1024xf32>
    %c0_3 = arith.constant 0 : index
    %c0_4 = arith.constant 0 : index
    %4 = vector.load %arg3[%c0_3, %c0_4] : memref<1x1024xbf16, #tpu.memory_space<vmem>>, vector<1x1024xbf16>
    %5 = arith.truncf %3 : vector<8x1024xf32> to vector<8x1024xbf16>
    %6 = vector.broadcast %4 : vector<1x1024xbf16> to vector<8x1024xbf16>
    %7 = arith.addf %5, %6 : vector<8x1024xbf16>
    %cst_5 = arith.constant 1.000980e-02 : bf16
    %8 = vector.broadcast %cst_5 : bf16 to vector<8x1024xbf16>
    %9 = arith.mulf %8, %7 : vector<8x1024xbf16>
    %10 = arith.maximumf %7, %9 : vector<8x1024xbf16>
    %c0_6 = arith.constant 0 : index
    %c0_7 = arith.constant 0 : index
    %11 = vector.load %arg4[%c0_6, %c0_7] : memref<1024x512xbf16, #tpu.memory_space<vmem>>, vector<1024x512xbf16>
    %cst_8 = arith.constant dense<0.000000e+00> : vector<8x512xf32>
    %12 = tpu.matmul %10, %11, %cst_8 {dimension_numbers = #tpu.dot_dimension_numbers<[1], [0], [0], [1], [0, 0, 1, 1], [], []>} : vector<8x1024xbf16>, vector<1024x512xbf16>, vector<8x512xf32> -> vector<8x512xf32>
    %c0_9 = arith.constant 0 : index
    %c0_10 = arith.constant 0 : index
    %13 = vector.load %arg5[%c0_9, %c0_10] : memref<1x512xbf16, #tpu.memory_space<vmem>>, vector<1x512xbf16>
    %14 = arith.truncf %12 : vector<8x512xf32> to vector<8x512xbf16>
    %15 = vector.broadcast %13 : vector<1x512xbf16> to vector<8x512xbf16>
    %16 = arith.addf %14, %15 : vector<8x512xbf16>
    %cst_11 = arith.constant 1.000980e-02 : bf16
    %17 = vector.broadcast %cst_11 : bf16 to vector<8x512xbf16>
    %18 = arith.mulf %17, %16 : vector<8x512xbf16>
    %19 = arith.maximumf %16, %18 : vector<8x512xbf16>
    %c0_12 = arith.constant 0 : index
    %c0_13 = arith.constant 0 : index
    %20 = vector.load %arg6[%c0_12, %c0_13] : memref<512x256xbf16, #tpu.memory_space<vmem>>, vector<512x256xbf16>
    %cst_14 = arith.constant dense<0.000000e+00> : vector<8x256xf32>
    %21 = tpu.matmul %19, %20, %cst_14 {dimension_numbers = #tpu.dot_dimension_numbers<[1], [0], [0], [1], [0, 0, 1, 1], [], []>} : vector<8x512xbf16>, vector<512x256xbf16>, vector<8x256xf32> -> vector<8x256xf32>
    %c0_15 = arith.constant 0 : index
    %c0_16 = arith.constant 0 : index
    %22 = vector.load %arg7[%c0_15, %c0_16] : memref<1x256xbf16, #tpu.memory_space<vmem>>, vector<1x256xbf16>
    %23 = arith.truncf %21 : vector<8x256xf32> to vector<8x256xbf16>
    %24 = vector.broadcast %22 : vector<1x256xbf16> to vector<8x256xbf16>
    %25 = arith.addf %23, %24 : vector<8x256xbf16>
    %cst_17 = arith.constant 1.000980e-02 : bf16
    %26 = vector.broadcast %cst_17 : bf16 to vector<8x256xbf16>
    %27 = arith.mulf %26, %25 : vector<8x256xbf16>
    %28 = arith.maximumf %25, %27 : vector<8x256xbf16>
    %c0_18 = arith.constant 0 : index
    %c0_19 = arith.constant 0 : index
    %29 = vector.load %arg8[%c0_18, %c0_19] : memref<256x128xbf16, #tpu.memory_space<vmem>>, vector<256x128xbf16>
    %cst_20 = arith.constant dense<0.000000e+00> : vector<8x128xf32>
    %30 = tpu.matmul %28, %29, %cst_20 {dimension_numbers = #tpu.dot_dimension_numbers<[1], [0], [0], [1], [0, 0, 1, 1], [], []>} : vector<8x256xbf16>, vector<256x128xbf16>, vector<8x128xf32> -> vector<8x128xf32>
    %c0_21 = arith.constant 0 : index
    %c0_22 = arith.constant 0 : index
    %31 = vector.load %arg9[%c0_21, %c0_22] : memref<1x128xf32, #tpu.memory_space<vmem>>, vector<1x128xf32>
    %32 = vector.broadcast %31 : vector<1x128xf32> to vector<8x128xf32>
    %33 = arith.addf %30, %32 : vector<8x128xf32>
    %34 = arith.negf %33 : vector<8x128xf32>
    %35 = math.exp %34 : vector<8x128xf32>
    %cst_23 = arith.constant 1.000000e+00 : f32
    %36 = vector.broadcast %cst_23 : f32 to vector<8x128xf32>
    %37 = arith.addf %36, %35 : vector<8x128xf32>
    %38 = arith.divf %36, %37 : vector<8x128xf32>
    %c0_24 = arith.constant 0 : index
    %c0_25 = arith.constant 0 : index
    %39 = vector.load %arg10[%c0_24, %c0_25] : memref<8x128xf32, #tpu.memory_space<vmem>>, vector<8x128xf32>
    tpu.vector_store %arg10[%c0_24, %c0_25], %38 {strides = array<i32>} : memref<8x128xf32, #tpu.memory_space<vmem>>, vector<8x128xf32>,
    return
  }
  func.func @transform_0(%arg0: i32) -> (i32, i32) {
    %c0_i32 = arith.constant 0 : i32
    %c0_i32_0 = arith.constant 0 : i32
    return %arg0, %c0_i32 : i32, i32
  }
  func.func @transform_1(%arg0: i32) -> (i32, i32) {
    %c0_i32 = arith.constant 0 : i32
    %c0_i32_0 = arith.constant 0 : i32
    %c0_i32_1 = arith.constant 0 : i32
    return %c0_i32, %c0_i32_0 : i32, i32
  }
  func.func @transform_2(%arg0: i32) -> (i32, i32) {
    %c0_i32 = arith.constant 0 : i32
    %c0_i32_0 = arith.constant 0 : i32
    %c0_i32_1 = arith.constant 0 : i32
    return %c0_i32, %c0_i32_0 : i32, i32
  }
  func.func @transform_3(%arg0: i32) -> (i32, i32) {
    %c0_i32 = arith.constant 0 : i32
    %c0_i32_0 = arith.constant 0 : i32
    %c0_i32_1 = arith.constant 0 : i32
    return %c0_i32, %c0_i32_0 : i32, i32
  }
  func.func @transform_4(%arg0: i32) -> (i32, i32) {
    %c0_i32 = arith.constant 0 : i32
    %c0_i32_0 = arith.constant 0 : i32
    %c0_i32_1 = arith.constant 0 : i32
    return %c0_i32, %c0_i32_0 : i32, i32
  }
  func.func @transform_5(%arg0: i32) -> (i32, i32) {
    %c0_i32 = arith.constant 0 : i32
    %c0_i32_0 = arith.constant 0 : i32
    %c0_i32_1 = arith.constant 0 : i32
    return %c0_i32, %c0_i32_0 : i32, i32
  }
  func.func @transform_6(%arg0: i32) -> (i32, i32) {
    %c0_i32 = arith.constant 0 : i32
    %c0_i32_0 = arith.constant 0 : i32
    %c0_i32_1 = arith.constant 0 : i32
    return %c0_i32, %c0_i32_0 : i32, i32
  }
  func.func @transform_7(%arg0: i32) -> (i32, i32) {
    %c0_i32 = arith.constant 0 : i32
    %c0_i32_0 = arith.constant 0 : i32
    %c0_i32_1 = arith.constant 0 : i32
    return %c0_i32, %c0_i32_0 : i32, i32
  }
  func.func @transform_8(%arg0: i32) -> (i32, i32) {
    %c0_i32 = arith.constant 0 : i32
    %c0_i32_0 = arith.constant 0 : i32
    %c0_i32_1 = arith.constant 0 : i32
    return %c0_i32, %c0_i32_0 : i32, i32
  }
  func.func @transform_9(%arg0: i32) -> (i32, i32) {
    %c0_i32 = arith.constant 0 : i32
    %c0_i32_0 = arith.constant 0 : i32
    return %arg0, %c0_i32 : i32, i32
  }
}

</mosaic_0001>

<bundles_post_ra>
// kernel: tpu_custom_call.1
= control target key start
LH: loop header
LB: loop body
LE: loop exit
PB: predicated region body
PF: predicated region fallthrough
CT: control target
= control target key end

     0   :  { %14 = vsyncpa [#allocation3], 0  ;;  %s7885_s0 = inlined_call_operand.hbm [shape: f32[8,784], index: 0, kind: input, shape index: {}]   ;;  %s7886_s1 = inlined_call_operand.hbm [shape: bf16[784,1024], index: 1, kind: input, shape index: {}]   ;;  %s7887_s2 = inlined_call_operand.hbm [shape: bf16[1,1024], index: 2, kind: input, shape index: {}]   ;;  %s7888_s3 = inlined_call_operand.hbm [shape: bf16[1024,512], index: 3, kind: input, shape index: {}]   ;;  %s7889_s4 = inlined_call_operand.hbm [shape: bf16[1,512], index: 4, kind: input, shape index: {}]   ;;  %s7890_s5 = inlined_call_operand.hbm [shape: bf16[512,256], index: 5, kind: input, shape index: {}]   ;;  %s7891_s6 = inlined_call_operand.hbm [shape: bf16[1,256], index: 6, kind: input, shape index: {}]   ;;  %s7892_s7 = inlined_call_operand.hbm [shape: bf16[256,128], index: 7, kind: input, shape index: {}]   ;;  %s7893_s8 = inlined_call_operand.hbm [shape: f32[1,128], index: 8, kind: input, shape index: {}]   ;;  %s7894_s9 = inlined_call_operand.hbm [shape: f32[8,128], index: 9, kind: output, shape index: {}]  }
   0x1   :  { %15 = vsyncpa [#allocation6], 0 }
   0x2   :  { %16 = vsyncpa [#allocation9], 0 }
   0x3   :  { %17 = vsyncpa [#allocation12], 0 }
   0x4   :  { %18 = vsyncpa [#allocation15], 0 }
   0x5   :  { %19 = vsyncpa [#allocation4], 0  ;;  %s7542_s30 = smov [#allocation5]   ;;  %s7310_s13 = scalar_lea.hbm %s7886_s1, 50176 }
   0x6   :  { %s35_s10 = sshll.u32 %s7542_s30, 4  ;;  %p7311_p0 = scmp.ne.s32.totalorder %s7886_s1, %s7310_s13  ;;  %s36_s10 = int_to_ptr.vmem [resolvable:$true] %s35_s10 }
   0x7   :  { %p7314_p1 = scmp.lt.u32.totalorder %s7310_s13, %s7886_s1 }
   0x9   :  { %p7316_p2 = pnand %p7314_p1, %p7311_p0 }
   0xb   :  { %7319 = shalt.err (!%p7316_p2)
}
   0xc   :  { %s7320_s18 = scalar_lea.vmem %s36_s10, 50176  ;;  %p7325_p4 = scmp.lt.s32.totalorder %s36_s10, %s36_s10 }
   0xd   :  { %p7321_p3 = scmp.ne.s32.totalorder %s36_s10, %s7320_s18  ;;  %p7326_p5 = scmp.lt.s32.totalorder %s7320_s18, %s7320_s18 }
   0xf   :  { %p7327_p6 = por %p7326_p5, %p7325_p4 }
  0x11   :  { %p7328_p7 = pnand %p7327_p6, %p7321_p3 }
  0x13   :  { %7331 = shalt.err (!%p7328_p7)
}
  0x14   :  { %s7543_s19 = smov 512   ;;  %s7544_s20 = smov 32  }
  0x15   :  { %41 = dma.hbm_to_vmem [thread:$0]  %s7886_s1, 50176, %s36_s10, [#allocation6], %s7543_s19, %s7543_s19, %s7544_s20  }
  0x16   :  { %s7545_s23 = smov [#allocation8]   ;;  %s7332_s27 = scalar_lea.hbm %s7888_s3, 32768 }
  0x17   :  { %s57_s24 = sshll.u32 %s7545_s23, 4  ;;  %p7333_p8 = scmp.ne.s32.totalorder %s7888_s3, %s7332_s27  ;;  %s58_s24 = int_to_ptr.vmem [resolvable:$true] %s57_s24 }
  0x18   :  { %p7336_p9 = scmp.lt.u32.totalorder %s7332_s27, %s7888_s3 }
  0x1a   :  { %p7338_p10 = pnand %p7336_p9, %p7333_p8 }
  0x1c   :  { %7341 = shalt.err (!%p7338_p10)
}
  0x1d   :  { %s7342_s12 = scalar_lea.vmem %s58_s24, 32768  ;;  %p7347_p12 = scmp.lt.s32.totalorder %s58_s24, %s58_s24 }
  0x1e   :  { %p7343_p11 = scmp.ne.s32.totalorder %s58_s24, %s7342_s12  ;;  %p7348_p13 = scmp.lt.s32.totalorder %s7342_s12, %s7342_s12 }
  0x20   :  { %p7349_p0 = por %p7348_p13, %p7347_p12 }
  0x22   :  { %p7350_p1 = pnand %p7349_p0, %p7343_p11 }
  0x24   :  { %7353 = shalt.err (!%p7350_p1)
}
  0x25   :  { %s7546_s1 = smov 256   ;;  %s7547_s10 = smov 16  }
  0x26   :  { %63 = dma.hbm_to_vmem [thread:$0]  %s7888_s3, 32768, %s58_s24, [#allocation9], %s7546_s1, %s7546_s1, %s7547_s10  }
  0x27   :  { %s7548_s15 = smov [#allocation11]   ;;  %s7354_s19 = scalar_lea.hbm %s7890_s5, 8192 }
  0x28   :  { %s79_s16 = sshll.u32 %s7548_s15, 4  ;;  %p7355_p2 = scmp.ne.s32.totalorder %s7890_s5, %s7354_s19  ;;  %s80_s16 = int_to_ptr.vmem [resolvable:$true] %s79_s16 }
  0x29   :  { %p7358_p3 = scmp.lt.u32.totalorder %s7354_s19, %s7890_s5 }
  0x2b   :  { %p7360_p4 = pnand %p7358_p3, %p7355_p2 }
  0x2d   :  { %7363 = shalt.err (!%p7360_p4)
}
  0x2e   :  { %s7364_s25 = scalar_lea.vmem %s80_s16, 8192  ;;  %p7369_p6 = scmp.lt.s32.totalorder %s80_s16, %s80_s16 }
  0x2f   :  { %p7365_p5 = scmp.ne.s32.totalorder %s80_s16, %s7364_s25  ;;  %p7370_p7 = scmp.lt.s32.totalorder %s7364_s25, %s7364_s25 }
  0x31   :  { %p7371_p8 = por %p7370_p7, %p7369_p6 }
  0x33   :  { %p7372_p9 = pnand %p7371_p8, %p7365_p5 }
  0x35   :  { %7375 = shalt.err (!%p7372_p9)
}
  0x36   :  { %s7549_s3 = smov 128   ;;  %s7550_s24 = smov 8  }
  0x37   :  { %85 = dma.hbm_to_vmem [thread:$0]  %s7890_s5, 8192, %s80_s16, [#allocation12], %s7549_s3, %s7549_s3, %s7550_s24  }
  0x38   :  { %s7551_s28 = smov [#allocation14]   ;;  %s7376_s12 = scalar_lea.hbm %s7892_s7, 2048 }
  0x39   :  { %s101_s29 = sshll.u32 %s7551_s28, 4  ;;  %p7377_p10 = scmp.ne.s32.totalorder %s7892_s7, %s7376_s12  ;;  %s102_s29 = int_to_ptr.vmem [resolvable:$true] %s101_s29 }
  0x3a   :  { %p7380_p11 = scmp.lt.u32.totalorder %s7376_s12, %s7892_s7 }
  0x3c   :  { %p7382_p12 = pnand %p7380_p11, %p7377_p10 }
  0x3e   :  { %7385 = shalt.err (!%p7382_p12)
}
  0x3f   :  { %s7386_s15 = scalar_lea.vmem %s102_s29, 2048  ;;  %p7391_p0 = scmp.lt.s32.totalorder %s102_s29, %s102_s29 }
  0x40   :  { %p7387_p13 = scmp.ne.s32.totalorder %s102_s29, %s7386_s15  ;;  %p7392_p1 = scmp.lt.s32.totalorder %s7386_s15, %s7386_s15 }
  0x42   :  { %p7393_p2 = por %p7392_p1, %p7391_p0 }
  0x44   :  { %p7394_p3 = pnand %p7393_p2, %p7387_p13 }
  0x46   :  { %7397 = shalt.err (!%p7394_p3)
}
  0x47   :  { %s7552_s5 = smov 64   ;;  %s7553_s16 = smov 4  }
  0x48   :  { %107 = dma.hbm_to_vmem [thread:$0]  %s7892_s7, 2048, %s102_s29, [#allocation15], %s7552_s5, %s7552_s5, %s7553_s16  }
  0x49   :  { %s7554_s19 = smov [#allocation2]   ;;  %s7555_s21 = smov [#allocation7]  }
  0x4a   :  { %s26_s20 = sshll.u32 %s7554_s19, 4  ;;  %s48_s22 = sshll.u32 %s7555_s21, 4  ;;  %s27_s20 = int_to_ptr.vmem [resolvable:$true] %s26_s20  ;;  %s49_s22 = int_to_ptr.vmem [resolvable:$true] %s48_s22 }
  0x4b   :  { %s7398_s3 = scalar_lea.hbm %s7885_s0, 896 }
  0x4c   :  { %p7399_p4 = scmp.ne.s32.totalorder %s7885_s0, %s7398_s3  ;;  %p7402_p5 = scmp.lt.u32.totalorder %s7398_s3, %s7885_s0 }
  0x4e   :  { %p7404_p6 = pnand %p7402_p5, %p7399_p4 }
  0x50   :  { %7407 = shalt.err (!%p7404_p6)
}
  0x51   :  { %s7408_s7 = scalar_lea.vmem %s27_s20, 896  ;;  %p7413_p8 = scmp.lt.s32.totalorder %s27_s20, %s27_s20 }
  0x52   :  { %p7409_p7 = scmp.ne.s32.totalorder %s27_s20, %s7408_s7  ;;  %p7414_p9 = scmp.lt.s32.totalorder %s7408_s7, %s7408_s7 }
  0x54   :  { %p7415_p10 = por %p7414_p9, %p7413_p8 }
  0x56   :  { %p7416_p11 = pnand %p7415_p10, %p7409_p7 }
  0x58   :  { %7419 = shalt.err (!%p7416_p11)
}
  0x59   :  { %29 = dma.hbm_to_vmem [thread:$0]  %s7885_s0, 896, %s27_s20, [#allocation3]  }
  0x5a   :  { %s7420_s1 = scalar_lea.hbm %s7887_s2, 128 }
  0x5b   :  { %p7421_p12 = scmp.ne.s32.totalorder %s7887_s2, %s7420_s1  ;;  %p7424_p13 = scmp.lt.u32.totalorder %s7420_s1, %s7887_s2 }
  0x5d   :  { %p7426_p0 = pnand %p7424_p13, %p7421_p12 }
  0x5f   :  { %7429 = shalt.err (!%p7426_p0)
}
  0x60   :  { %s7430_s5 = scalar_lea.vmem %s49_s22, 128  ;;  %p7435_p2 = scmp.lt.s32.totalorder %s49_s22, %s49_s22 }
  0x61   :  { %p7431_p1 = scmp.ne.s32.totalorder %s49_s22, %s7430_s5  ;;  %p7436_p3 = scmp.lt.s32.totalorder %s7430_s5, %s7430_s5 }
  0x63   :  { %p7437_p4 = por %p7436_p3, %p7435_p2 }
  0x65   :  { %p7438_p5 = pnand %p7437_p4, %p7431_p1 }
  0x67   :  { %7441 = shalt.err (!%p7438_p5)
}
  0x68   :  { %51 = dma.hbm_to_vmem [thread:$0]  %s7887_s2, 128, %s49_s22, [#allocation6]  }
  0x69   :  { %s7556_s17 = smov [#allocation10]   ;;  %s7557_s19 = smov [#allocation13]  }
  0x6a   :  { %s70_s18 = sshll.u32 %s7556_s17, 4  ;;  %s92_s20 = sshll.u32 %s7557_s19, 4  ;;  %s71_s18 = int_to_ptr.vmem [resolvable:$true] %s70_s18  ;;  %s93_s20 = int_to_ptr.vmem [resolvable:$true] %s92_s20 }
  0x6b   :  { %s7442_s25 = scalar_lea.hbm %s7889_s4, 64 }
  0x6c   :  { %p7443_p6 = scmp.ne.s32.totalorder %s7889_s4, %s7442_s25  ;;  %p7446_p7 = scmp.lt.u32.totalorder %s7442_s25, %s7889_s4 }
  0x6e   :  { %p7448_p8 = pnand %p7446_p7, %p7443_p6 }
  0x70   :  { %7451 = shalt.err (!%p7448_p8)
}
  0x71   :  { %s7452_s2 = scalar_lea.vmem %s71_s18, 64  ;;  %p7457_p10 = scmp.lt.s32.totalorder %s71_s18, %s71_s18 }
  0x72   :  { %p7453_p9 = scmp.ne.s32.totalorder %s71_s18, %s7452_s2  ;;  %p7458_p11 = scmp.lt.s32.totalorder %s7452_s2, %s7452_s2 }
  0x74   :  { %p7459_p12 = por %p7458_p11, %p7457_p10 }
  0x76   :  { %p7460_p13 = pnand %p7459_p12, %p7453_p9 }
  0x78   :  { %7463 = shalt.err (!%p7460_p13)
}
  0x79   :  { %73 = dma.hbm_to_vmem [thread:$0]  %s7889_s4, 64, %s71_s18, [#allocation9]  }
  0x7a   :  { %s7464_s30 = scalar_lea.hbm %s7891_s6, 32 }
  0x7b   :  { %p7465_p0 = scmp.ne.s32.totalorder %s7891_s6, %s7464_s30  ;;  %p7468_p1 = scmp.lt.u32.totalorder %s7464_s30, %s7891_s6 }
  0x7d   :  { %p7470_p2 = pnand %p7468_p1, %p7465_p0 }
  0x7f   :  { %7473 = shalt.err (!%p7470_p2)
}
  0x80   :  { %s7474_s13 = scalar_lea.vmem %s93_s20, 32  ;;  %p7479_p4 = scmp.lt.s32.totalorder %s93_s20, %s93_s20 }
  0x81   :  { %p7475_p3 = scmp.ne.s32.totalorder %s93_s20, %s7474_s13  ;;  %p7480_p5 = scmp.lt.s32.totalorder %s7474_s13, %s7474_s13 }
  0x83   :  { %p7481_p6 = por %p7480_p5, %p7479_p4 }
  0x85   :  { %p7482_p7 = pnand %p7481_p6, %p7475_p3 }
  0x87   :  { %7485 = shalt.err (!%p7482_p7)
}
  0x88   :  { %95 = dma.hbm_to_vmem [thread:$0]  %s7891_s6, 32, %s93_s20, [#allocation12]  }
  0x89   :  { %s7558_s15 = smov [#allocation16]   ;;  %s7486_s17 = scalar_lea.hbm %s7893_s8, 16 }
  0x8a   :  { %s114_s5 = sshll.u32 %s7558_s15, 4  ;;  %p7487_p8 = scmp.ne.s32.totalorder %s7893_s8, %s7486_s17  ;;  %s115_s5 = int_to_ptr.vmem [resolvable:$true] %s114_s5 }
  0x8b   :  { %p7490_p9 = scmp.lt.u32.totalorder %s7486_s17, %s7893_s8 }
  0x8d   :  { %p7492_p10 = pnand %p7490_p9, %p7487_p8 }
  0x8f   :  { %7495 = shalt.err (!%p7492_p10)
}
  0x90   :  { %s7496_s25 = scalar_lea.vmem %s115_s5, 16  ;;  %s7500_s6 = scalar_lea.vmem %s115_s5, 32 }
  0x91   :  { %p7497_p11 = scmp.ne.s32.totalorder %s115_s5, %s7496_s25  ;;  %p7501_p12 = scmp.lt.s32.totalorder %s115_s5, %s115_s5 }
  0x92   :  { %p7502_p13 = scmp.lt.s32.totalorder %s7500_s6, %s7496_s25 }
  0x94   :  { %p7503_p0 = por %p7502_p13, %p7501_p12 }
  0x96   :  { %p7504_p1 = pnand %p7503_p0, %p7497_p11 }
  0x98   :  { %7507 = shalt.err (!%p7504_p1)
}
  0x99   :  { %117 = dma.hbm_to_vmem [thread:$0]  %s7893_s8, 16, %s115_s5, [#allocation15]  }
  0x9a   :  { %7530 = dma.done.wait [#allocation3], 896  }
  0x9b   :  { %7531 = vsyncadd [#allocation3], 4294966400 }
  0x9c   :  { %7532 = dma.done.wait [#allocation6], 50304  }
  0x9d   :  { %7533 = vsyncadd [#allocation6], 4294916992 }
  0x9e   :  { %7534 = dma.done.wait [#allocation9], 32832  }
  0x9f   :  { %7535 = vsyncadd [#allocation9], 4294934464 }
  0xa0   :  { %7536 = dma.done.wait [#allocation12], 8224  }
  0xa1   :  { %7537 = vsyncadd [#allocation12], 4294959072 }
  0xa2   :  { %7538 = dma.done.wait [#allocation15], 2064  }
  0xa3   :  { %7539 = vsyncadd [#allocation15], 4294965232  ;;  %v161_v0 = vld [vmem:[#allocation5] sm:$0xff]  ;;  %v148_v53 = vld [vmem:[#allocation2 + $0x8] sm:$0xff]  ;;  %vm2513_vm0 = vcmask 130048   ;;  %s7561_s8 = smov [#allocation17]  }
  0xa4   :  { %v165_v1 = vld [vmem:[#allocation5 + $0x20] sm:$0xff]  ;;  %v7720_v57 = vpack.c.bf16 %v148_v53, %v148_v53  ;;  %s5946_s24 = sshll.u32 %s7561_s8, 4  ;;  %s5947_s24 = int_to_ptr.vmem [resolvable:$true] %s5946_s24 }
  0xa5   :  { %v289_v2 = vld [vmem:[#allocation5 + $0x400] sm:$0xff]  ;;  %v5960_v3 = vcombine.high %v161_v0, %v165_v1  ;;  %v5959_v5 = vcombine.low %v161_v0, %v165_v1  ;;  %s7508_s26 = scalar_lea.vmem %s5947_s24, 128  ;;  %p7513_p3 = scmp.lt.s32.totalorder %s5947_s24, %s5947_s24 }
  0xa6   :  { %v293_v4 = vld [vmem:[#allocation5 + $0x420] sm:$0xff]  ;;  %2549 = vmatprep.mubr.bf16.mxu1 %v7720_v57  ;;  %p7509_p2 = scmp.ne.s32.totalorder %s5947_s24, %s7508_s26  ;;  %p7514_p4 = scmp.lt.s32.totalorder %s7508_s26, %s7508_s26 }
  0xa7   :  { %v169_v6 = vld [vmem:[#allocation5 + $0x40] sm:$0xff]  ;;  %v6088_v8 = vcombine.high %v289_v2, %v293_v4  ;;  %v6087_v9 = vcombine.low %v289_v2, %v293_v4  ;;  %2517 = vmatprep.subr.bf16.mxu1 %v5960_v3 }
  0xa8   :  { %v173_v7 = vld [vmem:[#allocation5 + $0x60] sm:$0xff]  ;;  %2518 = vmatpush1.bf16.msra.mxu1 %v5959_v5  ;;  %p7515_p5 = por %p7514_p4, %p7513_p3 }
  0xa9   :  { %v5968_v10 = vcombine.high %v169_v6, %v173_v7  ;;  %v297_v11 = vld [vmem:[#allocation5 + $0x440] sm:$0xff]  ;;  %2558 = vmatprep.subr.bf16.mxu0 %v6088_v8  ;;  %v5967_v18 = vcombine.low %v169_v6, %v173_v7 }
  0xaa   :  { %v301_v12 = vld [vmem:[#allocation5 + $0x460] sm:$0xff]  ;;  %2559 = vmatpush1.bf16.msra.mxu0 %v6087_v9  ;;  %p7516_p6 = pnand %p7515_p5, %p7509_p2 }
  0xab   :  { %v177_v13 = vld [vmem:[#allocation5 + $0x80] sm:$0xff]  ;;  %v6096_v14 = vcombine.high %v297_v11, %v301_v12  ;;  %2519 = vmatprep.subr.bf16.mxu1 %v5968_v10  ;;  %v6095_v19 = vcombine.low %v297_v11, %v301_v12 }
  0xac   :  { %v181_v15 = vld [vmem:[#allocation5 + $0xa0] sm:$0xff]  ;;  %2520 = vmatpush1.bf16.msra.mxu1 %v5967_v18 }
  0xad   :  { %v305_v16 = vld [vmem:[#allocation5 + $0x480] sm:$0xff]  ;;  %v5976_v20 = vcombine.high %v177_v13, %v181_v15  ;;  %2560 = vmatprep.subr.bf16.mxu0 %v6096_v14  ;;  %v5975_v26 = vcombine.low %v177_v13, %v181_v15 }
  0xae   :  { %v309_v17 = vld [vmem:[#allocation5 + $0x4a0] sm:$0xff]  ;;  %2561 = vmatpush1.bf16.msra.mxu0 %v6095_v19 }
  0xaf   :  { %v6104_v21 = vcombine.high %v305_v16, %v309_v17  ;;  %v185_v22 = vld [vmem:[#allocation5 + $0xc0] sm:$0xff]  ;;  %2521 = vmatprep.subr.bf16.mxu1 %v5976_v20  ;;  %v6103_v27 = vcombine.low %v305_v16, %v309_v17 }
  0xb0   :  { %v189_v23 = vld [vmem:[#allocation5 + $0xe0] sm:$0xff]  ;;  %2522 = vmatpush1.bf16.msra.mxu1 %v5975_v26 }
  0xb1   :  { %v313_v24 = vld [vmem:[#allocation5 + $0x4c0] sm:$0xff]  ;;  %v5984_v28 = vcombine.high %v185_v22, %v189_v23  ;;  %2562 = vmatprep.subr.bf16.mxu0 %v6104_v21  ;;  %v5983_v34 = vcombine.low %v185_v22, %v189_v23 }
  0xb2   :  { %v317_v25 = vld [vmem:[#allocation5 + $0x4e0] sm:$0xff]  ;;  %2563 = vmatpush1.bf16.msra.mxu0 %v6103_v27 }
  0xb3   :  { %v6112_v29 = vcombine.high %v313_v24, %v317_v25  ;;  %v193_v30 = vld [vmem:[#allocation5 + $0x100] sm:$0xff]  ;;  %2523 = vmatprep.subr.bf16.mxu1 %v5984_v28  ;;  %v6111_v35 = vcombine.low %v313_v24, %v317_v25 }
  0xb4   :  { %v197_v31 = vld [vmem:[#allocation5 + $0x120] sm:$0xff]  ;;  %2524 = vmatpush1.bf16.msra.mxu1 %v5983_v34 }
  0xb5   :  { %v321_v32 = vld [vmem:[#allocation5 + $0x500] sm:$0xff]  ;;  %v5992_v36 = vcombine.high %v193_v30, %v197_v31  ;;  %2564 = vmatprep.subr.bf16.mxu0 %v6112_v29  ;;  %v5991_v42 = vcombine.low %v193_v30, %v197_v31 }
  0xb6   :  { %v325_v33 = vld [vmem:[#allocation5 + $0x520] sm:$0xff]  ;;  %2565 = vmatpush1.bf16.msra.mxu0 %v6111_v35 }
  0xb7   :  { %v6120_v37 = vcombine.high %v321_v32, %v325_v33  ;;  %v201_v38 = vld [vmem:[#allocation5 + $0x140] sm:$0xff]  ;;  %2525 = vmatprep.subr.bf16.mxu1 %v5992_v36  ;;  %v6119_v43 = vcombine.low %v321_v32, %v325_v33 }
  0xb8   :  { %v205_v39 = vld [vmem:[#allocation5 + $0x160] sm:$0xff]  ;;  %2526 = vmatpush1.bf16.msra.mxu1 %v5991_v42 }
  0xb9   :  { %v329_v40 = vld [vmem:[#allocation5 + $0x540] sm:$0xff]  ;;  %v6000_v44 = vcombine.high %v201_v38, %v205_v39  ;;  %2566 = vmatprep.subr.bf16.mxu0 %v6120_v37  ;;  %v5999_v50 = vcombine.low %v201_v38, %v205_v39 }
  0xba   :  { %v333_v41 = vld [vmem:[#allocation5 + $0x560] sm:$0xff]  ;;  %2567 = vmatpush1.bf16.msra.mxu0 %v6119_v43 }
  0xbb   :  { %v6128_v45 = vcombine.high %v329_v40, %v333_v41  ;;  %v209_v46 = vld [vmem:[#allocation5 + $0x180] sm:$0xff]  ;;  %2527 = vmatprep.subr.bf16.mxu1 %v6000_v44  ;;  %v6127_v51 = vcombine.low %v329_v40, %v333_v41 }
  0xbc   :  { %v213_v47 = vld [vmem:[#allocation5 + $0x1a0] sm:$0xff]  ;;  %2528 = vmatpush1.bf16.msra.mxu1 %v5999_v50 }
  0xbd   :  { %v337_v48 = vld [vmem:[#allocation5 + $0x580] sm:$0xff]  ;;  %v6008_v52 = vcombine.high %v209_v46, %v213_v47  ;;  %2568 = vmatprep.subr.bf16.mxu0 %v6128_v45  ;;  %v6007_v62 = vcombine.low %v209_v46, %v213_v47 }
  0xbe   :  { %v341_v49 = vld [vmem:[#allocation5 + $0x5a0] sm:$0xff]  ;;  %2569 = vmatpush1.bf16.msra.mxu0 %v6127_v51 }
  0xbf   :  { %v6136_v54 = vcombine.high %v337_v48, %v341_v49  ;;  %v217_v55 = vld [vmem:[#allocation5 + $0x1c0] sm:$0xff]  ;;  %2529 = vmatprep.subr.bf16.mxu1 %v6008_v52  ;;  %v6135_v63 = vcombine.low %v337_v48, %v341_v49 }
  0xc0   :  { %v221_v56 = vld [vmem:[#allocation5 + $0x1e0] sm:$0xff]  ;;  %2530 = vmatpush1.bf16.msra.mxu1 %v6007_v62 }
  0xc1   :  { %v150_v58 = vld [vmem:[#allocation2 + $0x18] sm:$0xff]  ;;  %v6016_v0 = vcombine.high %v217_v55, %v221_v56  ;;  %2570 = vmatprep.subr.bf16.mxu0 %v6136_v54  ;;  %v6015_v6 = vcombine.low %v217_v55, %v221_v56 }
  0xc2   :  { %v345_v59 = vld [vmem:[#allocation5 + $0x5c0] sm:$0xff]  ;;  %v7722_v61 = vpack.c.bf16 %v150_v58, %v150_v58  ;;  %2571 = vmatpush1.bf16.msra.mxu0 %v6135_v63 }
  0xc3   :  { %v349_v60 = vld [vmem:[#allocation5 + $0x5e0] sm:$0xff]  ;;  %2531 = vmatprep.subr.bf16.mxu1 %v6016_v0 }
  0xc4   :  { %v6144_v1 = vcombine.high %v345_v59, %v349_v60  ;;  %v225_v2 = vld [vmem:[#allocation5 + $0x200] sm:$0xff]  ;;  %2590 = vmatprep.mubr.bf16.mxu0 %v7722_v61  ;;  %v6143_v7 = vcombine.low %v345_v59, %v349_v60  ;;  %2532 = vmatpush1.bf16.msra.mxu1 %v6015_v6 }
  0xc5   :  { %v229_v3 = vld [vmem:[#allocation5 + $0x220] sm:$0xff] }
  0xc6   :  { %v353_v4 = vld [vmem:[#allocation5 + $0x600] sm:$0xff]  ;;  %v6024_v8 = vcombine.high %v225_v2, %v229_v3  ;;  %2572 = vmatprep.subr.bf16.mxu0 %v6144_v1  ;;  %v6023_v14 = vcombine.low %v225_v2, %v229_v3 }
  0xc7   :  { %v357_v5 = vld [vmem:[#allocation5 + $0x620] sm:$0xff]  ;;  %2573 = vmatpush1.bf16.msra.mxu0 %v6143_v7 }
  0xc8   :  { %v6152_v9 = vcombine.high %v353_v4, %v357_v5  ;;  %v233_v10 = vld [vmem:[#allocation5 + $0x240] sm:$0xff]  ;;  %2533 = vmatprep.subr.bf16.mxu1 %v6024_v8  ;;  %v6151_v15 = vcombine.low %v353_v4, %v357_v5  ;;  %v162_v4 = vld [vmem:[#allocation5 + $0x8] sm:$0xff] }
  0xc9   :  { %v237_v11 = vld [vmem:[#allocation5 + $0x260] sm:$0xff]  ;;  %2534 = vmatpush1.bf16.msra.mxu1 %v6023_v14  ;;  %v166_v5 = vld [vmem:[#allocation5 + $0x28] sm:$0xff] }
  0xca   :  { %v361_v12 = vld [vmem:[#allocation5 + $0x640] sm:$0xff]  ;;  %v6032_v16 = vcombine.high %v233_v10, %v237_v11  ;;  %2574 = vmatprep.subr.bf16.mxu0 %v6152_v9  ;;  %v6031_v22 = vcombine.low %v233_v10, %v237_v11  ;;  %v147_v9 = vld [vmem:[#allocation2] sm:$0xff]  ;;  %v5962_v11 = vcombine.high %v162_v4, %v166_v5 }
  0xcb   :  { %v365_v13 = vld [vmem:[#allocation5 + $0x660] sm:$0xff]  ;;  %2575 = vmatpush1.bf16.msra.mxu0 %v6151_v15  ;;  %v170_v14 = vld [vmem:[#allocation5 + $0x48] sm:$0xff] }
  0xcc   :  { %v6160_v17 = vcombine.high %v361_v12, %v365_v13  ;;  %v241_v18 = vld [vmem:[#allocation5 + $0x280] sm:$0xff]  ;;  %2535 = vmatprep.subr.bf16.mxu1 %v6032_v16  ;;  %v6159_v23 = vcombine.low %v361_v12, %v365_v13  ;;  %v149_v12 = vld [vmem:[#allocation2 + $0x10] sm:$0xff]  ;;  %v174_v15 = vld [vmem:[#allocation5 + $0x68] sm:$0xff]  ;;  %v7726_v16 = vpack.c.bf16 %v147_v9, %v147_v9 }
  0xcd   :  { %v245_v19 = vld [vmem:[#allocation5 + $0x2a0] sm:$0xff]  ;;  %2536 = vmatpush1.bf16.msra.mxu1 %v6031_v22 }
  0xce   :  { %v369_v20 = vld [vmem:[#allocation5 + $0x680] sm:$0xff]  ;;  %v6040_v24 = vcombine.high %v241_v18, %v245_v19  ;;  %2576 = vmatprep.subr.bf16.mxu0 %v6160_v17  ;;  %v6039_v30 = vcombine.low %v241_v18, %v245_v19  ;;  %v152_v19 = vld [vmem:[#allocation2 + $0x28] sm:$0xff] }
  0xcf   :  { %v373_v21 = vld [vmem:[#allocation5 + $0x6a0] sm:$0xff]  ;;  %2577 = vmatpush1.bf16.msra.mxu0 %v6159_v23  ;;  %v5970_v23 = vcombine.high %v170_v14, %v174_v15 }
  0xd0   :  { %v6168_v25 = vcombine.high %v369_v20, %v373_v21  ;;  %v249_v26 = vld [vmem:[#allocation5 + $0x2c0] sm:$0xff]  ;;  %2537 = vmatprep.subr.bf16.mxu1 %v6040_v24  ;;  %v6167_v31 = vcombine.low %v369_v20, %v373_v21  ;;  %v5961_v20 = vcombine.low %v162_v4, %v166_v5  ;;  %v7728_v21 = vpack.c.bf16 %v149_v12, %v149_v12 }
  0xd1   :  { %v253_v27 = vld [vmem:[#allocation5 + $0x2e0] sm:$0xff]  ;;  %2538 = vmatpush1.bf16.msra.mxu1 %v6039_v30  ;;  %v5969_v30 = vcombine.low %v170_v14, %v174_v15  ;;  %v226_v14 = vld [vmem:[#allocation5 + $0x208] sm:$0xff] }
  0xd2   :  { %v377_v28 = vld [vmem:[#allocation5 + $0x6c0] sm:$0xff]  ;;  %v6048_v32 = vcombine.high %v249_v26, %v253_v27  ;;  %2578 = vmatprep.subr.bf16.mxu0 %v6168_v25  ;;  %v6047_v38 = vcombine.low %v249_v26, %v253_v27  ;;  %v178_v27 = vld [vmem:[#allocation5 + $0x88] sm:$0xff] }
  0xd3   :  { %v381_v29 = vld [vmem:[#allocation5 + $0x6e0] sm:$0xff]  ;;  %2579 = vmatpush1.bf16.msra.mxu0 %v6167_v31  ;;  %v230_v15 = vld [vmem:[#allocation5 + $0x228] sm:$0xff] }
  0xd4   :  { %v6176_v33 = vcombine.high %v377_v28, %v381_v29  ;;  %v257_v34 = vld [vmem:[#allocation5 + $0x300] sm:$0xff]  ;;  %2539 = vmatprep.subr.bf16.mxu1 %v6048_v32  ;;  %v6175_v39 = vcombine.low %v377_v28, %v381_v29  ;;  %v182_v28 = vld [vmem:[#allocation5 + $0xa8] sm:$0xff]  ;;  %v7730_v29 = vpack.c.bf16 %v152_v19, %v152_v19  ;;  %v6026_v19 = vcombine.high %v226_v14, %v230_v15 }
  0xd5   :  { %v261_v35 = vld [vmem:[#allocation5 + $0x320] sm:$0xff]  ;;  %2540 = vmatpush1.bf16.msra.mxu1 %v6047_v38  ;;  %v5978_v32 = vcombine.high %v178_v27, %v182_v28  ;;  %v5977_v38 = vcombine.low %v178_v27, %v182_v28 }
  0xd6   :  { %v385_v36 = vld [vmem:[#allocation5 + $0x700] sm:$0xff]  ;;  %v6056_v40 = vcombine.high %v257_v34, %v261_v35  ;;  %2580 = vmatprep.subr.bf16.mxu0 %v6176_v33  ;;  %v6055_v46 = vcombine.low %v257_v34, %v261_v35 }
  0xd7   :  { %v389_v37 = vld [vmem:[#allocation5 + $0x720] sm:$0xff]  ;;  %2581 = vmatpush1.bf16.msra.mxu0 %v6175_v39 }
  0xd8   :  { %v6184_v41 = vcombine.high %v385_v36, %v389_v37  ;;  %v265_v42 = vld [vmem:[#allocation5 + $0x340] sm:$0xff]  ;;  %2541 = vmatprep.subr.bf16.mxu1 %v6056_v40  ;;  %v6183_v47 = vcombine.low %v385_v36, %v389_v37  ;;  %v186_v36 = vld [vmem:[#allocation5 + $0xc8] sm:$0xff] }
  0xd9   :  { %v269_v43 = vld [vmem:[#allocation5 + $0x360] sm:$0xff]  ;;  %2542 = vmatpush1.bf16.msra.mxu1 %v6055_v46  ;;  %v190_v37 = vld [vmem:[#allocation5 + $0xe8] sm:$0xff] }
  0xda   :  { %v393_v44 = vld [vmem:[#allocation5 + $0x740] sm:$0xff]  ;;  %v6064_v48 = vcombine.high %v265_v42, %v269_v43  ;;  %2582 = vmatprep.subr.bf16.mxu0 %v6184_v41  ;;  %v6063_v54 = vcombine.low %v265_v42, %v269_v43  ;;  %v5986_v40 = vcombine.high %v186_v36, %v190_v37  ;;  %v5985_v46 = vcombine.low %v186_v36, %v190_v37 }
  0xdb   :  { %v397_v45 = vld [vmem:[#allocation5 + $0x760] sm:$0xff]  ;;  %2583 = vmatpush1.bf16.msra.mxu0 %v6183_v47 }
  0xdc   :  { %v6192_v49 = vcombine.high %v393_v44, %v397_v45  ;;  %v273_v50 = vld [vmem:[#allocation5 + $0x380] sm:$0xff]  ;;  %2543 = vmatprep.subr.bf16.mxu1 %v6064_v48  ;;  %v6191_v55 = vcombine.low %v393_v44, %v397_v45  ;;  %v194_v44 = vld [vmem:[#allocation5 + $0x108] sm:$0xff] }
  0xdd   :  { %v277_v51 = vld [vmem:[#allocation5 + $0x3a0] sm:$0xff]  ;;  %2544 = vmatpush1.bf16.msra.mxu1 %v6063_v54  ;;  %v198_v45 = vld [vmem:[#allocation5 + $0x128] sm:$0xff] }
  0xde   :  { %v401_v52 = vld [vmem:[#allocation5 + $0x780] sm:$0xff]  ;;  %v6072_v56 = vcombine.high %v273_v50, %v277_v51  ;;  %2584 = vmatprep.subr.bf16.mxu0 %v6192_v49  ;;  %v6071_v0 = vcombine.low %v273_v50, %v277_v51  ;;  %v5994_v48 = vcombine.high %v194_v44, %v198_v45  ;;  %v5993_v54 = vcombine.low %v194_v44, %v198_v45 }
  0xdf   :  { %v405_v53 = vld [vmem:[#allocation5 + $0x7a0] sm:$0xff]  ;;  %2585 = vmatpush1.bf16.msra.mxu0 %v6191_v55 }
  0xe0   :  { %v6200_v58 = vcombine.high %v401_v52, %v405_v53  ;;  %v281_v59 = vld [vmem:[#allocation5 + $0x3c0] sm:$0xff]  ;;  %2545 = vmatprep.subr.bf16.mxu1 %v6072_v56  ;;  %v6199_v1 = vcombine.low %v401_v52, %v405_v53  ;;  %v202_v52 = vld [vmem:[#allocation5 + $0x148] sm:$0xff] }
  0xe1   :  { %v285_v60 = vld [vmem:[#allocation5 + $0x3e0] sm:$0xff]  ;;  %2546 = vmatpush1.bf16.msra.mxu1 %v6071_v0  ;;  %v206_v53 = vld [vmem:[#allocation5 + $0x168] sm:$0xff] }
  0xe2   :  { %v409_v62 = vld [vmem:[#allocation5 + $0x7c0] sm:$0xff]  ;;  %v6080_v2 = vcombine.high %v281_v59, %v285_v60  ;;  %2586 = vmatprep.subr.bf16.mxu0 %v6200_v58  ;;  %v6079_v8 = vcombine.low %v281_v59, %v285_v60  ;;  %v6002_v56 = vcombine.high %v202_v52, %v206_v53  ;;  %v6001_v0 = vcombine.low %v202_v52, %v206_v53 }
  0xe3   :  { %v413_v63 = vld [vmem:[#allocation5 + $0x7e0] sm:$0xff]  ;;  %2587 = vmatpush1.bf16.msra.mxu0 %v6199_v1 }
  0xe4   :  { %v6208_v3 = vcombine.high %v409_v62, %v413_v63  ;;  %v417_v6 = vld [vmem:[#allocation5 + $0x800] sm:$0xff]  ;;  %2547 = vmatprep.subr.bf16.mxu1 %v6080_v2  ;;  %v6207_v10 = vcombine.low %v409_v62, %v413_v63  ;;  %v210_v62 = vld [vmem:[#allocation5 + $0x188] sm:$0xff] }
  0xe5   :  { %v421_v7 = vld [vmem:[#allocation5 + $0x820] sm:$0xff]  ;;  %2548 = vmatpush1.bf16.msra.mxu1 %v6079_v8  ;;  %v214_v63 = vld [vmem:[#allocation5 + $0x1a8] sm:$0xff] }
  0xe6   :  { %2588 = vmatprep.subr.bf16.mxu0 %v6208_v3  ;;  %v6216_v13 = vcombine.high %v417_v6, %v421_v7  ;;  %v425_v17 = vld [vmem:[#allocation5 + $0x840] sm:$0xff]  ;;  %v6215_v22 = vcombine.low %v417_v6, %v421_v7  ;;  %2681 = vmatprep.subr.bf16.mxu1 %v5962_v11  ;;  %v6010_v2 = vcombine.high %v210_v62, %v214_v63  ;;  %v218_v6 = vld [vmem:[#allocation5 + $0x1c8] sm:$0xff] }
  0xe7   :  { %v429_v18 = vld [vmem:[#allocation5 + $0x860] sm:$0xff]  ;;  %2589 = vmatpush1.bf16.msra.mxu0 %v6207_v10  ;;  %v222_v7 = vld [vmem:[#allocation5 + $0x1e8] sm:$0xff]  ;;  %v6009_v8 = vcombine.low %v210_v62, %v214_v63 }
  0xe8   :  { %v433_v24 = vld [vmem:[#allocation5 + $0x880] sm:$0xff]  ;;  %2599 = vmatprep.subr.bf16.mxu0 %v6216_v13  ;;  %v6224_v26 = vcombine.high %v425_v17, %v429_v18  ;;  %2550 = vmatmul.mubr.bf16.vlgmr.msra.gmra.mrb[0].mxu1 %v7726_v16  ;;  %v6223_v31 = vcombine.low %v425_v17, %v429_v18  ;;  %v6018_v10 = vcombine.high %v218_v6, %v222_v7 }
  0xe9   :  { %v437_v25 = vld [vmem:[#allocation5 + $0x8a0] sm:$0xff]  ;;  %2682 = vmatpush1.bf16.msra.mxu1 %v5961_v20  ;;  %2713 = vmatprep.mubr.bf16.mxu1 %v7720_v57  ;;  %v6017_v17 = vcombine.low %v218_v6, %v222_v7 }
  0xea   :  { %2591 = vmatmul.mubr.bf16.vlgmr.msra.gmra.mrb[0].mxu0 %v7728_v21  ;;  %2683 = vmatprep.subr.bf16.mxu1 %v5970_v23  ;;  %v441_v33 = vld [vmem:[#allocation5 + $0x8c0] sm:$0xff]  ;;  %v6232_v35 = vcombine.high %v433_v24, %v437_v25  ;;  %v6231_v39 = vcombine.low %v433_v24, %v437_v25  ;;  %v234_v24 = vld [vmem:[#allocation5 + $0x248] sm:$0xff] }
  0xeb   :  { %2600 = vmatpush1.bf16.msra.mxu0 %v6215_v22  ;;  %v445_v34 = vld [vmem:[#allocation5 + $0x8e0] sm:$0xff]  ;;  %2631 = vmatprep.mubr.bf16.mxu0 %v7730_v29  ;;  %v238_v25 = vld [vmem:[#allocation5 + $0x268] sm:$0xff] }
  0xec   :  { %2601 = vmatprep.subr.bf16.mxu0 %v6224_v26  ;;  %v449_v41 = vld [vmem:[#allocation5 + $0x900] sm:$0xff]  ;;  %v6240_v43 = vcombine.high %v441_v33, %v445_v34  ;;  %v6239_v47 = vcombine.low %v441_v33, %v445_v34  ;;  %v6025_v26 = vcombine.low %v226_v14, %v230_v15  ;;  %v6034_v28 = vcombine.high %v234_v24, %v238_v25  ;;  %v242_v33 = vld [vmem:[#allocation5 + $0x288] sm:$0xff] }
  0xed   :  { %2684 = vmatpush1.bf16.msra.mxu1 %v5969_v30  ;;  %v453_v42 = vld [vmem:[#allocation5 + $0x920] sm:$0xff]  ;;  %v246_v34 = vld [vmem:[#allocation5 + $0x2a8] sm:$0xff] }
  0xee   :  { %2685 = vmatprep.subr.bf16.mxu1 %v5978_v32  ;;  %v457_v49 = vld [vmem:[#allocation5 + $0x940] sm:$0xff]  ;;  %v6248_v51 = vcombine.high %v449_v41, %v453_v42  ;;  %v6247_v55 = vcombine.low %v449_v41, %v453_v42  ;;  %v6042_v37 = vcombine.high %v242_v33, %v246_v34  ;;  %v250_v41 = vld [vmem:[#allocation5 + $0x2c8] sm:$0xff] }
  0xef   :  { %2602 = vmatpush1.bf16.msra.mxu0 %v6223_v31  ;;  %v461_v50 = vld [vmem:[#allocation5 + $0x960] sm:$0xff]  ;;  %v254_v42 = vld [vmem:[#allocation5 + $0x2e8] sm:$0xff] }
  0xf0   :  { %2603 = vmatprep.subr.bf16.mxu0 %v6232_v35  ;;  %v465_v58 = vld [vmem:[#allocation5 + $0x980] sm:$0xff]  ;;  %v6256_v60 = vcombine.high %v457_v49, %v461_v50  ;;  %v6255_v1 = vcombine.low %v457_v49, %v461_v50  ;;  %v6033_v35 = vcombine.low %v234_v24, %v238_v25  ;;  %v6050_v45 = vcombine.high %v250_v41, %v254_v42  ;;  %v258_v49 = vld [vmem:[#allocation5 + $0x308] sm:$0xff] }
  0xf1   :  { %2686 = vmatpush1.bf16.msra.mxu1 %v5977_v38  ;;  %v469_v59 = vld [vmem:[#allocation5 + $0x9a0] sm:$0xff]  ;;  %v262_v50 = vld [vmem:[#allocation5 + $0x328] sm:$0xff] }
  0xf2   :  { %2687 = vmatprep.subr.bf16.mxu1 %v5986_v40  ;;  %v473_v3 = vld [vmem:[#allocation5 + $0x9c0] sm:$0xff]  ;;  %v6264_v5 = vcombine.high %v465_v58, %v469_v59  ;;  %v6263_v9 = vcombine.low %v465_v58, %v469_v59  ;;  %v6058_v53 = vcombine.high %v258_v49, %v262_v50  ;;  %v266_v58 = vld [vmem:[#allocation5 + $0x348] sm:$0xff] }
  0xf3   :  { %2604 = vmatpush1.bf16.msra.mxu0 %v6231_v39  ;;  %v477_v4 = vld [vmem:[#allocation5 + $0x9e0] sm:$0xff]  ;;  %v270_v59 = vld [vmem:[#allocation5 + $0x368] sm:$0xff] }
  0xf4   :  { %2605 = vmatprep.subr.bf16.mxu0 %v6240_v43  ;;  %v481_v11 = vld [vmem:[#allocation5 + $0xa00] sm:$0xff]  ;;  %v6272_v13 = vcombine.high %v473_v3, %v477_v4  ;;  %v6271_v18 = vcombine.low %v473_v3, %v477_v4  ;;  %v6041_v43 = vcombine.low %v242_v33, %v246_v34  ;;  %v6066_v63 = vcombine.high %v266_v58, %v270_v59  ;;  %v274_v3 = vld [vmem:[#allocation5 + $0x388] sm:$0xff] }
  0xf5   :  { %2688 = vmatpush1.bf16.msra.mxu1 %v5985_v46  ;;  %v485_v12 = vld [vmem:[#allocation5 + $0xa20] sm:$0xff]  ;;  %v278_v4 = vld [vmem:[#allocation5 + $0x3a8] sm:$0xff] }
  0xf6   :  { %2689 = vmatprep.subr.bf16.mxu1 %v5994_v48  ;;  %v489_v20 = vld [vmem:[#allocation5 + $0xa40] sm:$0xff]  ;;  %v6280_v23 = vcombine.high %v481_v11, %v485_v12  ;;  %v6279_v27 = vcombine.low %v481_v11, %v485_v12  ;;  %v6074_v7 = vcombine.high %v274_v3, %v278_v4  ;;  %v282_v11 = vld [vmem:[#allocation5 + $0x3c8] sm:$0xff] }
  0xf7   :  { %2606 = vmatpush1.bf16.msra.mxu0 %v6239_v47  ;;  %v493_v22 = vld [vmem:[#allocation5 + $0xa60] sm:$0xff]  ;;  %v286_v12 = vld [vmem:[#allocation5 + $0x3e8] sm:$0xff] }
  0xf8   :  { %2607 = vmatprep.subr.bf16.mxu0 %v6248_v51  ;;  %v497_v30 = vld [vmem:[#allocation5 + $0xa80] sm:$0xff]  ;;  %v6288_v32 = vcombine.high %v489_v20, %v493_v22  ;;  %v6287_v36 = vcombine.low %v489_v20, %v493_v22  ;;  %v6049_v51 = vcombine.low %v250_v41, %v254_v42  ;;  %v6082_v15 = vcombine.high %v282_v11, %v286_v12 }
  0xf9   :  { %2690 = vmatpush1.bf16.msra.mxu1 %v5993_v54  ;;  %v501_v31 = vld [vmem:[#allocation5 + $0xaa0] sm:$0xff]  ;;  %v6081_v24 = vcombine.low %v282_v11, %v286_v12  ;;  %v7559_v42 = vmov 0  }
  0xfa   :  { %2691 = vmatprep.subr.bf16.mxu1 %v6002_v56  ;;  %v505_v38 = vld [vmem:[#allocation5 + $0xac0] sm:$0xff]  ;;  %v6296_v40 = vcombine.high %v497_v30, %v501_v31  ;;  %v6295_v44 = vcombine.low %v497_v30, %v501_v31  ;;  %v546_v31 = vld [vmem:[#allocation5 + $0xc08] sm:$0xff] }
  0xfb   :  { %2608 = vmatpush1.bf16.msra.mxu0 %v6247_v55  ;;  %v509_v39 = vld [vmem:[#allocation5 + $0xae0] sm:$0xff] }
  0xfc   :  { %2609 = vmatprep.subr.bf16.mxu0 %v6256_v60  ;;  %v513_v46 = vld [vmem:[#allocation5 + $0xb00] sm:$0xff]  ;;  %v6304_v48 = vcombine.high %v505_v38, %v509_v39  ;;  %v6303_v52 = vcombine.low %v505_v38, %v509_v39  ;;  %v6057_v60 = vcombine.low %v258_v49, %v262_v50  ;;  %v310_v38 = vld [vmem:[#allocation5 + $0x4a8] sm:$0xff]  ;;  %v163_v50 = vld [vmem:[#allocation5 + $0x10] sm:$0xff] }
  0xfd   :  { %2692 = vmatpush1.bf16.msra.mxu1 %v6001_v0  ;;  %v517_v47 = vld [vmem:[#allocation5 + $0xb20] sm:$0xff]  ;;  %v326_v49 = vld [vmem:[#allocation5 + $0x528] sm:$0xff] }
  0xfe   :  { %2693 = vmatprep.subr.bf16.mxu1 %v6010_v2  ;;  %v521_v54 = vld [vmem:[#allocation5 + $0xb40] sm:$0xff]  ;;  %v6312_v56 = vcombine.high %v513_v46, %v517_v47  ;;  %v6311_v62 = vcombine.low %v513_v46, %v517_v47 }
  0xff   :  { %2610 = vmatpush1.bf16.msra.mxu0 %v6255_v1  ;;  %v525_v55 = vld [vmem:[#allocation5 + $0xb60] sm:$0xff] }
 0x100   :  { %2611 = vmatprep.subr.bf16.mxu0 %v6264_v5  ;;  %v529_v0 = vld [vmem:[#allocation5 + $0xb80] sm:$0xff]  ;;  %v6320_v2 = vcombine.high %v521_v54, %v525_v55  ;;  %v6065_v5 = vcombine.low %v266_v58, %v270_v59  ;;  %v6319_v6 = vcombine.low %v521_v54, %v525_v55  ;;  %v330_v58 = vld [vmem:[#allocation5 + $0x548] sm:$0xff] }
 0x101   :  { %2694 = vmatpush1.bf16.msra.mxu1 %v6009_v8  ;;  %v533_v1 = vld [vmem:[#allocation5 + $0xba0] sm:$0xff]  ;;  %v334_v59 = vld [vmem:[#allocation5 + $0x568] sm:$0xff] }
 0x102   :  { %2695 = vmatprep.subr.bf16.mxu1 %v6018_v10  ;;  %v537_v8 = vld [vmem:[#allocation5 + $0xbc0] sm:$0xff]  ;;  %v6328_v10 = vcombine.high %v529_v0, %v533_v1  ;;  %v6327_v14 = vcombine.low %v529_v0, %v533_v1  ;;  %v175_v0 = vld [vmem:[#allocation5 + $0x70] sm:$0xff]  ;;  %v338_v1 = vld [vmem:[#allocation5 + $0x588] sm:$0xff] }
 0x103   :  { %2612 = vmatpush1.bf16.msra.mxu0 %v6263_v9  ;;  %v541_v9 = vld [vmem:[#allocation5 + $0xbe0] sm:$0xff] }
 0x104   :  { %2613 = vmatprep.subr.bf16.mxu0 %v6272_v13  ;;  %v6073_v13 = vcombine.low %v274_v3, %v278_v4  ;;  %v545_v20 = vld [vmem:[#allocation5 + $0xc00] sm:$0xff]  ;;  %v6335_v25 = vcombine.low %v537_v8, %v541_v9  ;;  %v6129_v3 = vcombine.low %v330_v58, %v334_v59 }
 0x105   :  { %2696 = vmatpush1.bf16.msra.mxu1 %v6017_v17  ;;  %v290_v17 = vld [vmem:[#allocation5 + $0x408] sm:$0xff]  ;;  %v549_v22 = vld [vmem:[#allocation5 + $0xc20] sm:$0xff] }
 0x106   :  { %2697 = vmatprep.subr.bf16.mxu1 %v6026_v19  ;;  %v6336_v19 = vcombine.high %v537_v8, %v541_v9  ;;  %v6344_v30 = vcombine.high %v545_v20, %v549_v22  ;;  %v346_v9 = vld [vmem:[#allocation5 + $0x5c8] sm:$0xff] }
 0x107   :  { %2614 = vmatpush1.bf16.msra.mxu0 %v6271_v18  ;;  %v294_v18 = vld [vmem:[#allocation5 + $0x428] sm:$0xff] }
 0x108   :  { %2615 = vmatprep.subr.bf16.mxu0 %v6280_v23  ;;  %v151_v23 = vld [vmem:[#allocation2 + $0x20] sm:$0xff]  ;;  %v6089_v34 = vcombine.low %v290_v17, %v294_v18 }
 0x109   :  { %2698 = vmatpush1.bf16.msra.mxu1 %v6025_v26  ;;  %v6090_v26 = vcombine.high %v290_v17, %v294_v18  ;;  %v7736_v33 = vpack.c.bf16 %v151_v23, %v151_v23  ;;  %v354_v18 = vld [vmem:[#allocation5 + $0x608] sm:$0xff] }
 0x10a   :  { %2699 = vmatprep.subr.bf16.mxu1 %v6034_v28  ;;  %v302_v28 = vld [vmem:[#allocation5 + $0x468] sm:$0xff] }
 0x10b   :  { %2616 = vmatpush1.bf16.msra.mxu0 %v6279_v27  ;;  %v298_v27 = vld [vmem:[#allocation5 + $0x448] sm:$0xff] }
 0x10c   :  { %2617 = vmatprep.subr.bf16.mxu0 %v6288_v32  ;;  %v550_v32 = vld [vmem:[#allocation5 + $0xc28] sm:$0xff] }
 0x10d   :  { %2700 = vmatpush1.bf16.msra.mxu1 %v6033_v35  ;;  %v6098_v35 = vcombine.high %v298_v27, %v302_v28  ;;  %v6346_v39 = vcombine.high %v546_v31, %v550_v32  ;;  %v6345_v54 = vcombine.low %v546_v31, %v550_v32 }
 0x10e   :  { %2701 = vmatprep.subr.bf16.mxu1 %v6042_v37  ;;  %v306_v37 = vld [vmem:[#allocation5 + $0x488] sm:$0xff] }
 0x10f   :  { %2618 = vmatpush1.bf16.msra.mxu0 %v6287_v36  ;;  %v6343_v36 = vcombine.low %v545_v20, %v549_v22  ;;  %v6106_v41 = vcombine.high %v306_v37, %v310_v38  ;;  %v6105_v46 = vcombine.low %v306_v37, %v310_v38  ;;  %v370_v37 = vld [vmem:[#allocation5 + $0x688] sm:$0xff] }
 0x110   :  { %2619 = vmatprep.subr.bf16.mxu0 %v6296_v40  ;;  %v6097_v40 = vcombine.low %v298_v27, %v302_v28  ;;  %v362_v27 = vld [vmem:[#allocation5 + $0x648] sm:$0xff] }
 0x111   :  { %2702 = vmatpush1.bf16.msra.mxu1 %v6041_v43  ;;  %v314_v43 = vld [vmem:[#allocation5 + $0x4c8] sm:$0xff] }
 0x112   :  { %2703 = vmatprep.subr.bf16.mxu1 %v6050_v45  ;;  %v153_v45 = vld [vmem:[#allocation2 + $0x30] sm:$0xff]  ;;  %v366_v28 = vld [vmem:[#allocation5 + $0x668] sm:$0xff] }
 0x113   :  { %2620 = vmatpush1.bf16.msra.mxu0 %v6295_v44  ;;  %v318_v44 = vld [vmem:[#allocation5 + $0x4e8] sm:$0xff]  ;;  %v6162_v32 = vcombine.high %v362_v27, %v366_v28 }
 0x114   :  { %2621 = vmatprep.subr.bf16.mxu0 %v6304_v48  ;;  %v6114_v47 = vcombine.high %v314_v43, %v318_v44  ;;  %v322_v48 = vld [vmem:[#allocation5 + $0x508] sm:$0xff] }
 0x115   :  { %2704 = vmatpush1.bf16.msra.mxu1 %v6049_v51  ;;  %v167_v51 = vld [vmem:[#allocation5 + $0x30] sm:$0xff]  ;;  %v6122_v55 = vcombine.high %v322_v48, %v326_v49  ;;  %v374_v38 = vld [vmem:[#allocation5 + $0x6a8] sm:$0xff] }
 0x116   :  { %2705 = vmatprep.subr.bf16.mxu1 %v6058_v53  ;;  %v6113_v53 = vcombine.low %v314_v43, %v318_v44  ;;  %v5963_v4 = vcombine.low %v163_v50, %v167_v51  ;;  %v211_v43 = vld [vmem:[#allocation5 + $0x190] sm:$0xff] }
 0x117   :  { %2622 = vmatpush1.bf16.msra.mxu0 %v6303_v52  ;;  %v7742_v52 = vpack.c.bf16 %v153_v45, %v153_v45  ;;  %v215_v44 = vld [vmem:[#allocation5 + $0x1b0] sm:$0xff] }
 0x118   :  { %2623 = vmatprep.subr.bf16.mxu0 %v6312_v56  ;;  %v5964_v56 = vcombine.high %v163_v50, %v167_v51  ;;  %v219_v51 = vld [vmem:[#allocation5 + $0x1d0] sm:$0xff] }
 0x119   :  { %2706 = vmatpush1.bf16.msra.mxu1 %v6057_v60  ;;  %v6121_v60 = vcombine.low %v322_v48, %v326_v49  ;;  %v6169_v48 = vcombine.low %v370_v37, %v374_v38 }
 0x11a   :  { %2707 = vmatprep.subr.bf16.mxu1 %v6066_v63  ;;  %v171_v63 = vld [vmem:[#allocation5 + $0x50] sm:$0xff] }
 0x11b   :  { %2624 = vmatpush1.bf16.msra.mxu0 %v6311_v62  ;;  %v6130_v62 = vcombine.high %v330_v58, %v334_v59  ;;  %v5972_v8 = vcombine.high %v171_v63, %v175_v0  ;;  %v5971_v12 = vcombine.low %v171_v63, %v175_v0  ;;  %v6011_v59 = vcombine.low %v211_v43, %v215_v44  ;;  %v231_v63 = vld [vmem:[#allocation5 + $0x230] sm:$0xff] }
 0x11c   :  { %2625 = vmatprep.subr.bf16.mxu0 %v6320_v2  ;;  %v342_v2 = vld [vmem:[#allocation5 + $0x5a8] sm:$0xff] }
 0x11d   :  { %2708 = vmatpush1.bf16.msra.mxu1 %v6065_v5  ;;  %v6138_v5 = vcombine.high %v338_v1, %v342_v2  ;;  %v6137_v11 = vcombine.low %v338_v1, %v342_v2  ;;  %v394_v1 = vld [vmem:[#allocation5 + $0x748] sm:$0xff] }
 0x11e   :  { %2709 = vmatprep.subr.bf16.mxu1 %v6074_v7  ;;  %v183_v7 = vld [vmem:[#allocation5 + $0xb0] sm:$0xff]  ;;  %v398_v2 = vld [vmem:[#allocation5 + $0x768] sm:$0xff] }
 0x11f   :  { %2626 = vmatpush1.bf16.msra.mxu0 %v6319_v6  ;;  %v179_v6 = vld [vmem:[#allocation5 + $0x90] sm:$0xff] }
 0x120   :  { %2627 = vmatprep.subr.bf16.mxu0 %v6328_v10  ;;  %v350_v10 = vld [vmem:[#allocation5 + $0x5e8] sm:$0xff]  ;;  %v5980_v17 = vcombine.high %v179_v6, %v183_v7  ;;  %v5979_v22 = vcombine.low %v179_v6, %v183_v7  ;;  %v235_v6 = vld [vmem:[#allocation5 + $0x250] sm:$0xff] }
 0x121   :  { %2710 = vmatpush1.bf16.msra.mxu1 %v6073_v13  ;;  %v6146_v13 = vcombine.high %v346_v9, %v350_v10  ;;  %v6145_v20 = vcombine.low %v346_v9, %v350_v10  ;;  %v239_v7 = vld [vmem:[#allocation5 + $0x270] sm:$0xff]  ;;  %v402_v9 = vld [vmem:[#allocation5 + $0x788] sm:$0xff] }
 0x122   :  { %2711 = vmatprep.subr.bf16.mxu1 %v6082_v15  ;;  %v191_v15 = vld [vmem:[#allocation5 + $0xf0] sm:$0xff]  ;;  %v406_v10 = vld [vmem:[#allocation5 + $0x7a8] sm:$0xff] }
 0x123   :  { %2628 = vmatpush1.bf16.msra.mxu0 %v6327_v14  ;;  %v187_v14 = vld [vmem:[#allocation5 + $0xd0] sm:$0xff] }
 0x124   :  { %2629 = vmatprep.subr.bf16.mxu0 %v6336_v19  ;;  %v358_v19 = vld [vmem:[#allocation5 + $0x628] sm:$0xff]  ;;  %v5987_v31 = vcombine.low %v187_v14, %v191_v15 }
 0x125   :  { %2712 = vmatpush1.bf16.msra.mxu1 %v6081_v24  ;;  %v6154_v23 = vcombine.high %v354_v18, %v358_v19  ;;  %v195_v24 = vld [vmem:[#allocation5 + $0x110] sm:$0xff] }
 0x126   :  { %2722 = vmatprep.subr.bf16.mxu1 %v6090_v26  ;;  %v5988_v26 = vcombine.high %v187_v14, %v191_v15  ;;  %v243_v14 = vld [vmem:[#allocation5 + $0x290] sm:$0xff] }
 0x127   :  { %2630 = vmatpush1.bf16.msra.mxu0 %v6335_v25  ;;  %v199_v25 = vld [vmem:[#allocation5 + $0x130] sm:$0xff] }
 0x128   :  { %2640 = vmatprep.subr.bf16.mxu0 %v6344_v30  ;;  %2714 = vmatmul.mubr.bf16.vlgmr.msra.gmra.mrb[4].mxu1 %v7726_v16  ;;  %v6153_v30 = vcombine.low %v354_v18, %v358_v19  ;;  %v247_v15 = vld [vmem:[#allocation5 + $0x2b0] sm:$0xff]  ;;  %v410_v18 = vld [vmem:[#allocation5 + $0x7c8] sm:$0xff] }
 0x129   :  { %2723 = vmatpush1.bf16.msra.mxu1 %v6089_v34  ;;  %2754 = vmatprep.mubr.bf16.mxu1 %v7722_v61  ;;  %v203_v34 = vld [vmem:[#allocation5 + $0x150] sm:$0xff]  ;;  %v414_v19 = vld [vmem:[#allocation5 + $0x7e8] sm:$0xff] }
 0x12a   :  { %2632 = vmatmul.mubr.bf16.vlgmr.msra.gmra.mrb[0].mxu0 %v7736_v33  ;;  %2724 = vmatprep.subr.bf16.mxu1 %v6098_v35  ;;  %v207_v35 = vld [vmem:[#allocation5 + $0x170] sm:$0xff] }
 0x12b   :  { %2641 = vmatpush1.bf16.msra.mxu0 %v6343_v36  ;;  %2672 = vmatprep.mubr.bf16.mxu0 %v7559_v42  ;;  %v5996_v36 = vcombine.high %v195_v24, %v199_v25  ;;  %v6004_v45 = vcombine.high %v203_v34, %v207_v35  ;;  %v6003_v49 = vcombine.low %v203_v34, %v207_v35  ;;  %v259_v34 = vld [vmem:[#allocation5 + $0x310] sm:$0xff] }
 0x12c   :  { %2804 = vmatprep.subr.bf16.mxu0 %v6346_v39  ;;  %v6161_v39 = vcombine.low %v362_v27, %v366_v28  ;;  %v418_v27 = vld [vmem:[#allocation5 + $0x808] sm:$0xff]  ;;  %v263_v35 = vld [vmem:[#allocation5 + $0x330] sm:$0xff] }
 0x12d   :  { %2725 = vmatpush1.bf16.msra.mxu1 %v6097_v40  ;;  %v5995_v40 = vcombine.low %v195_v24, %v199_v25  ;;  %v251_v24 = vld [vmem:[#allocation5 + $0x2d0] sm:$0xff]  ;;  %v422_v28 = vld [vmem:[#allocation5 + $0x828] sm:$0xff] }
 0x12e   :  { %2726 = vmatprep.subr.bf16.mxu1 %v6106_v41  ;;  %v6170_v41 = vcombine.high %v370_v37, %v374_v38  ;;  %v255_v25 = vld [vmem:[#allocation5 + $0x2f0] sm:$0xff]  ;;  %v426_v37 = vld [vmem:[#allocation5 + $0x848] sm:$0xff] }
 0x12f   :  { %v430_v38 = vld [vmem:[#allocation5 + $0x868] sm:$0xff] }
 0x131   :  { %2727 = vmatpush1.bf16.msra.mxu1 %v6105_v46  ;;  %v378_v46 = vld [vmem:[#allocation5 + $0x6c8] sm:$0xff] }
 0x132   :  { %2728 = vmatprep.subr.bf16.mxu1 %v6114_v47  ;;  %v382_v47 = vld [vmem:[#allocation5 + $0x6e8] sm:$0xff] }
 0x133   :  { %v6178_v50 = vcombine.high %v378_v46, %v382_v47  ;;  %v6177_v58 = vcombine.low %v378_v46, %v382_v47  ;;  %v434_v46 = vld [vmem:[#allocation5 + $0x888] sm:$0xff] }
 0x134   :  { %v438_v47 = vld [vmem:[#allocation5 + $0x8a8] sm:$0xff] }
 0x135   :  { %2729 = vmatpush1.bf16.msra.mxu1 %v6113_v53  ;;  %v223_v53 = vld [vmem:[#allocation5 + $0x1f0] sm:$0xff] }
 0x136   :  { %6351 = vmatmul.mubr.msk.bf16.vlgmr.msra.gmra.mrb[0].mxu0 %vm2513_vm0, %v7742_v52  ;;  %2730 = vmatprep.subr.bf16.mxu1 %v6122_v55  ;;  %v386_v55 = vld [vmem:[#allocation5 + $0x708] sm:$0xff]  ;;  %v6020_v0 = vcombine.high %v219_v51, %v223_v53 }
 0x137   :  { %2805 = vmatpush1.bf16.msra.mxu0 %v6345_v54  ;;  %2836 = vmatprep.mubr.bf16.mxu0 %v7559_v42  ;;  %v6012_v54 = vcombine.high %v211_v43, %v215_v44  ;;  %v267_v43 = vld [vmem:[#allocation5 + $0x350] sm:$0xff] }
 0x138   :  { %2845 = vmatprep.subr.bf16.mxu0 %v5964_v56  ;;  %v390_v56 = vld [vmem:[#allocation5 + $0x728] sm:$0xff]  ;;  %v271_v44 = vld [vmem:[#allocation5 + $0x370] sm:$0xff] }
 0x139   :  { %2731 = vmatpush1.bf16.msra.mxu1 %v6121_v60  ;;  %v6186_v60 = vcombine.high %v386_v55, %v390_v56 }
 0x13a   :  { %2732 = vmatprep.subr.bf16.mxu1 %v6130_v62  ;;  %v227_v62 = vld [vmem:[#allocation5 + $0x210] sm:$0xff] }
 0x13d   :  { %2733 = vmatpush1.bf16.msra.mxu1 %v6129_v3  ;;  %v6185_v3 = vcombine.low %v386_v55, %v390_v56  ;;  %v442_v55 = vld [vmem:[#allocation5 + $0x8c8] sm:$0xff] }
 0x13e   :  { %6352 = vmatmul.mubr.msk.bf16.vlgmr.msra.gmra.mrb[4].mxu0 %vm2513_vm0, %v7742_v52  ;;  %2734 = vmatprep.subr.bf16.mxu1 %v6138_v5  ;;  %v6194_v5 = vcombine.high %v394_v1, %v398_v2  ;;  %v446_v56 = vld [vmem:[#allocation5 + $0x8e8] sm:$0xff] }
 0x13f   :  { %2846 = vmatpush1.bf16.msra.mxu0 %v5963_v4  ;;  %2877 = vmatprep.mubr.bf16.mxu0 %v7720_v57  ;;  %v6019_v4 = vcombine.low %v219_v51, %v223_v53  ;;  %v275_v51 = vld [vmem:[#allocation5 + $0x390] sm:$0xff] }
 0x140   :  { %2847 = vmatprep.subr.bf16.mxu0 %v5972_v8  ;;  %v6028_v8 = vcombine.high %v227_v62, %v231_v63  ;;  %v279_v53 = vld [vmem:[#allocation5 + $0x3b0] sm:$0xff] }
 0x141   :  { %2735 = vmatpush1.bf16.msra.mxu1 %v6137_v11  ;;  %v6193_v11 = vcombine.low %v394_v1, %v398_v2  ;;  %v450_v1 = vld [vmem:[#allocation5 + $0x908] sm:$0xff] }
 0x142   :  { %2736 = vmatprep.subr.bf16.mxu1 %v6146_v13  ;;  %v6202_v13 = vcombine.high %v402_v9, %v406_v10  ;;  %v454_v2 = vld [vmem:[#allocation5 + $0x928] sm:$0xff] }
 0x143   :  { %2848 = vmatpush1.bf16.msra.mxu0 %v5971_v12  ;;  %v6027_v12 = vcombine.low %v227_v62, %v231_v63  ;;  %v283_v62 = vld [vmem:[#allocation5 + $0x3d0] sm:$0xff] }
 0x144   :  { %2849 = vmatprep.subr.bf16.mxu0 %v5980_v17  ;;  %v6036_v17 = vcombine.high %v235_v6, %v239_v7  ;;  %v287_v63 = vld [vmem:[#allocation5 + $0x3f0] sm:$0xff] }
 0x145   :  { %2737 = vmatpush1.bf16.msra.mxu1 %v6145_v20  ;;  %v6201_v20 = vcombine.low %v402_v9, %v406_v10  ;;  %v458_v9 = vld [vmem:[#allocation5 + $0x948] sm:$0xff] }
 0x146   :  { %2738 = vmatprep.subr.bf16.mxu1 %v6154_v23  ;;  %v6210_v23 = vcombine.high %v410_v18, %v414_v19  ;;  %v462_v10 = vld [vmem:[#allocation5 + $0x968] sm:$0xff] }
 0x147   :  { %2850 = vmatpush1.bf16.msra.mxu0 %v5979_v22  ;;  %v6035_v22 = vcombine.low %v235_v6, %v239_v7  ;;  %v291_v6 = vld [vmem:[#allocation5 + $0x410] sm:$0xff] }
 0x148   :  { %2851 = vmatprep.subr.bf16.mxu0 %v5988_v26  ;;  %v6044_v26 = vcombine.high %v243_v14, %v247_v15  ;;  %v295_v7 = vld [vmem:[#allocation5 + $0x430] sm:$0xff] }
 0x149   :  { %2739 = vmatpush1.bf16.msra.mxu1 %v6153_v30  ;;  %v6209_v30 = vcombine.low %v410_v18, %v414_v19  ;;  %v466_v18 = vld [vmem:[#allocation5 + $0x988] sm:$0xff] }
 0x14a   :  { %2740 = vmatprep.subr.bf16.mxu1 %v6162_v32  ;;  %v6218_v32 = vcombine.high %v418_v27, %v422_v28  ;;  %v470_v19 = vld [vmem:[#allocation5 + $0x9a8] sm:$0xff] }
 0x14b   :  { %2852 = vmatpush1.bf16.msra.mxu0 %v5987_v31  ;;  %v6043_v31 = vcombine.low %v243_v14, %v247_v15  ;;  %v299_v14 = vld [vmem:[#allocation5 + $0x450] sm:$0xff] }
 0x14c   :  { %2853 = vmatprep.subr.bf16.mxu0 %v5996_v36  ;;  %v6052_v36 = vcombine.high %v251_v24, %v255_v25  ;;  %v303_v15 = vld [vmem:[#allocation5 + $0x470] sm:$0xff] }
 0x14d   :  { %2741 = vmatpush1.bf16.msra.mxu1 %v6161_v39  ;;  %v6217_v39 = vcombine.low %v418_v27, %v422_v28  ;;  %v474_v27 = vld [vmem:[#allocation5 + $0x9c8] sm:$0xff] }
 0x14e   :  { %2742 = vmatprep.subr.bf16.mxu1 %v6170_v41  ;;  %v6226_v41 = vcombine.high %v426_v37, %v430_v38  ;;  %v478_v28 = vld [vmem:[#allocation5 + $0x9e8] sm:$0xff] }
 0x14f   :  { %2854 = vmatpush1.bf16.msra.mxu0 %v5995_v40  ;;  %v6051_v40 = vcombine.low %v251_v24, %v255_v25  ;;  %v307_v24 = vld [vmem:[#allocation5 + $0x490] sm:$0xff] }
 0x150   :  { %2855 = vmatprep.subr.bf16.mxu0 %v6004_v45  ;;  %v6060_v45 = vcombine.high %v259_v34, %v263_v35  ;;  %v311_v25 = vld [vmem:[#allocation5 + $0x4b0] sm:$0xff] }
 0x151   :  { %2743 = vmatpush1.bf16.msra.mxu1 %v6169_v48  ;;  %v6225_v48 = vcombine.low %v426_v37, %v430_v38  ;;  %v319_v37 = vld [vmem:[#allocation5 + $0x4f0] sm:$0xff]  ;;  %v6108_v38 = vcombine.high %v307_v24, %v311_v25 }
 0x152   :  { %2744 = vmatprep.subr.bf16.mxu1 %v6178_v50  ;;  %v6234_v50 = vcombine.high %v434_v46, %v438_v47 }
 0x153   :  { %2856 = vmatpush1.bf16.msra.mxu0 %v6003_v49  ;;  %v6059_v49 = vcombine.low %v259_v34, %v263_v35  ;;  %v6099_v34 = vcombine.low %v299_v14, %v303_v15  ;;  %v6274_v35 = vcombine.high %v474_v27, %v478_v28 }
 0x154   :  { %2857 = vmatprep.subr.bf16.mxu0 %v6012_v54  ;;  %v6068_v54 = vcombine.high %v267_v43, %v271_v44 }
 0x155   :  { %2745 = vmatpush1.bf16.msra.mxu1 %v6177_v58  ;;  %v6233_v58 = vcombine.low %v434_v46, %v438_v47  ;;  %v327_v47 = vld [vmem:[#allocation5 + $0x530] sm:$0xff] }
 0x156   :  { %2746 = vmatprep.subr.bf16.mxu1 %v6186_v60  ;;  %v6242_v60 = vcombine.high %v442_v55, %v446_v56 }
 0x157   :  { %2858 = vmatpush1.bf16.msra.mxu0 %v6011_v59  ;;  %v6067_v59 = vcombine.low %v267_v43, %v271_v44  ;;  %v323_v44 = vld [vmem:[#allocation5 + $0x510] sm:$0xff] }
 0x158   :  { %2859 = vmatprep.subr.bf16.mxu0 %v6020_v0  ;;  %v6076_v0 = vcombine.high %v275_v51, %v279_v53 }
 0x159   :  { %2747 = vmatpush1.bf16.msra.mxu1 %v6185_v3  ;;  %v6241_v3 = vcombine.low %v442_v55, %v446_v56  ;;  %v498_v55 = vld [vmem:[#allocation5 + $0xa88] sm:$0xff] }
 0x15a   :  { %2748 = vmatprep.subr.bf16.mxu1 %v6194_v5  ;;  %v6250_v5 = vcombine.high %v450_v1, %v454_v2  ;;  %v502_v56 = vld [vmem:[#allocation5 + $0xaa8] sm:$0xff] }
 0x15b   :  { %2860 = vmatpush1.bf16.msra.mxu0 %v6019_v4  ;;  %v6075_v4 = vcombine.low %v275_v51, %v279_v53  ;;  %v331_v51 = vld [vmem:[#allocation5 + $0x550] sm:$0xff] }
 0x15c   :  { %2861 = vmatprep.subr.bf16.mxu0 %v6028_v8  ;;  %v6084_v8 = vcombine.high %v283_v62, %v287_v63  ;;  %v335_v53 = vld [vmem:[#allocation5 + $0x570] sm:$0xff] }
 0x15d   :  { %2749 = vmatpush1.bf16.msra.mxu1 %v6193_v11  ;;  %v6249_v11 = vcombine.low %v450_v1, %v454_v2  ;;  %v506_v1 = vld [vmem:[#allocation5 + $0xac8] sm:$0xff] }
 0x15e   :  { %2750 = vmatprep.subr.bf16.mxu1 %v6202_v13  ;;  %v6258_v13 = vcombine.high %v458_v9, %v462_v10  ;;  %v510_v2 = vld [vmem:[#allocation5 + $0xae8] sm:$0xff] }
 0x15f   :  { %2862 = vmatpush1.bf16.msra.mxu0 %v6027_v12  ;;  %v6083_v12 = vcombine.low %v283_v62, %v287_v63  ;;  %v339_v62 = vld [vmem:[#allocation5 + $0x590] sm:$0xff] }
 0x160   :  { %2863 = vmatprep.subr.bf16.mxu0 %v6036_v17  ;;  %v6092_v17 = vcombine.high %v291_v6, %v295_v7  ;;  %v343_v63 = vld [vmem:[#allocation5 + $0x5b0] sm:$0xff] }
 0x161   :  { %2751 = vmatpush1.bf16.msra.mxu1 %v6201_v20  ;;  %v6257_v20 = vcombine.low %v458_v9, %v462_v10  ;;  %v347_v9 = vld [vmem:[#allocation5 + $0x5d0] sm:$0xff] }
 0x162   :  { %2752 = vmatprep.subr.bf16.mxu1 %v6210_v23  ;;  %v6266_v23 = vcombine.high %v466_v18, %v470_v19  ;;  %v351_v10 = vld [vmem:[#allocation5 + $0x5f0] sm:$0xff] }
 0x163   :  { %2864 = vmatpush1.bf16.msra.mxu0 %v6035_v22  ;;  %v6091_v22 = vcombine.low %v291_v6, %v295_v7  ;;  %v514_v6 = vld [vmem:[#allocation5 + $0xb08] sm:$0xff]  ;;  %v6140_v7 = vcombine.high %v339_v62, %v343_v63 }
 0x164   :  { %2865 = vmatprep.subr.bf16.mxu0 %v6044_v26  ;;  %v6100_v26 = vcombine.high %v299_v14, %v303_v15  ;;  %v6148_v14 = vcombine.high %v347_v9, %v351_v10  ;;  %v522_v15 = vld [vmem:[#allocation5 + $0xb48] sm:$0xff] }
 0x165   :  { %2753 = vmatpush1.bf16.msra.mxu1 %v6209_v30  ;;  %v6265_v30 = vcombine.low %v466_v18, %v470_v19  ;;  %v355_v18 = vld [vmem:[#allocation5 + $0x610] sm:$0xff] }
 0x166   :  { %2763 = vmatprep.subr.bf16.mxu1 %v6218_v32  ;;  %v486_v32 = vld [vmem:[#allocation5 + $0xa28] sm:$0xff]  ;;  %v359_v19 = vld [vmem:[#allocation5 + $0x630] sm:$0xff] }
 0x167   :  { %2866 = vmatpush1.bf16.msra.mxu0 %v6043_v31  ;;  %v482_v31 = vld [vmem:[#allocation5 + $0xa08] sm:$0xff] }
 0x168   :  { %2867 = vmatprep.subr.bf16.mxu0 %v6052_v36  ;;  %2755 = vmatmul.mubr.bf16.vlgmr.msra.gmra.mrb[4].mxu1 %v7728_v21  ;;  %v315_v36 = vld [vmem:[#allocation5 + $0x4d0] sm:$0xff]  ;;  %v6282_v43 = vcombine.high %v482_v31, %v486_v32 }
 0x169   :  { %2764 = vmatpush1.bf16.msra.mxu1 %v6217_v39  ;;  %2795 = vmatprep.mubr.bf16.mxu1 %v7730_v29  ;;  %v6273_v39 = vcombine.low %v474_v27, %v478_v28  ;;  %v6116_v46 = vcombine.high %v315_v36, %v319_v37  ;;  %v363_v27 = vld [vmem:[#allocation5 + $0x650] sm:$0xff] }
 0x16a   :  { %2765 = vmatprep.subr.bf16.mxu1 %v6226_v41  ;;  %v6107_v41 = vcombine.low %v307_v24, %v311_v25  ;;  %v6156_v24 = vcombine.high %v355_v18, %v359_v19  ;;  %v530_v25 = vld [vmem:[#allocation5 + $0xb88] sm:$0xff]  ;;  %v367_v28 = vld [vmem:[#allocation5 + $0x670] sm:$0xff] }
 0x16b   :  { %2868 = vmatpush1.bf16.msra.mxu0 %v6051_v40  ;;  %v490_v40 = vld [vmem:[#allocation5 + $0xa48] sm:$0xff] }
 0x16c   :  { %2869 = vmatprep.subr.bf16.mxu0 %v6060_v45  ;;  %v494_v45 = vld [vmem:[#allocation5 + $0xa68] sm:$0xff] }
 0x16d   :  { %2766 = vmatpush1.bf16.msra.mxu1 %v6225_v48  ;;  %v6281_v48 = vcombine.low %v482_v31, %v486_v32  ;;  %v6155_v31 = vcombine.low %v355_v18, %v359_v19  ;;  %v415_v18 = vld [vmem:[#allocation5 + $0x7f0] sm:$0xff] }
 0x16e   :  { %2767 = vmatprep.subr.bf16.mxu1 %v6234_v50  ;;  %v6290_v50 = vcombine.high %v490_v40, %v494_v45 }
 0x16f   :  { %2870 = vmatpush1.bf16.msra.mxu0 %v6059_v49  ;;  %v6115_v49 = vcombine.low %v315_v36, %v319_v37  ;;  %v542_v36 = vld [vmem:[#allocation5 + $0xbe8] sm:$0xff]  ;;  %v371_v37 = vld [vmem:[#allocation5 + $0x690] sm:$0xff] }
 0x170   :  { %2871 = vmatprep.subr.bf16.mxu0 %v6068_v54  ;;  %v6124_v54 = vcombine.high %v323_v44, %v327_v47 }
 0x171   :  { %2768 = vmatpush1.bf16.msra.mxu1 %v6233_v58  ;;  %v6289_v58 = vcombine.low %v490_v40, %v494_v45  ;;  %v6163_v40 = vcombine.low %v363_v27, %v367_v28  ;;  %v168_v45 = vld [vmem:[#allocation5 + $0x38] sm:$0xff] }
 0x172   :  { %2769 = vmatprep.subr.bf16.mxu1 %v6242_v60  ;;  %v6298_v60 = vcombine.high %v498_v55, %v502_v56 }
 0x173   :  { %2872 = vmatpush1.bf16.msra.mxu0 %v6067_v59  ;;  %v6123_v59 = vcombine.low %v323_v44, %v327_v47  ;;  %v164_v44 = vld [vmem:[#allocation5 + $0x18] sm:$0xff]  ;;  %v383_v47 = vld [vmem:[#allocation5 + $0x6f0] sm:$0xff] }
 0x174   :  { %2873 = vmatprep.subr.bf16.mxu0 %v6076_v0  ;;  %v6132_v0 = vcombine.high %v331_v51, %v335_v53 }
 0x175   :  { %2770 = vmatpush1.bf16.msra.mxu1 %v6241_v3  ;;  %v6297_v3 = vcombine.low %v498_v55, %v502_v56  ;;  %v387_v55 = vld [vmem:[#allocation5 + $0x710] sm:$0xff] }
 0x176   :  { %2771 = vmatprep.subr.bf16.mxu1 %v6250_v5  ;;  %v6306_v5 = vcombine.high %v506_v1, %v510_v2  ;;  %v391_v56 = vld [vmem:[#allocation5 + $0x730] sm:$0xff] }
 0x177   :  { %2874 = vmatpush1.bf16.msra.mxu0 %v6075_v4  ;;  %v6131_v4 = vcombine.low %v331_v51, %v335_v53  ;;  %v172_v53 = vld [vmem:[#allocation5 + $0x58] sm:$0xff] }
 0x178   :  { %2875 = vmatprep.subr.bf16.mxu0 %v6084_v8  ;;  %v518_v8 = vld [vmem:[#allocation5 + $0xb28] sm:$0xff] }
 0x179   :  { %2772 = vmatpush1.bf16.msra.mxu1 %v6249_v11  ;;  %v6305_v11 = vcombine.low %v506_v1, %v510_v2  ;;  %v395_v1 = vld [vmem:[#allocation5 + $0x750] sm:$0xff] }
 0x17a   :  { %2773 = vmatprep.subr.bf16.mxu1 %v6258_v13  ;;  %v6314_v13 = vcombine.high %v514_v6, %v518_v8  ;;  %v399_v2 = vld [vmem:[#allocation5 + $0x770] sm:$0xff] }
 0x17b   :  { %2876 = vmatpush1.bf16.msra.mxu0 %v6083_v12  ;;  %v6139_v12 = vcombine.low %v339_v62, %v343_v63  ;;  %v6188_v62 = vcombine.high %v387_v55, %v391_v56  ;;  %v180_v63 = vld [vmem:[#allocation5 + $0x98] sm:$0xff] }
 0x17c   :  { %2886 = vmatprep.subr.bf16.mxu0 %v6092_v17  ;;  %v526_v17 = vld [vmem:[#allocation5 + $0xb68] sm:$0xff] }
 0x17d   :  { %2774 = vmatpush1.bf16.msra.mxu1 %v6257_v20  ;;  %v6313_v20 = vcombine.low %v514_v6, %v518_v8  ;;  %v6196_v6 = vcombine.high %v395_v1, %v399_v2  ;;  %v192_v8 = vld [vmem:[#allocation5 + $0xf8] sm:$0xff] }
 0x17e   :  { %2878 = vmatmul.mubr.bf16.vlgmr.msra.gmra.mrb[8].mxu0 %v7726_v16  ;;  %2775 = vmatprep.subr.bf16.mxu1 %v6266_v23  ;;  %v6322_v23 = vcombine.high %v522_v15, %v526_v17 }
 0x17f   :  { %2887 = vmatpush1.bf16.msra.mxu0 %v6091_v22  ;;  %2918 = vmatprep.mubr.bf16.mxu0 %v7722_v61  ;;  %v6147_v22 = vcombine.low %v347_v9, %v351_v10  ;;  %v403_v9 = vld [vmem:[#allocation5 + $0x790] sm:$0xff] }
 0x180   :  { %2888 = vmatprep.subr.bf16.mxu0 %v6100_v26  ;;  %v534_v26 = vld [vmem:[#allocation5 + $0xba8] sm:$0xff]  ;;  %v407_v10 = vld [vmem:[#allocation5 + $0x7b0] sm:$0xff] }
 0x181   :  { %2776 = vmatpush1.bf16.msra.mxu1 %v6265_v30  ;;  %v6321_v30 = vcombine.low %v522_v15, %v526_v17  ;;  %v6330_v32 = vcombine.high %v530_v25, %v534_v26  ;;  %v196_v15 = vld [vmem:[#allocation5 + $0x118] sm:$0xff]  ;;  %v411_v17 = vld [vmem:[#allocation5 + $0x7d0] sm:$0xff] }
 0x182   :  { %2777 = vmatprep.subr.bf16.mxu1 %v6274_v35  ;;  %v538_v35 = vld [vmem:[#allocation5 + $0xbc8] sm:$0xff] }
 0x183   :  { %2889 = vmatpush1.bf16.msra.mxu0 %v6099_v34  ;;  %v6164_v34 = vcombine.high %v363_v27, %v367_v28  ;;  %v423_v27 = vld [vmem:[#allocation5 + $0x830] sm:$0xff] }
 0x184   :  { %2890 = vmatprep.subr.bf16.mxu0 %v6108_v38  ;;  %v375_v38 = vld [vmem:[#allocation5 + $0x6b0] sm:$0xff] }
 0x185   :  { %2778 = vmatpush1.bf16.msra.mxu1 %v6273_v39  ;;  %v6329_v39 = vcombine.low %v530_v25, %v534_v26  ;;  %v208_v25 = vld [vmem:[#allocation5 + $0x178] sm:$0xff]  ;;  %v419_v26 = vld [vmem:[#allocation5 + $0x810] sm:$0xff] }
 0x186   :  { %2779 = vmatprep.subr.bf16.mxu1 %v6282_v43  ;;  %v6172_v43 = vcombine.high %v371_v37, %v375_v38 }
 0x187   :  { %2891 = vmatpush1.bf16.msra.mxu0 %v6107_v41  ;;  %v6338_v41 = vcombine.high %v538_v35, %v542_v36 }
 0x188   :  { %2892 = vmatprep.subr.bf16.mxu0 %v6116_v46  ;;  %v379_v46 = vld [vmem:[#allocation5 + $0x6d0] sm:$0xff] }
 0x189   :  { %2780 = vmatpush1.bf16.msra.mxu1 %v6281_v48  ;;  %v6337_v48 = vcombine.low %v538_v35, %v542_v36  ;;  %v6180_v51 = vcombine.high %v379_v46, %v383_v47  ;;  %v216_v35 = vld [vmem:[#allocation5 + $0x1b8] sm:$0xff]  ;;  %v427_v36 = vld [vmem:[#allocation5 + $0x850] sm:$0xff] }
 0x18a   :  { %2781 = vmatprep.subr.bf16.mxu1 %v6290_v50  ;;  %v5966_v50 = vcombine.high %v164_v44, %v168_v45 }
 0x18b   :  { %2893 = vmatpush1.bf16.msra.mxu0 %v6115_v49  ;;  %v6171_v49 = vcombine.low %v371_v37, %v375_v38  ;;  %v431_v37 = vld [vmem:[#allocation5 + $0x870] sm:$0xff] }
 0x18c   :  { %2894 = vmatprep.subr.bf16.mxu0 %v6124_v54  ;;  %v176_v54 = vld [vmem:[#allocation5 + $0x78] sm:$0xff] }
 0x18d   :  { %2782 = vmatpush1.bf16.msra.mxu1 %v6289_v58  ;;  %v5965_v58 = vcombine.low %v164_v44, %v168_v45  ;;  %v220_v44 = vld [vmem:[#allocation5 + $0x1d8] sm:$0xff] }
 0x18e   :  { %2783 = vmatprep.subr.bf16.mxu1 %v6298_v60  ;;  %v5974_v60 = vcombine.high %v172_v53, %v176_v54  ;;  %v224_v45 = vld [vmem:[#allocation5 + $0x1f8] sm:$0xff] }
 0x18f   :  { %2895 = vmatpush1.bf16.msra.mxu0 %v6123_v59  ;;  %v6179_v59 = vcombine.low %v379_v46, %v383_v47  ;;  %v435_v47 = vld [vmem:[#allocation5 + $0x890] sm:$0xff] }
 0x190   :  { %2896 = vmatprep.subr.bf16.mxu0 %v6132_v0  ;;  %v184_v0 = vld [vmem:[#allocation5 + $0xb8] sm:$0xff] }
 0x191   :  { %2784 = vmatpush1.bf16.msra.mxu1 %v6297_v3  ;;  %v5973_v3 = vcombine.low %v172_v53, %v176_v54  ;;  %v6227_v53 = vcombine.low %v427_v36, %v431_v37  ;;  %v6022_v54 = vcombine.high %v220_v44, %v224_v45 }
 0x192   :  { %2785 = vmatprep.subr.bf16.mxu1 %v6306_v5  ;;  %v5982_v5 = vcombine.high %v180_v63, %v184_v0 }
 0x193   :  { %2897 = vmatpush1.bf16.msra.mxu0 %v6131_v4  ;;  %v6187_v4 = vcombine.low %v387_v55, %v391_v56  ;;  %v228_v56 = vld [vmem:[#allocation5 + $0x218] sm:$0xff] }
 0x194   :  { %2898 = vmatprep.subr.bf16.mxu0 %v6140_v7  ;;  %v188_v7 = vld [vmem:[#allocation5 + $0xd8] sm:$0xff] }
 0x195   :  { %2786 = vmatpush1.bf16.msra.mxu1 %v6305_v11  ;;  %v5981_v11 = vcombine.low %v180_v63, %v184_v0  ;;  %v5989_v19 = vcombine.low %v188_v7, %v192_v8 }
 0x196   :  { %2787 = vmatprep.subr.bf16.mxu1 %v6314_v13  ;;  %v5990_v13 = vcombine.high %v188_v7, %v192_v8 }
 0x197   :  { %2899 = vmatpush1.bf16.msra.mxu0 %v6139_v12  ;;  %v6195_v12 = vcombine.low %v395_v1, %v399_v2  ;;  %v236_v2 = vld [vmem:[#allocation5 + $0x258] sm:$0xff] }
 0x198   :  { %2900 = vmatprep.subr.bf16.mxu0 %v6148_v14  ;;  %v6204_v14 = vcombine.high %v403_v9, %v407_v10 }
 0x199   :  { %2788 = vmatpush1.bf16.msra.mxu1 %v6313_v20  ;;  %v6203_v20 = vcombine.low %v403_v9, %v407_v10  ;;  %v244_v10 = vld [vmem:[#allocation5 + $0x298] sm:$0xff] }
 0x19a   :  { %2789 = vmatprep.subr.bf16.mxu1 %v6322_v23  ;;  %v6212_v23 = vcombine.high %v411_v17, %v415_v18 }
 0x19b   :  { %2901 = vmatpush1.bf16.msra.mxu0 %v6147_v22 }
 0x19c   :  { %2902 = vmatprep.subr.bf16.mxu0 %v6156_v24  ;;  %v204_v24 = vld [vmem:[#allocation5 + $0x158] sm:$0xff] }
 0x19d   :  { %2790 = vmatpush1.bf16.msra.mxu1 %v6321_v30  ;;  %v6211_v30 = vcombine.low %v411_v17, %v415_v18  ;;  %v6005_v38 = vcombine.low %v204_v24, %v208_v25  ;;  %v252_v18 = vld [vmem:[#allocation5 + $0x2d8] sm:$0xff] }
 0x19e   :  { %2791 = vmatprep.subr.bf16.mxu1 %v6330_v32  ;;  %v6220_v32 = vcombine.high %v419_v26, %v423_v27 }
 0x19f   :  { %2903 = vmatpush1.bf16.msra.mxu0 %v6155_v31  ;;  %v6006_v31 = vcombine.high %v204_v24, %v208_v25 }
 0x1a0   :  { %2904 = vmatprep.subr.bf16.mxu0 %v6164_v34  ;;  %v212_v34 = vld [vmem:[#allocation5 + $0x198] sm:$0xff] }
 0x1a1   :  { %2792 = vmatpush1.bf16.msra.mxu1 %v6329_v39  ;;  %v6219_v39 = vcombine.low %v419_v26, %v423_v27  ;;  %v260_v27 = vld [vmem:[#allocation5 + $0x318] sm:$0xff] }
 0x1a2   :  { %2793 = vmatprep.subr.bf16.mxu1 %v6338_v41 }
 0x1a3   :  { %2905 = vmatpush1.bf16.msra.mxu0 %v6163_v40  ;;  %v6014_v40 = vcombine.high %v212_v34, %v216_v35 }
 0x1a4   :  { %2906 = vmatprep.subr.bf16.mxu0 %v6172_v43  ;;  %v6228_v43 = vcombine.high %v427_v36, %v431_v37  ;;  %v268_v37 = vld [vmem:[#allocation5 + $0x358] sm:$0xff] }
 0x1a5   :  { %2794 = vmatpush1.bf16.msra.mxu1 %v6337_v48  ;;  %v439_v48 = vld [vmem:[#allocation5 + $0x8b0] sm:$0xff] }
 0x1a6   :  { %3009 = vmatprep.subr.bf16.mxu1 %v5966_v50  ;;  %v6013_v50 = vcombine.low %v212_v34, %v216_v35  ;;  %v6236_v55 = vcombine.high %v435_v47, %v439_v48  ;;  %v6235_v63 = vcombine.low %v435_v47, %v439_v48  ;;  %v276_v48 = vld [vmem:[#allocation5 + $0x398] sm:$0xff] }
 0x1a7   :  { %2907 = vmatpush1.bf16.msra.mxu0 %v6171_v49 }
 0x1a8   :  { %2908 = vmatprep.subr.bf16.mxu0 %v6180_v51  ;;  %2796 = vmatmul.mubr.bf16.vlgmr.msra.gmra.mrb[4].mxu1 %v7736_v33 }
 0x1a9   :  { %3010 = vmatpush1.bf16.msra.mxu1 %v5965_v58  ;;  %3041 = vmatprep.mubr.bf16.mxu1 %v7720_v57  ;;  %v200_v57 = vld [vmem:[#allocation5 + $0x138] sm:$0xff] }
 0x1aa   :  { %3011 = vmatprep.subr.bf16.mxu1 %v5974_v60  ;;  %v5998_v22 = vcombine.high %v196_v15, %v200_v57  ;;  %v5997_v28 = vcombine.low %v196_v15, %v200_v57  ;;  %v232_v58 = vld [vmem:[#allocation5 + $0x238] sm:$0xff]  ;;  %v447_v60 = vld [vmem:[#allocation5 + $0x8f0] sm:$0xff] }
 0x1ab   :  { %2909 = vmatpush1.bf16.msra.mxu0 %v6179_v59  ;;  %v443_v59 = vld [vmem:[#allocation5 + $0x8d0] sm:$0xff]  ;;  %v6030_v0 = vcombine.high %v228_v56, %v232_v58 }
 0x1ac   :  { %2910 = vmatprep.subr.bf16.mxu0 %v6188_v62  ;;  %v6021_v62 = vcombine.low %v220_v44, %v224_v45  ;;  %v6244_v1 = vcombine.high %v443_v59, %v447_v60  ;;  %v6243_v7 = vcombine.low %v443_v59, %v447_v60  ;;  %v288_v59 = vld [vmem:[#allocation5 + $0x3f8] sm:$0xff]  ;;  %v499_v60 = vld [vmem:[#allocation5 + $0xa90] sm:$0xff] }
 0x1ad   :  { %3012 = vmatpush1.bf16.msra.mxu1 %v5973_v3  ;;  %v240_v3 = vld [vmem:[#allocation5 + $0x278] sm:$0xff] }
 0x1ae   :  { %3013 = vmatprep.subr.bf16.mxu1 %v5982_v5  ;;  %v455_v5 = vld [vmem:[#allocation5 + $0x930] sm:$0xff]  ;;  %v6038_v8 = vcombine.high %v236_v2, %v240_v3 }
 0x1af   :  { %2911 = vmatpush1.bf16.msra.mxu0 %v6187_v4  ;;  %v451_v4 = vld [vmem:[#allocation5 + $0x910] sm:$0xff] }
 0x1b0   :  { %2912 = vmatprep.subr.bf16.mxu0 %v6196_v6  ;;  %v6029_v6 = vcombine.low %v228_v56, %v232_v58  ;;  %v6252_v9 = vcombine.high %v451_v4, %v455_v5  ;;  %v6251_v15 = vcombine.low %v451_v4, %v455_v5  ;;  %v284_v58 = vld [vmem:[#allocation5 + $0x3d8] sm:$0xff]  ;;  %v507_v5 = vld [vmem:[#allocation5 + $0xad0] sm:$0xff] }
 0x1b1   :  { %3014 = vmatpush1.bf16.msra.mxu1 %v5981_v11  ;;  %v248_v11 = vld [vmem:[#allocation5 + $0x2b8] sm:$0xff] }
 0x1b2   :  { %3015 = vmatprep.subr.bf16.mxu1 %v5990_v13  ;;  %v463_v13 = vld [vmem:[#allocation5 + $0x970] sm:$0xff]  ;;  %v6046_v57 = vcombine.high %v244_v10, %v248_v11  ;;  %v296_v4 = vld [vmem:[#allocation5 + $0x438] sm:$0xff] }
 0x1b3   :  { %2913 = vmatpush1.bf16.msra.mxu0 %v6195_v12  ;;  %v459_v12 = vld [vmem:[#allocation5 + $0x950] sm:$0xff] }
 0x1b4   :  { %2914 = vmatprep.subr.bf16.mxu0 %v6204_v14  ;;  %v6037_v14 = vcombine.low %v236_v2, %v240_v3  ;;  %v6260_v17 = vcombine.high %v459_v12, %v463_v13  ;;  %v6259_v24 = vcombine.low %v459_v12, %v463_v13  ;;  %v292_v3 = vld [vmem:[#allocation5 + $0x418] sm:$0xff]  ;;  %v515_v13 = vld [vmem:[#allocation5 + $0xb10] sm:$0xff] }
 0x1b5   :  { %3016 = vmatpush1.bf16.msra.mxu1 %v5989_v19  ;;  %v256_v19 = vld [vmem:[#allocation5 + $0x2f8] sm:$0xff] }
 0x1b6   :  { %3017 = vmatprep.subr.bf16.mxu1 %v5998_v22  ;;  %v471_v22 = vld [vmem:[#allocation5 + $0x9b0] sm:$0xff]  ;;  %v6054_v25 = vcombine.high %v252_v18, %v256_v19  ;;  %v304_v12 = vld [vmem:[#allocation5 + $0x478] sm:$0xff] }
 0x1b7   :  { %2915 = vmatpush1.bf16.msra.mxu0 %v6203_v20  ;;  %v467_v20 = vld [vmem:[#allocation5 + $0x990] sm:$0xff] }
 0x1b8   :  { %2916 = vmatprep.subr.bf16.mxu0 %v6212_v23  ;;  %v6045_v23 = vcombine.low %v244_v10, %v248_v11  ;;  %v6268_v26 = vcombine.high %v467_v20, %v471_v22  ;;  %v6267_v34 = vcombine.low %v467_v20, %v471_v22  ;;  %v300_v11 = vld [vmem:[#allocation5 + $0x458] sm:$0xff]  ;;  %v523_v22 = vld [vmem:[#allocation5 + $0xb50] sm:$0xff] }
 0x1b9   :  { %3018 = vmatpush1.bf16.msra.mxu1 %v5997_v28  ;;  %v264_v28 = vld [vmem:[#allocation5 + $0x338] sm:$0xff] }
 0x1ba   :  { %3019 = vmatprep.subr.bf16.mxu1 %v6006_v31  ;;  %v479_v31 = vld [vmem:[#allocation5 + $0x9f0] sm:$0xff]  ;;  %v6062_v35 = vcombine.high %v260_v27, %v264_v28  ;;  %v312_v20 = vld [vmem:[#allocation5 + $0x4b8] sm:$0xff] }
 0x1bb   :  { %2917 = vmatpush1.bf16.msra.mxu0 %v6211_v30  ;;  %v7756_v41 = vpop.f32.mrb[0].mxu1  ;;  %v475_v30 = vld [vmem:[#allocation5 + $0x9d0] sm:$0xff] }
 0x1bc   :  { %2927 = vmatprep.subr.bf16.mxu0 %v6220_v32  ;;  %v7758_v46 = vpop.f32.mrb[1].mxu1  ;;  %v6053_v32 = vcombine.low %v252_v18, %v256_v19  ;;  %v6276_v36 = vcombine.high %v475_v30, %v479_v31  ;;  %v6275_v44 = vcombine.low %v475_v30, %v479_v31  ;;  %v308_v19 = vld [vmem:[#allocation5 + $0x498] sm:$0xff]  ;;  %v531_v31 = vld [vmem:[#allocation5 + $0xb90] sm:$0xff] }
 0x1bd   :  { %v2555_v49 = vpop.f32.mrb[2].mxu1  ;;  %3020 = vmatpush1.bf16.msra.mxu1 %v6005_v38  ;;  %v272_v38 = vld [vmem:[#allocation5 + $0x378] sm:$0xff] }
 0x1be   :  { %2919 = vmatmul.mubr.bf16.vlgmr.msra.gmra.mrb[8].mxu0 %v7728_v21  ;;  %v2556_v51 = vpop.f32.mrb[3].mxu1  ;;  %3021 = vmatprep.subr.bf16.mxu1 %v6014_v40  ;;  %v487_v40 = vld [vmem:[#allocation5 + $0xa30] sm:$0xff]  ;;  %v6070_v45 = vcombine.high %v268_v37, %v272_v38  ;;  %v280_v49 = vld [vmem:[#allocation5 + $0x3b8] sm:$0xff] }
 0x1bf   :  { %2928 = vmatpush1.bf16.msra.mxu0 %v6219_v39  ;;  %2959 = vmatprep.mubr.bf16.mxu0 %v7730_v29  ;;  %v483_v39 = vld [vmem:[#allocation5 + $0xa10] sm:$0xff]  ;;  %v320_v30 = vld [vmem:[#allocation5 + $0x4f8] sm:$0xff] }
 0x1c0   :  { %2929 = vmatprep.subr.bf16.mxu0 %v6228_v43  ;;  %v6061_v43 = vcombine.low %v260_v27, %v264_v28  ;;  %v6284_v47 = vcombine.high %v483_v39, %v487_v40  ;;  %v495_v51 = vld [vmem:[#allocation5 + $0xa70] sm:$0xff]  ;;  %v316_v28 = vld [vmem:[#allocation5 + $0x4d8] sm:$0xff] }
 0x1c1   :  { %3022 = vmatpush1.bf16.msra.mxu1 %v6013_v50  ;;  %v491_v50 = vld [vmem:[#allocation5 + $0xa50] sm:$0xff] }
 0x1c2   :  { %3023 = vmatprep.subr.bf16.mxu1 %v6022_v54  ;;  %v6283_v54 = vcombine.low %v483_v39, %v487_v40  ;;  %v6292_v56 = vcombine.high %v491_v50, %v495_v51  ;;  %v324_v39 = vld [vmem:[#allocation5 + $0x518] sm:$0xff] }
 0x1c3   :  { %2930 = vmatpush1.bf16.msra.mxu0 %v6227_v53  ;;  %v6069_v53 = vcombine.low %v268_v37, %v272_v38  ;;  %v3187_v38 = vlaneseq  ;;  %v328_v40 = vld [vmem:[#allocation5 + $0x538] sm:$0xff] }
 0x1c4   :  { %2931 = vmatprep.subr.bf16.mxu0 %v6236_v55  ;;  %v6078_v55 = vcombine.high %v276_v48, %v280_v49 }
 0x1c5   :  { %3024 = vmatpush1.bf16.msra.mxu1 %v6021_v62  ;;  %v503_v62 = vld [vmem:[#allocation5 + $0xab0] sm:$0xff] }
 0x1c6   :  { %3025 = vmatprep.subr.bf16.mxu1 %v6030_v0  ;;  %v6291_v0 = vcombine.low %v491_v50, %v495_v51  ;;  %v6300_v2 = vcombine.high %v499_v60, %v503_v62  ;;  %v3188_v50 = vshrl.u32 %v3187_v38, 7 }
 0x1c7   :  { %2932 = vmatpush1.bf16.msra.mxu0 %v6235_v63  ;;  %v6077_v63 = vcombine.low %v276_v48, %v280_v49  ;;  %v6126_v48 = vcombine.high %v324_v39, %v328_v40 }
 0x1c8   :  { %2933 = vmatprep.subr.bf16.mxu0 %v6244_v1  ;;  %v6086_v1 = vcombine.high %v284_v58, %v288_v59 }
 0x1c9   :  { %3026 = vmatpush1.bf16.msra.mxu1 %v6029_v6  ;;  %v511_v6 = vld [vmem:[#allocation5 + $0xaf0] sm:$0xff] }
 0x1ca   :  { %3027 = vmatprep.subr.bf16.mxu1 %v6038_v8  ;;  %v6299_v8 = vcombine.low %v499_v60, %v503_v62  ;;  %v6308_v10 = vcombine.high %v507_v5, %v511_v6 }
 0x1cb   :  { %2934 = vmatpush1.bf16.msra.mxu0 %v6243_v7  ;;  %v6085_v7 = vcombine.low %v284_v58, %v288_v59  ;;  %v6125_v58 = vcombine.low %v324_v39, %v328_v40 }
 0x1cc   :  { %2935 = vmatprep.subr.bf16.mxu0 %v6252_v9  ;;  %v6094_v9 = vcombine.high %v292_v3, %v296_v4 }
 0x1cd   :  { %3028 = vmatpush1.bf16.msra.mxu1 %v6037_v14  ;;  %v519_v14 = vld [vmem:[#allocation5 + $0xb30] sm:$0xff] }
 0x1ce   :  { %3029 = vmatprep.subr.bf16.mxu1 %v6046_v57  ;;  %v6307_v57 = vcombine.low %v507_v5, %v511_v6  ;;  %v6316_v18 = vcombine.high %v515_v13, %v519_v14 }
 0x1cf   :  { %2936 = vmatpush1.bf16.msra.mxu0 %v6251_v15  ;;  %v6093_v15 = vcombine.low %v292_v3, %v296_v4  ;;  %v548_v3 = vld [vmem:[#allocation5 + $0xc18] sm:$0xff] }
 0x1d0   :  { %2937 = vmatprep.subr.bf16.mxu0 %v6260_v17  ;;  %v6102_v17 = vcombine.high %v300_v11, %v304_v12  ;;  %v552_v4 = vld [vmem:[#allocation5 + $0xc38] sm:$0xff] }
 0x1d1   :  { %3030 = vmatpush1.bf16.msra.mxu1 %v6045_v23  ;;  %v527_v23 = vld [vmem:[#allocation5 + $0xb70] sm:$0xff] }
 0x1d2   :  { %3031 = vmatprep.subr.bf16.mxu1 %v6054_v25  ;;  %v6315_v25 = vcombine.low %v515_v13, %v519_v14  ;;  %v6324_v27 = vcombine.high %v523_v22, %v527_v23  ;;  %v356_v14 = vld [vmem:[#allocation5 + $0x618] sm:$0xff] }
 0x1d3   :  { %2938 = vmatpush1.bf16.msra.mxu0 %v6259_v24  ;;  %v6101_v24 = vcombine.low %v300_v11, %v304_v12 }
 0x1d4   :  { %2939 = vmatprep.subr.bf16.mxu0 %v6268_v26  ;;  %v6110_v26 = vcombine.high %v308_v19, %v312_v20 }
 0x1d5   :  { %3032 = vmatpush1.bf16.msra.mxu1 %v6053_v32  ;;  %v535_v32 = vld [vmem:[#allocation5 + $0xbb0] sm:$0xff] }
 0x1d6   :  { %3033 = vmatprep.subr.bf16.mxu1 %v6062_v35  ;;  %v6118_v35 = vcombine.high %v316_v28, %v320_v30 }
 0x1d7   :  { %2940 = vmatpush1.bf16.msra.mxu0 %v6267_v34  ;;  %v6109_v34 = vcombine.low %v308_v19, %v312_v20  ;;  %v364_v20 = vld [vmem:[#allocation5 + $0x658] sm:$0xff] }
 0x1d8   :  { %2941 = vmatprep.subr.bf16.mxu0 %v6276_v36  ;;  %v7560_v36 = vmov 1966171168  }
 0x1d9   :  { %3034 = vmatpush1.bf16.msra.mxu1 %v6061_v43  ;;  %v3185_v37 = vunpack.c.l.s4 %v7560_v36  ;;  %v539_v43 = vld [vmem:[#allocation5 + $0xbd0] sm:$0xff] }
 0x1da   :  { %3035 = vmatprep.subr.bf16.mxu1 %v6070_v45  ;;  %v6117_v45 = vcombine.low %v316_v28, %v320_v30  ;;  %v6809_v30 = vld [vmem:[#allocation8 + $0x4] ss:$16 sps:$4 sm:$0xff]  }
 0x1db   :  { %2942 = vmatpush1.bf16.msra.mxu0 %v6275_v44  ;;  %v543_v44 = vld [vmem:[#allocation5 + $0xbf0] sm:$0xff]  ;;  %v3186_v49 = vunpack.c.0.s8 %v3185_v37 }
 0x1dc   :  { %2943 = vmatprep.subr.bf16.mxu0 %v6284_v47  ;;  %v6331_v47 = vcombine.low %v531_v31, %v535_v32  ;;  %v6340_v51 = vcombine.high %v539_v43, %v543_v44  ;;  %v6339_v59 = vcombine.low %v539_v43, %v543_v44 }
 0x1dd   :  { %3036 = vmatpush1.bf16.msra.mxu1 %v6069_v53  ;;  %v332_v53 = vld [vmem:[#allocation5 + $0x558] sm:$0xff]  ;;  %v7764_v62 = vsub.s32 %v3186_v49, %v3188_v50 }
 0x1de   :  { %3037 = vmatprep.subr.bf16.mxu1 %v6078_v55  ;;  %v547_v55 = vld [vmem:[#allocation5 + $0xc10] sm:$0xff] }
 0x1df   :  { %2944 = vmatpush1.bf16.msra.mxu0 %v6283_v54  ;;  %v336_v54 = vld [vmem:[#allocation5 + $0x578] sm:$0xff] }
 0x1e0   :  { %2945 = vmatprep.subr.bf16.mxu0 %v6292_v56  ;;  %v551_v56 = vld [vmem:[#allocation5 + $0xc30] sm:$0xff]  ;;  %v6134_v60 = vcombine.high %v332_v53, %v336_v54  ;;  %v6133_v5 = vcombine.low %v332_v53, %v336_v54  ;;  %v6812_v53 = vld [vmem:[#allocation8 + $0x24] ss:$16 sps:$4 sm:$0xff]  }
 0x1e1   :  { %3038 = vmatpush1.bf16.msra.mxu1 %v6077_v63  ;;  %v340_v63 = vld [vmem:[#allocation5 + $0x598] sm:$0xff] }
 0x1e2   :  { %3039 = vmatprep.subr.bf16.mxu1 %v6086_v1  ;;  %v6348_v1 = vcombine.high %v547_v55, %v551_v56  ;;  %v388_v54 = vld [vmem:[#allocation5 + $0x718] sm:$0xff] }
 0x1e3   :  { %2946 = vmatpush1.bf16.msra.mxu0 %v6291_v0  ;;  %v344_v0 = vld [vmem:[#allocation5 + $0x5b8] sm:$0xff] }
 0x1e4   :  { %2947 = vmatprep.subr.bf16.mxu0 %v6300_v2  ;;  %v7309_v2 = vld.sshfl [vmem:[#allocation7] sm:$0xff pattern:$0x75316420]  ;;  %v6142_v6 = vcombine.high %v340_v63, %v344_v0  ;;  %v6141_v11 = vcombine.low %v340_v63, %v344_v0 }
 0x1e5   :  { %3040 = vmatpush1.bf16.msra.mxu1 %v6085_v7  ;;  %v6347_v7 = vcombine.low %v547_v55, %v551_v56  ;;  %v3198_v13 = vcombine.high %v7309_v2, %v7309_v2  ;;  %v392_v55 = vld [vmem:[#allocation5 + $0x738] sm:$0xff] }
 0x1e6   :  { %3050 = vmatprep.subr.bf16.mxu1 %v6094_v9  ;;  %v352_v9 = vld [vmem:[#allocation5 + $0x5f8] sm:$0xff]  ;;  %v6190_v0 = vcombine.high %v388_v54, %v392_v55 }
 0x1e7   :  { %2948 = vmatpush1.bf16.msra.mxu0 %v6299_v8  ;;  %v348_v8 = vld [vmem:[#allocation5 + $0x5d8] sm:$0xff] }
 0x1e8   :  { %2949 = vmatprep.subr.bf16.mxu0 %v6308_v10  ;;  %3042 = vmatmul.mubr.bf16.vlgmr.msra.gmra.mrb[8].mxu1 %v7726_v16  ;;  %v6323_v16 = vcombine.low %v523_v22, %v527_v23  ;;  %v6350_v10 = vcombine.high %v548_v3, %v552_v4  ;;  %v6150_v12 = vcombine.high %v348_v8, %v352_v9  ;;  %v368_v22 = vld [vmem:[#allocation5 + $0x678] sm:$0xff] }
 0x1e9   :  { %3051 = vmatpush1.bf16.msra.mxu1 %v6093_v15  ;;  %3082 = vmatprep.mubr.bf16.mxu1 %v7722_v61  ;;  %v6332_v61 = vcombine.high %v531_v31, %v535_v32  ;;  %v360_v15 = vld [vmem:[#allocation5 + $0x638] sm:$0xff]  ;;  %v6166_v28 = vcombine.high %v364_v20, %v368_v22  ;;  %v6165_v37 = vcombine.low %v364_v20, %v368_v22 }
 0x1ea   :  { %3052 = vmatprep.subr.bf16.mxu1 %v6102_v17  ;;  %v7769_v17 = vrot.slane %v7309_v2, %v7764_v62  ;;  %v6158_v19 = vcombine.high %v356_v14, %v360_v15  ;;  %v372_v31 = vld [vmem:[#allocation5 + $0x698] sm:$0xff] }
 0x1eb   :  { %2950 = vmatpush1.bf16.msra.mxu0 %v6307_v57  ;;  %v6149_v57 = vcombine.low %v348_v8, %v352_v9  ;;  %v376_v32 = vld [vmem:[#allocation5 + $0x6b8] sm:$0xff] }
 0x1ec   :  { %2951 = vmatprep.subr.bf16.mxu0 %v6316_v18  ;;  %v7772_v18 = vrot.slane %v3198_v13, %v7764_v62  ;;  %v3233_v23 = vpack.i.b16 %v7769_v17, %v7769_v17  ;;  %v6174_v40 = vcombine.high %v372_v31, %v376_v32  ;;  %v6173_v49 = vcombine.low %v372_v31, %v376_v32  ;;  %v6815_v2 = vld [vmem:[#allocation8 + $0x44] ss:$16 sps:$4 sm:$0xff]   ;;  %v6819_v20 = vld [vmem:[#allocation8 + $0x80] ss:$16 sps:$4 sm:$0xff]  }
 0x1ed   :  { %3053 = vmatpush1.bf16.msra.mxu1 %v6101_v24  ;;  %v7776_v24 = vsub.s32 0, %v3188_v50  ;;  %v6818_v8 = vld [vmem:[#allocation8 + $0x64] ss:$16 sps:$4 sm:$0xff]  }
 0x1ee   :  { %3054 = vmatprep.subr.bf16.mxu1 %v6110_v26  ;;  %v3240_v26 = vpack.i.b16 %v7772_v18, %v7772_v18  ;;  %v404_v9 = vld [vmem:[#allocation5 + $0x798] sm:$0xff] }
 0x1ef   :  { %2952 = vmatpush1.bf16.msra.mxu0 %v6315_v25  ;;  %v6157_v25 = vcombine.low %v356_v14, %v360_v15  ;;  %v6821_v14 = vld [vmem:[#allocation8 + $0x84] ss:$16 sps:$4 sm:$0xff]  }
 0x1f0   :  { %2953 = vmatprep.subr.bf16.mxu0 %v6324_v27  ;;  %v6349_v27 = vcombine.low %v548_v3, %v552_v4  ;;  %v396_v3 = vld [vmem:[#allocation5 + $0x758] sm:$0xff] }
 0x1f1   :  { %3055 = vmatpush1.bf16.msra.mxu1 %v6109_v34  ;;  %v400_v4 = vld [vmem:[#allocation5 + $0x778] sm:$0xff] }
 0x1f2   :  { %3056 = vmatprep.subr.bf16.mxu1 %v6118_v35  ;;  %v3238_v35 = vrot.slane %v3233_v23, %v7776_v24  ;;  %v412_v15 = vld [vmem:[#allocation5 + $0x7d8] sm:$0xff] }
 0x1f3   :  { %2954 = vmatpush1.bf16.msra.mxu0 %v6323_v16  ;;  %v6824_v23 = vld [vmem:[#allocation8 + $0xa4] ss:$16 sps:$4 sm:$0xff]  }
 0x1f4   :  { %2955 = vmatprep.subr.bf16.mxu0 %v6332_v61  ;;  %v3245_v61 = vrot.slane %v3240_v26, %v7776_v24  ;;  %v424_v26 = vld [vmem:[#allocation5 + $0x838] sm:$0xff] }
 0x1f5   :  { %3057 = vmatpush1.bf16.msra.mxu1 %v6117_v45  ;;  %v384_v45 = vld [vmem:[#allocation5 + $0x6f8] sm:$0xff] }
 0x1f6   :  { %3058 = vmatprep.subr.bf16.mxu1 %v6126_v48  ;;  %v6827_v31 = vld [vmem:[#allocation8 + $0xc4] ss:$16 sps:$4 sm:$0xff]  }
 0x1f7   :  { %2956 = vmatpush1.bf16.msra.mxu0 %v6331_v47  ;;  %v428_v32 = vld [vmem:[#allocation5 + $0x858] sm:$0xff] }
 0x1f8   :  { %2957 = vmatprep.subr.bf16.mxu0 %v6340_v51 }
 0x1f9   :  { %3059 = vmatpush1.bf16.msra.mxu1 %v6125_v58 }
 0x1fa   :  { %3060 = vmatprep.subr.bf16.mxu1 %v6134_v60  ;;  %v6810_v60 = vld [vmem:[#allocation8 + $0x20] ss:$16 sps:$4 sm:$0xff]  }
 0x1fb   :  { %2958 = vmatpush1.bf16.msra.mxu0 %v6339_v59 }
 0x1fc   :  { %2968 = vmatprep.subr.bf16.mxu0 %v6348_v1 }
 0x1fd   :  { %3061 = vmatpush1.bf16.msra.mxu1 %v6133_v5 }
 0x1fe   :  { %2960 = vmatmul.mubr.bf16.vlgmr.msra.gmra.mrb[8].mxu0 %v7736_v33  ;;  %3062 = vmatprep.subr.bf16.mxu1 %v6142_v6  ;;  %v6813_v6 = vld [vmem:[#allocation8 + $0x40] ss:$16 sps:$4 sm:$0xff]  }
 0x1ff   :  { %2969 = vmatpush1.bf16.msra.mxu0 %v6347_v7  ;;  %3000 = vmatprep.mubr.bf16.mxu0 %v7559_v42  ;;  %v6198_v7 = vcombine.high %v396_v3, %v400_v4 }
 0x200   :  { %3132 = vmatprep.subr.bf16.mxu0 %v6350_v10  ;;  %v408_v10 = vld [vmem:[#allocation5 + $0x7b8] sm:$0xff] }
 0x201   :  { %3063 = vmatpush1.bf16.msra.mxu1 %v6141_v11  ;;  %v6197_v11 = vcombine.low %v396_v3, %v400_v4  ;;  %v6206_v13 = vcombine.high %v404_v9, %v408_v10  ;;  %v468_v3 = vld [vmem:[#allocation5 + $0x998] sm:$0xff] }
 0x202   :  { %3064 = vmatprep.subr.bf16.mxu1 %v6150_v12  ;;  %v6816_v12 = vld [vmem:[#allocation8 + $0x60] ss:$16 sps:$4 sm:$0xff]  }
 0x203   :  { %v472_v4 = vld [vmem:[#allocation5 + $0x9b8] sm:$0xff] }
 0x205   :  { %3065 = vmatpush1.bf16.msra.mxu1 %v6149_v57  ;;  %v416_v57 = vld [vmem:[#allocation5 + $0x7f8] sm:$0xff] }
 0x206   :  { %3066 = vmatprep.subr.bf16.mxu1 %v6158_v19  ;;  %v6205_v19 = vcombine.low %v404_v9, %v408_v10  ;;  %v6214_v22 = vcombine.high %v412_v15, %v416_v57  ;;  %v480_v9 = vld [vmem:[#allocation5 + $0x9f8] sm:$0xff]  ;;  %v6269_v10 = vcombine.low %v468_v3, %v472_v4 }
 0x209   :  { %v2674_v34 = vpop.f32.mrb[0].mxu0  ;;  %3067 = vmatpush1.bf16.msra.mxu1 %v6157_v25  ;;  %v420_v25 = vld [vmem:[#allocation5 + $0x818] sm:$0xff] }
 0x20a   :  { %v6717_v16 = vadd.f32 %v2674_v34, %v7756_v41  ;;  %6353 = vmatmul.mubr.msk.bf16.vlgmr.msra.gmra.mrb[8].mxu0 %vm2513_vm0, %v7742_v52  ;;  %v2676_v36 = vpop.f32.mrb[1].mxu0  ;;  %3068 = vmatprep.subr.bf16.mxu1 %v6166_v28  ;;  %v380_v41 = vld [vmem:[#allocation5 + $0x6d8] sm:$0xff] }
 0x20b   :  { %v6718_v38 = vadd.f32 %v2676_v36, %v7758_v46  ;;  %v2678_v39 = vpop.f32.mrb[2].mxu0  ;;  %3133 = vmatpush1.bf16.msra.mxu0 %v6349_v27  ;;  %3164 = vmatprep.mubr.bf16.mxu0 %v7559_v42  ;;  %v6807_v46 = vld [vmem:[#allocation8] ss:$16 sps:$4 sm:$0xff]   ;;  %v6182_v51 = vcombine.high %v380_v41, %v384_v45  ;;  %v6181_v42 = vcombine.low %v380_v41, %v384_v45 }
 0x20c   :  { %v3174_v43 = vpack.c.bf16 %v6717_v16, %v6717_v16  ;;  %v2679_v44 = vpop.f32.mrb[3].mxu0  ;;  %4848 = vmatprep.subr.bf16.mxu0 %v6809_v30  ;;  %v6213_v27 = vcombine.low %v412_v15, %v416_v57  ;;  %v6822_v28 = vld [vmem:[#allocation8 + $0xa0] ss:$16 sps:$4 sm:$0xff]   ;;  %v6222_v30 = vcombine.high %v420_v25, %v424_v26  ;;  %v6221_v16 = vcombine.low %v420_v25, %v424_v26 }
 0x20d   :  { %v3175_v47 = vpack.c.bf16 %v6718_v38, %v6718_v38  ;;  %3069 = vmatpush1.bf16.msra.mxu1 %v6165_v37  ;;  %v432_v34 = vld [vmem:[#allocation5 + $0x878] sm:$0xff] }
 0x20e   :  { %v7787_v48 = vadd.bf16 %v3238_v35, %v3174_v43  ;;  %3070 = vmatprep.subr.bf16.mxu1 %v6174_v40  ;;  %v6825_v35 = vld [vmem:[#allocation8 + $0xc0] ss:$16 sps:$4 sm:$0xff]   ;;  %v6230_v36 = vcombine.high %v428_v32, %v432_v34  ;;  %v6830_v37 = vld [vmem:[#allocation8 + $0xe4] ss:$16 sps:$4 sm:$0xff]   ;;  %v6229_v39 = vcombine.low %v428_v32, %v432_v34 }
 0x20f   :  { %v3289_v50 = vadd.bf16 %v3245_v61, %v3175_v47  ;;  %v436_v38 = vld [vmem:[#allocation5 + $0x898] sm:$0xff] }
 0x210   :  { %v440_v61 = vld [vmem:[#allocation5 + $0x8b8] sm:$0xff] }
 0x211   :  { %v3297_v56 = vmul.bf16 1009007652, %v3289_v50  ;;  %v7789_v58 = vpop.f32.mrb[4].mxu0  ;;  %3071 = vmatpush1.bf16.msra.mxu1 %v6173_v49  ;;  %v6828_v40 = vld [vmem:[#allocation8 + $0xe0] ss:$16 sps:$4 sm:$0xff]   ;;  %v6238_v43 = vcombine.high %v436_v38, %v440_v61  ;;  %v6237_v47 = vcombine.low %v436_v38, %v440_v61 }
 0x212   :  { %6354 = vmatmul.mubr.msk.bf16.vlgmr.msra.gmra.mrb[12].mxu0 %vm2513_vm0, %v7742_v52  ;;  %v7793_v59 = vpop.f32.mrb[5].mxu0  ;;  %3072 = vmatprep.subr.bf16.mxu1 %v6182_v51  ;;  %v6189_v52 = vcombine.low %v388_v54, %v392_v55  ;;  %v6833_v44 = vld [vmem:[#allocation8 + $0x104] ss:$16 sps:$4 sm:$0xff]   ;;  %v6831_v49 = vld [vmem:[#allocation8 + $0x100] ss:$16 sps:$4 sm:$0xff]  }
 0x213   :  { %4849 = vmatpush1.bf16.msra.mxu0 %v6807_v46  ;;  %v7795_v63 = vmax.bf16 %v3297_v56, %v3289_v50  ;;  %v2842_v1 = vpop.f32.mrb[6].mxu0  ;;  %v444_v41 = vld [vmem:[#allocation5 + $0x8d8] sm:$0xff] }
 0x214   :  { %4850 = vmatprep.subr.bf16.mxu0 %v6812_v53  ;;  %v2843_v5 = vpop.f32.mrb[7].mxu0  ;;  %v448_v45 = vld [vmem:[#allocation5 + $0x8f8] sm:$0xff] }
 0x215   :  { %4880 = vmatprep.mubr.bf16.mxu0 %v7795_v63  ;;  %3073 = vmatpush1.bf16.msra.mxu1 %v6181_v42  ;;  %v6246_v50 = vcombine.high %v444_v41, %v448_v45  ;;  %v452_v46 = vld [vmem:[#allocation5 + $0x918] sm:$0xff] }
 0x216   :  { %3074 = vmatprep.subr.bf16.mxu1 %v6190_v0  ;;  %v456_v51 = vld [vmem:[#allocation5 + $0x938] sm:$0xff] }
 0x217   :  { %4851 = vmatpush1.bf16.msra.mxu0 %v6810_v60  ;;  %v6834_v53 = vld [vmem:[#allocation8 + $0x120] ss:$16 sps:$4 sm:$0xff]   ;;  %v6254_v54 = vcombine.high %v452_v46, %v456_v51  ;;  %v6839_v55 = vld [vmem:[#allocation8 + $0x144] ss:$16 sps:$4 sm:$0xff]   ;;  %v6253_v60 = vcombine.low %v452_v46, %v456_v51 }
 0x218   :  { %4852 = vmatprep.subr.bf16.mxu0 %v6815_v2  ;;  %v460_v56 = vld [vmem:[#allocation5 + $0x958] sm:$0xff] }
 0x219   :  { %3075 = vmatpush1.bf16.msra.mxu1 %v6189_v52  ;;  %v464_v42 = vld [vmem:[#allocation5 + $0x978] sm:$0xff] }
 0x21a   :  { %3076 = vmatprep.subr.bf16.mxu1 %v6198_v7  ;;  %v6837_v0 = vld [vmem:[#allocation8 + $0x140] ss:$16 sps:$4 sm:$0xff]   ;;  %v6262_v1 = vcombine.high %v460_v56, %v464_v42  ;;  %v6842_v2 = vld [vmem:[#allocation8 + $0x164] ss:$16 sps:$4 sm:$0xff]   ;;  %v6261_v5 = vcombine.low %v460_v56, %v464_v42 }
 0x21b   :  { %4853 = vmatpush1.bf16.msra.mxu0 %v6813_v6  ;;  %v6840_v52 = vld [vmem:[#allocation8 + $0x160] ss:$16 sps:$4 sm:$0xff]   ;;  %v6270_v6 = vcombine.high %v468_v3, %v472_v4  ;;  %v6845_v7 = vld [vmem:[#allocation8 + $0x184] ss:$16 sps:$4 sm:$0xff]  }
 0x21c   :  { %4854 = vmatprep.subr.bf16.mxu0 %v6818_v8  ;;  %v476_v8 = vld [vmem:[#allocation5 + $0x9d8] sm:$0xff] }
 0x21d   :  { %3077 = vmatpush1.bf16.msra.mxu1 %v6197_v11  ;;  %v6843_v11 = vld [vmem:[#allocation8 + $0x180] ss:$16 sps:$4 sm:$0xff]   ;;  %v6277_v57 = vcombine.low %v476_v8, %v480_v9  ;;  %v6863_v46 = vld [vmem:[#allocation8 + $0x244] ss:$16 sps:$4 sm:$0xff]  }
 0x21e   :  { %3078 = vmatprep.subr.bf16.mxu1 %v6206_v13  ;;  %v6848_v13 = vld [vmem:[#allocation8 + $0x1a4] ss:$16 sps:$4 sm:$0xff]  }
 0x21f   :  { %4855 = vmatpush1.bf16.msra.mxu0 %v6816_v12  ;;  %v6278_v12 = vcombine.high %v476_v8, %v480_v9  ;;  %v488_v15 = vld [vmem:[#allocation5 + $0xa38] sm:$0xff] }
 0x220   :  { %4856 = vmatprep.subr.bf16.mxu0 %v6821_v14  ;;  %v484_v14 = vld [vmem:[#allocation5 + $0xa18] sm:$0xff] }
 0x221   :  { %3079 = vmatpush1.bf16.msra.mxu1 %v6205_v19  ;;  %v6846_v19 = vld [vmem:[#allocation8 + $0x1a0] ss:$16 sps:$4 sm:$0xff]   ;;  %v6285_v26 = vcombine.low %v484_v14, %v488_v15 }
 0x222   :  { %3080 = vmatprep.subr.bf16.mxu1 %v6214_v22  ;;  %v6851_v22 = vld [vmem:[#allocation8 + $0x1c4] ss:$16 sps:$4 sm:$0xff]   ;;  %v6870_v9 = vld [vmem:[#allocation8 + $0x2a0] ss:$16 sps:$4 sm:$0xff]  }
 0x223   :  { %4857 = vmatpush1.bf16.msra.mxu0 %v6819_v20  ;;  %v6286_v20 = vcombine.high %v484_v14, %v488_v15  ;;  %v496_v25 = vld [vmem:[#allocation5 + $0xa78] sm:$0xff]  ;;  %v6884_v14 = vld [vmem:[#allocation8 + $0x2c] ss:$16 sps:$4 sm:$0xff]  }
 0x224   :  { %4858 = vmatprep.subr.bf16.mxu0 %v6824_v23  ;;  %v492_v23 = vld [vmem:[#allocation5 + $0xa58] sm:$0xff] }
 0x225   :  { %3081 = vmatpush1.bf16.msra.mxu1 %v6213_v27  ;;  %v6849_v27 = vld [vmem:[#allocation8 + $0x1c0] ss:$16 sps:$4 sm:$0xff]   ;;  %v6293_v34 = vcombine.low %v492_v23, %v496_v25  ;;  %v6881_v15 = vld [vmem:[#allocation8 + $0x2e4] ss:$16 sps:$4 sm:$0xff]  }
 0x226   :  { %3091 = vmatprep.subr.bf16.mxu1 %v6222_v30  ;;  %v6854_v30 = vld [vmem:[#allocation8 + $0x1e4] ss:$16 sps:$4 sm:$0xff]  }
 0x227   :  { %4859 = vmatpush1.bf16.msra.mxu0 %v6822_v28  ;;  %v6294_v28 = vcombine.high %v492_v23, %v496_v25  ;;  %v504_v32 = vld [vmem:[#allocation5 + $0xab8] sm:$0xff]  ;;  %v6888_v23 = vld [vmem:[#allocation8 + $0x48] ss:$16 sps:$4 sm:$0xff]  }
 0x228   :  { %4860 = vmatprep.subr.bf16.mxu0 %v6827_v31  ;;  %3083 = vmatmul.mubr.bf16.vlgmr.msra.gmra.mrb[8].mxu1 %v7728_v21  ;;  %v6836_v21 = vld [vmem:[#allocation8 + $0x124] ss:$16 sps:$4 sm:$0xff]   ;;  %v6885_v25 = vld [vmem:[#allocation8 + $0x300] ss:$16 sps:$4 sm:$0xff]  }
 0x229   :  { %3092 = vmatpush1.bf16.msra.mxu1 %v6221_v16  ;;  %3123 = vmatprep.mubr.bf16.mxu1 %v7730_v29  ;;  %v6245_v29 = vcombine.low %v444_v41, %v448_v45  ;;  %v500_v31 = vld [vmem:[#allocation5 + $0xa98] sm:$0xff] }
 0x22a   :  { %3093 = vmatprep.subr.bf16.mxu1 %v6230_v36  ;;  %v6852_v16 = vld [vmem:[#allocation8 + $0x1e0] ss:$16 sps:$4 sm:$0xff]   ;;  %v3296_v36 = vmul.bf16 1009007652, %v7787_v48  ;;  %v6860_v41 = vld [vmem:[#allocation8 + $0x224] ss:$16 sps:$4 sm:$0xff]  }
 0x22b   :  { %4861 = vmatpush1.bf16.msra.mxu0 %v6825_v35  ;;  %v6302_v35 = vcombine.high %v500_v31, %v504_v32  ;;  %v508_v38 = vld [vmem:[#allocation5 + $0xad8] sm:$0xff] }
 0x22c   :  { %4862 = vmatprep.subr.bf16.mxu0 %v6830_v37  ;;  %v6857_v37 = vld [vmem:[#allocation8 + $0x204] ss:$16 sps:$4 sm:$0xff]  }
 0x22d   :  { %3094 = vmatpush1.bf16.msra.mxu1 %v6229_v39  ;;  %v512_v61 = vld [vmem:[#allocation5 + $0xaf8] sm:$0xff]  ;;  %v6301_v39 = vcombine.low %v500_v31, %v504_v32  ;;  %v3228_v31 = vcombine.high %v7769_v17, %v7769_v17  ;;  %v6900_v32 = vld [vmem:[#allocation8 + $0x88] ss:$16 sps:$4 sm:$0xff]  }
 0x22e   :  { %3095 = vmatprep.subr.bf16.mxu1 %v6238_v43  ;;  %v6310_v43 = vcombine.high %v508_v38, %v512_v61  ;;  %v516_v45 = vld [vmem:[#allocation5 + $0xb18] sm:$0xff] }
 0x22f   :  { %4863 = vmatpush1.bf16.msra.mxu0 %v6828_v40  ;;  %v6855_v40 = vld [vmem:[#allocation8 + $0x200] ss:$16 sps:$4 sm:$0xff]  }
 0x230   :  { %4864 = vmatprep.subr.bf16.mxu0 %v6833_v44  ;;  %v7802_v44 = vmax.bf16 %v3296_v36, %v7787_v48  ;;  %v524_v51 = vld [vmem:[#allocation5 + $0xb58] sm:$0xff] }
 0x231   :  { %3096 = vmatpush1.bf16.msra.mxu1 %v6237_v47  ;;  %v520_v47 = vld [vmem:[#allocation5 + $0xb38] sm:$0xff] }
 0x232   :  { %3097 = vmatprep.subr.bf16.mxu1 %v6246_v50  ;;  %v6858_v50 = vld [vmem:[#allocation8 + $0x220] ss:$16 sps:$4 sm:$0xff]   ;;  %v6905_v36 = vld [vmem:[#allocation8 + $0x364] ss:$16 sps:$4 sm:$0xff]  }
 0x233   :  { %4865 = vmatpush1.bf16.msra.mxu0 %v6831_v49  ;;  %v6309_v49 = vcombine.low %v508_v38, %v512_v61  ;;  %v6861_v48 = vld [vmem:[#allocation8 + $0x240] ss:$16 sps:$4 sm:$0xff]   ;;  %v6906_v61 = vld [vmem:[#allocation8 + $0xa8] ss:$16 sps:$4 sm:$0xff]  }
 0x234   :  { %4866 = vmatprep.subr.bf16.mxu0 %v6836_v21  ;;  %v6318_v21 = vcombine.high %v516_v45, %v520_v47  ;;  %v532_v56 = vld [vmem:[#allocation5 + $0xb98] sm:$0xff] }
 0x235   :  { %3098 = vmatpush1.bf16.msra.mxu1 %v6245_v29  ;;  %v528_v29 = vld [vmem:[#allocation5 + $0xb78] sm:$0xff] }
 0x236   :  { %3099 = vmatprep.subr.bf16.mxu1 %v6254_v54  ;;  %v6326_v54 = vcombine.high %v524_v51, %v528_v29  ;;  %v536_v42 = vld [vmem:[#allocation5 + $0xbb8] sm:$0xff] }
 0x237   :  { %4867 = vmatpush1.bf16.msra.mxu0 %v6834_v53  ;;  %v6317_v53 = vcombine.low %v516_v45, %v520_v47  ;;  %v540_v3 = vld [vmem:[#allocation5 + $0xbd8] sm:$0xff] }
 0x238   :  { %4868 = vmatprep.subr.bf16.mxu0 %v6839_v55  ;;  %v6866_v55 = vld [vmem:[#allocation8 + $0x264] ss:$16 sps:$4 sm:$0xff]  }
 0x239   :  { %3100 = vmatpush1.bf16.msra.mxu1 %v6253_v60  ;;  %v6325_v60 = vcombine.low %v524_v51, %v528_v29  ;;  %v544_v4 = vld [vmem:[#allocation5 + $0xbf8] sm:$0xff] }
 0x23a   :  { %3101 = vmatprep.subr.bf16.mxu1 %v6262_v1  ;;  %v6334_v1 = vcombine.high %v532_v56, %v536_v42  ;;  %v6341_v8 = vcombine.low %v540_v3, %v544_v4  ;;  %v6909_v29 = vld [vmem:[#allocation8 + $0x380] ss:$16 sps:$4 sm:$0xff]  }
 0x23b   :  { %4869 = vmatpush1.bf16.msra.mxu0 %v6837_v0  ;;  %v6864_v0 = vld [vmem:[#allocation8 + $0x260] ss:$16 sps:$4 sm:$0xff]  }
 0x23c   :  { %4870 = vmatprep.subr.bf16.mxu0 %v6842_v2  ;;  %v6869_v2 = vld [vmem:[#allocation8 + $0x284] ss:$16 sps:$4 sm:$0xff]  }
 0x23d   :  { %3102 = vmatpush1.bf16.msra.mxu1 %v6261_v5  ;;  %v6333_v5 = vcombine.low %v532_v56, %v536_v42  ;;  %v6918_v56 = vld [vmem:[#allocation8 + $0xe8] ss:$16 sps:$4 sm:$0xff]   ;;  %v6926_v42 = vld [vmem:[#allocation8 + $0x10c] ss:$16 sps:$4 sm:$0xff]  }
 0x23e   :  { %3103 = vmatprep.subr.bf16.mxu1 %v6270_v6  ;;  %v6342_v6 = vcombine.high %v540_v3, %v544_v4  ;;  %v6921_v3 = vld [vmem:[#allocation8 + $0x3c0] ss:$16 sps:$4 sm:$0xff]   ;;  %v6932_v4 = vld [vmem:[#allocation8 + $0x12c] ss:$16 sps:$4 sm:$0xff]  }
 0x23f   :  { %4871 = vmatpush1.bf16.msra.mxu0 %v6840_v52  ;;  %v6867_v52 = vld [vmem:[#allocation8 + $0x280] ss:$16 sps:$4 sm:$0xff]  }
 0x240   :  { %4872 = vmatprep.subr.bf16.mxu0 %v6845_v7  ;;  %v6872_v7 = vld [vmem:[#allocation8 + $0x2a4] ss:$16 sps:$4 sm:$0xff]  }
 0x241   :  { %3104 = vmatpush1.bf16.msra.mxu1 %v6269_v10  ;;  %v6878_v10 = vld [vmem:[#allocation8 + $0xc] ss:$16 sps:$4 sm:$0xff]  }
 0x242   :  { %3105 = vmatprep.subr.bf16.mxu1 %v6278_v12  ;;  %v6876_v12 = vld [vmem:[#allocation8 + $0x8] ss:$16 sps:$4 sm:$0xff]  }
 0x243   :  { %4873 = vmatpush1.bf16.msra.mxu0 %v6843_v11  ;;  %v6875_v11 = vld [vmem:[#allocation8 + $0x2c4] ss:$16 sps:$4 sm:$0xff]  }
 0x244   :  { %4874 = vmatprep.subr.bf16.mxu0 %v6848_v13  ;;  %v6873_v13 = vld [vmem:[#allocation8 + $0x2c0] ss:$16 sps:$4 sm:$0xff]  }
 0x245   :  { %3106 = vmatpush1.bf16.msra.mxu1 %v6277_v57  ;;  %v6882_v57 = vld [vmem:[#allocation8 + $0x28] ss:$16 sps:$4 sm:$0xff]  }
 0x246   :  { %3107 = vmatprep.subr.bf16.mxu1 %v6286_v20  ;;  %v6890_v20 = vld [vmem:[#allocation8 + $0x4c] ss:$16 sps:$4 sm:$0xff]  }
 0x247   :  { %4875 = vmatpush1.bf16.msra.mxu0 %v6846_v19  ;;  %v6879_v19 = vld [vmem:[#allocation8 + $0x2e0] ss:$16 sps:$4 sm:$0xff]  }
 0x248   :  { %4876 = vmatprep.subr.bf16.mxu0 %v6851_v22  ;;  %v6887_v22 = vld [vmem:[#allocation8 + $0x304] ss:$16 sps:$4 sm:$0xff]  }
 0x249   :  { %3108 = vmatpush1.bf16.msra.mxu1 %v6285_v26  ;;  %v6896_v26 = vld [vmem:[#allocation8 + $0x6c] ss:$16 sps:$4 sm:$0xff]  }
 0x24a   :  { %3109 = vmatprep.subr.bf16.mxu1 %v6294_v28  ;;  %v6891_v28 = vld [vmem:[#allocation8 + $0x320] ss:$16 sps:$4 sm:$0xff]  }
 0x24b   :  { %4877 = vmatpush1.bf16.msra.mxu0 %v6849_v27  ;;  %v6893_v27 = vld [vmem:[#allocation8 + $0x324] ss:$16 sps:$4 sm:$0xff]  }
 0x24c   :  { %4878 = vmatprep.subr.bf16.mxu0 %v6854_v30  ;;  %v6899_v30 = vld [vmem:[#allocation8 + $0x344] ss:$16 sps:$4 sm:$0xff]  }
 0x24d   :  { %3110 = vmatpush1.bf16.msra.mxu1 %v6293_v34  ;;  %v3230_v34 = vcombine.high %v7772_v18, %v7772_v18 }
 0x24e   :  { %3111 = vmatprep.subr.bf16.mxu1 %v6302_v35  ;;  %v6908_v35 = vld [vmem:[#allocation8 + $0xac] ss:$16 sps:$4 sm:$0xff]  }
 0x24f   :  { %4879 = vmatpush1.bf16.msra.mxu0 %v6852_v16  ;;  %v6897_v16 = vld [vmem:[#allocation8 + $0x340] ss:$16 sps:$4 sm:$0xff]   ;;  %v3254_v38 = vpack.i.b16 %v3230_v34, %v3230_v34  ;;  %v6983_v34 = vld [vmem:[#allocation8 + $0x4a4] ss:$16 sps:$4 sm:$0xff]  }
 0x250   :  { %4889 = vmatprep.subr.bf16.mxu0 %v6857_v37  ;;  %v3247_v37 = vpack.i.b16 %v3228_v31, %v3228_v31  ;;  %v6950_v31 = vld [vmem:[#allocation8 + $0x1ec] ss:$16 sps:$4 sm:$0xff]  }
 0x251   :  { %3112 = vmatpush1.bf16.msra.mxu1 %v6301_v39  ;;  %v6903_v39 = vld [vmem:[#allocation8 + $0x360] ss:$16 sps:$4 sm:$0xff]  }
 0x252   :  { %4881 = vmatmul.mubr.bf16.vlgmr.msra.gmra.mrb[16].mxu0 %v7802_v44  ;;  %3113 = vmatprep.subr.bf16.mxu1 %v6310_v43  ;;  %v6911_v43 = vld [vmem:[#allocation8 + $0x384] ss:$16 sps:$4 sm:$0xff]   ;;  %v3252_v18 = vrot.slane %v3247_v37, %v7776_v24 }
 0x253   :  { %4890 = vmatpush1.bf16.msra.mxu0 %v6855_v40  ;;  %v6914_v40 = vld [vmem:[#allocation8 + $0xcc] ss:$16 sps:$4 sm:$0xff]   ;;  %v6989_v37 = vld [vmem:[#allocation8 + $0x4c4] ss:$16 sps:$4 sm:$0xff]  }
 0x254   :  { %4891 = vmatprep.subr.bf16.mxu0 %v6860_v41 }
 0x255   :  { %3114 = vmatpush1.bf16.msra.mxu1 %v6309_v49  ;;  %v3259_v49 = vrot.slane %v3254_v38, %v7776_v24  ;;  %v6954_v38 = vld [vmem:[#allocation8 + $0x208] ss:$16 sps:$4 sm:$0xff]  }
 0x256   :  { %3115 = vmatprep.subr.bf16.mxu1 %v6318_v21  ;;  %v6912_v21 = vld [vmem:[#allocation8 + $0xc8] ss:$16 sps:$4 sm:$0xff]  }
 0x257   :  { %4892 = vmatpush1.bf16.msra.mxu0 %v6858_v50 }
 0x258   :  { %4893 = vmatprep.subr.bf16.mxu0 %v6863_v46 }
 0x259   :  { %3116 = vmatpush1.bf16.msra.mxu1 %v6317_v53  ;;  %v6920_v53 = vld [vmem:[#allocation8 + $0xec] ss:$16 sps:$4 sm:$0xff]  }
 0x25a   :  { %3117 = vmatprep.subr.bf16.mxu1 %v6326_v54  ;;  %v6917_v54 = vld [vmem:[#allocation8 + $0x3a4] ss:$16 sps:$4 sm:$0xff]  }
 0x25b   :  { %4894 = vmatpush1.bf16.msra.mxu0 %v6861_v48 }
 0x25c   :  { %4895 = vmatprep.subr.bf16.mxu0 %v6866_v55 }
 0x25d   :  { %3118 = vmatpush1.bf16.msra.mxu1 %v6325_v60 }
 0x25e   :  { %3119 = vmatprep.subr.bf16.mxu1 %v6334_v1 }
 0x25f   :  { %4896 = vmatpush1.bf16.msra.mxu0 %v6864_v0  ;;  %v6923_v0 = vld [vmem:[#allocation8 + $0x3c4] ss:$16 sps:$4 sm:$0xff]  }
 0x260   :  { %4897 = vmatprep.subr.bf16.mxu0 %v6869_v2  ;;  %v6924_v2 = vld [vmem:[#allocation8 + $0x108] ss:$16 sps:$4 sm:$0xff]  }
 0x261   :  { %3120 = vmatpush1.bf16.msra.mxu1 %v6333_v5  ;;  %v6929_v5 = vld [vmem:[#allocation8 + $0x3e4] ss:$16 sps:$4 sm:$0xff]  }
 0x262   :  { %3121 = vmatprep.subr.bf16.mxu1 %v6342_v6  ;;  %v6927_v6 = vld [vmem:[#allocation8 + $0x3e0] ss:$16 sps:$4 sm:$0xff]  }
 0x263   :  { %4898 = vmatpush1.bf16.msra.mxu0 %v6867_v52  ;;  %v6930_v52 = vld [vmem:[#allocation8 + $0x128] ss:$16 sps:$4 sm:$0xff]  }
 0x264   :  { %4899 = vmatprep.subr.bf16.mxu0 %v6872_v7  ;;  %v6935_v7 = vld [vmem:[#allocation8 + $0x14c] ss:$16 sps:$4 sm:$0xff]  }
 0x265   :  { %3122 = vmatpush1.bf16.msra.mxu1 %v6341_v8 }
 0x266   :  { %5012 = vmatprep.subr.bf16.mxu1 %v6878_v10  ;;  %v6933_v10 = vld [vmem:[#allocation8 + $0x148] ss:$16 sps:$4 sm:$0xff]  }
 0x267   :  { %4900 = vmatpush1.bf16.msra.mxu0 %v6870_v9  ;;  %v6953_v9 = vld [vmem:[#allocation8 + $0x404] ss:$16 sps:$4 sm:$0xff]  }
 0x268   :  { %4901 = vmatprep.subr.bf16.mxu0 %v6875_v11  ;;  %3124 = vmatmul.mubr.bf16.vlgmr.msra.gmra.mrb[8].mxu1 %v7736_v33  ;;  %v6894_v33 = vld [vmem:[#allocation8 + $0x68] ss:$16 sps:$4 sm:$0xff]   ;;  %v6938_v11 = vld [vmem:[#allocation8 + $0x16c] ss:$16 sps:$4 sm:$0xff]  }
 0x269   :  { %5013 = vmatpush1.bf16.msra.mxu1 %v6876_v12  ;;  %5044 = vmatprep.mubr.bf16.mxu1 %v7795_v63  ;;  %v6902_v63 = vld [vmem:[#allocation8 + $0x8c] ss:$16 sps:$4 sm:$0xff]   ;;  %v6951_v12 = vld [vmem:[#allocation8 + $0x400] ss:$16 sps:$4 sm:$0xff]  }
 0x26a   :  { %5014 = vmatprep.subr.bf16.mxu1 %v6884_v14  ;;  %v6959_v14 = vld [vmem:[#allocation8 + $0x424] ss:$16 sps:$4 sm:$0xff]  }
 0x26b   :  { %4902 = vmatpush1.bf16.msra.mxu0 %v6873_v13 }
 0x26c   :  { %4903 = vmatprep.subr.bf16.mxu0 %v6881_v15  ;;  %v6936_v15 = vld [vmem:[#allocation8 + $0x168] ss:$16 sps:$4 sm:$0xff]  }
 0x26d   :  { %5015 = vmatpush1.bf16.msra.mxu1 %v6882_v57  ;;  %v6941_v57 = vld [vmem:[#allocation8 + $0x18c] ss:$16 sps:$4 sm:$0xff]  }
 0x26e   :  { %5016 = vmatprep.subr.bf16.mxu1 %v6890_v20  ;;  %v6965_v20 = vld [vmem:[#allocation8 + $0x444] ss:$16 sps:$4 sm:$0xff]  }
 0x26f   :  { %4904 = vmatpush1.bf16.msra.mxu0 %v6879_v19  ;;  %v6957_v19 = vld [vmem:[#allocation8 + $0x420] ss:$16 sps:$4 sm:$0xff]  }
 0x270   :  { %4905 = vmatprep.subr.bf16.mxu0 %v6887_v22  ;;  %v6939_v22 = vld [vmem:[#allocation8 + $0x188] ss:$16 sps:$4 sm:$0xff]  }
 0x271   :  { %5017 = vmatpush1.bf16.msra.mxu1 %v6888_v23  ;;  %v6944_v23 = vld [vmem:[#allocation8 + $0x1ac] ss:$16 sps:$4 sm:$0xff]  }
 0x272   :  { %5018 = vmatprep.subr.bf16.mxu1 %v6896_v26  ;;  %v6971_v26 = vld [vmem:[#allocation8 + $0x464] ss:$16 sps:$4 sm:$0xff]  }
 0x273   :  { %4906 = vmatpush1.bf16.msra.mxu0 %v6885_v25  ;;  %v6963_v25 = vld [vmem:[#allocation8 + $0x440] ss:$16 sps:$4 sm:$0xff]  }
 0x274   :  { %4907 = vmatprep.subr.bf16.mxu0 %v6893_v27  ;;  %v6942_v27 = vld [vmem:[#allocation8 + $0x1a8] ss:$16 sps:$4 sm:$0xff]  }
 0x275   :  { %5019 = vmatpush1.bf16.msra.mxu1 %v6894_v33  ;;  %v6947_v33 = vld [vmem:[#allocation8 + $0x1cc] ss:$16 sps:$4 sm:$0xff]  }
 0x276   :  { %5020 = vmatprep.subr.bf16.mxu1 %v6902_v63  ;;  %v6977_v63 = vld [vmem:[#allocation8 + $0x484] ss:$16 sps:$4 sm:$0xff]  }
 0x277   :  { %4908 = vmatpush1.bf16.msra.mxu0 %v6891_v28  ;;  %v6969_v28 = vld [vmem:[#allocation8 + $0x460] ss:$16 sps:$4 sm:$0xff]  }
 0x278   :  { %4909 = vmatprep.subr.bf16.mxu0 %v6899_v30  ;;  %v6945_v30 = vld [vmem:[#allocation8 + $0x1c8] ss:$16 sps:$4 sm:$0xff]  }
 0x279   :  { %5021 = vmatpush1.bf16.msra.mxu1 %v6900_v32  ;;  %v6975_v32 = vld [vmem:[#allocation8 + $0x480] ss:$16 sps:$4 sm:$0xff]  }
 0x27a   :  { %5022 = vmatprep.subr.bf16.mxu1 %v6908_v35  ;;  %v6956_v35 = vld [vmem:[#allocation8 + $0x20c] ss:$16 sps:$4 sm:$0xff]  }
 0x27b   :  { %4910 = vmatpush1.bf16.msra.mxu0 %v6897_v16  ;;  %v2797_v17 = vpop.f32.mrb[4].mxu1  ;;  %v6948_v16 = vld [vmem:[#allocation8 + $0x1e8] ss:$16 sps:$4 sm:$0xff]  }
 0x27c   :  { %4911 = vmatprep.subr.bf16.mxu0 %v6905_v36  ;;  %v6719_v41 = vadd.f32 %v7789_v58, %v2797_v17  ;;  %v2799_v45 = vpop.f32.mrb[5].mxu1  ;;  %v6981_v36 = vld [vmem:[#allocation8 + $0x4a0] ss:$16 sps:$4 sm:$0xff]   ;;  %v6960_v17 = vld [vmem:[#allocation8 + $0x228] ss:$16 sps:$4 sm:$0xff]  }
 0x27d   :  { %v6720_v47 = vadd.f32 %v7793_v59, %v2799_v45  ;;  %v2801_v50 = vpop.f32.mrb[6].mxu1  ;;  %5023 = vmatpush1.bf16.msra.mxu1 %v6906_v61  ;;  %v6915_v59 = vld [vmem:[#allocation8 + $0x3a0] ss:$16 sps:$4 sm:$0xff]   ;;  %v6962_v61 = vld [vmem:[#allocation8 + $0x22c] ss:$16 sps:$4 sm:$0xff]  }
 0x27e   :  { %v3176_v46 = vpack.c.bf16 %v6719_v41, %v6719_v41  ;;  %v2802_v51 = vpop.f32.mrb[7].mxu1  ;;  %5024 = vmatprep.subr.bf16.mxu1 %v6914_v40  ;;  %v6995_v40 = vld [vmem:[#allocation8 + $0x4e4] ss:$16 sps:$4 sm:$0xff]   ;;  %v6993_v41 = vld [vmem:[#allocation8 + $0x4e0] ss:$16 sps:$4 sm:$0xff]  }
 0x27f   :  { %4912 = vmatpush1.bf16.msra.mxu0 %v6903_v39  ;;  %v3177_v48 = vpack.c.bf16 %v6720_v47, %v6720_v47  ;;  %v6987_v39 = vld [vmem:[#allocation8 + $0x4c0] ss:$16 sps:$4 sm:$0xff]   ;;  %v6966_v45 = vld [vmem:[#allocation8 + $0x248] ss:$16 sps:$4 sm:$0xff]   ;;  %v6974_v47 = vld [vmem:[#allocation8 + $0x26c] ss:$16 sps:$4 sm:$0xff]  }
 0x280   :  { %4913 = vmatprep.subr.bf16.mxu0 %v6911_v43  ;;  %v3290_v58 = vadd.bf16 %v3252_v18, %v3176_v46  ;;  %v6968_v43 = vld [vmem:[#allocation8 + $0x24c] ss:$16 sps:$4 sm:$0xff]   ;;  %v7001_v18 = vld [vmem:[#allocation8 + $0x504] ss:$16 sps:$4 sm:$0xff]   ;;  %v7005_v46 = vld [vmem:[#allocation8 + $0x520] ss:$16 sps:$4 sm:$0xff]  }
 0x281   :  { %v3291_v55 = vadd.bf16 %v3259_v49, %v3177_v48  ;;  %5025 = vmatpush1.bf16.msra.mxu1 %v6912_v21  ;;  %v6999_v49 = vld [vmem:[#allocation8 + $0x500] ss:$16 sps:$4 sm:$0xff]   ;;  %v7007_v50 = vld [vmem:[#allocation8 + $0x524] ss:$16 sps:$4 sm:$0xff]   ;;  %v6980_v21 = vld [vmem:[#allocation8 + $0x28c] ss:$16 sps:$4 sm:$0xff]  }
 0x282   :  { %5026 = vmatprep.subr.bf16.mxu1 %v6920_v53  ;;  %v3298_v8 = vmul.bf16 1009007652, %v3290_v58  ;;  %v7013_v51 = vld [vmem:[#allocation8 + $0x544] ss:$16 sps:$4 sm:$0xff]   ;;  %v6986_v53 = vld [vmem:[#allocation8 + $0x2ac] ss:$16 sps:$4 sm:$0xff]  }
 0x283   :  { %4914 = vmatpush1.bf16.msra.mxu0 %v6909_v29  ;;  %v3299_v60 = vmul.bf16 1009007652, %v3291_v55  ;;  %v6978_v29 = vld [vmem:[#allocation8 + $0x288] ss:$16 sps:$4 sm:$0xff]   ;;  %v7011_v48 = vld [vmem:[#allocation8 + $0x540] ss:$16 sps:$4 sm:$0xff]  }
 0x284   :  { %4915 = vmatprep.subr.bf16.mxu0 %v6917_v54  ;;  %v7818_v13 = vmax.bf16 %v3298_v8, %v3290_v58  ;;  %v7019_v54 = vld [vmem:[#allocation8 + $0x564] ss:$16 sps:$4 sm:$0xff]   ;;  %v6984_v58 = vld [vmem:[#allocation8 + $0x2a8] ss:$16 sps:$4 sm:$0xff]  }
 0x285   :  { %5027 = vmatpush1.bf16.msra.mxu1 %v6918_v56  ;;  %v7815_v1 = vmax.bf16 %v3299_v60, %v3291_v55  ;;  %v6992_v55 = vld [vmem:[#allocation8 + $0x2cc] ss:$16 sps:$4 sm:$0xff]   ;;  %v7017_v56 = vld [vmem:[#allocation8 + $0x560] ss:$16 sps:$4 sm:$0xff]   ;;  %v7044_v8 = vld [vmem:[#allocation8 + $0x5e4] ss:$16 sps:$4 sm:$0xff]  }
 0x286   :  { %5028 = vmatprep.subr.bf16.mxu1 %v6926_v42  ;;  %v6990_v42 = vld [vmem:[#allocation8 + $0x2c8] ss:$16 sps:$4 sm:$0xff]   ;;  %v6998_v60 = vld [vmem:[#allocation8 + $0x2ec] ss:$16 sps:$4 sm:$0xff]  }
 0x287   :  { %4916 = vmatpush1.bf16.msra.mxu0 %v6915_v59  ;;  %4921 = vmatprep.mubr.bf16.mxu0 %v7815_v1  ;;  %v7025_v59 = vld [vmem:[#allocation8 + $0x584] ss:$16 sps:$4 sm:$0xff]  }
 0x288   :  { %4917 = vmatprep.subr.bf16.mxu0 %v6923_v0  ;;  %v7023_v0 = vld [vmem:[#allocation8 + $0x580] ss:$16 sps:$4 sm:$0xff]  }
 0x289   :  { %5029 = vmatpush1.bf16.msra.mxu1 %v6924_v2  ;;  %v6996_v2 = vld [vmem:[#allocation8 + $0x2e8] ss:$16 sps:$4 sm:$0xff]  }
 0x28a   :  { %5030 = vmatprep.subr.bf16.mxu1 %v6932_v4  ;;  %v7029_v4 = vld [vmem:[#allocation8 + $0x5a0] ss:$16 sps:$4 sm:$0xff]  }
 0x28b   :  { %4918 = vmatpush1.bf16.msra.mxu0 %v6921_v3  ;;  %v7004_v3 = vld [vmem:[#allocation8 + $0x30c] ss:$16 sps:$4 sm:$0xff]  }
 0x28c   :  { %4919 = vmatprep.subr.bf16.mxu0 %v6929_v5  ;;  %v7038_v5 = vld [vmem:[#allocation8 + $0x5c4] ss:$16 sps:$4 sm:$0xff]  }
 0x28d   :  { %5031 = vmatpush1.bf16.msra.mxu1 %v6930_v52  ;;  %v7002_v52 = vld [vmem:[#allocation8 + $0x308] ss:$16 sps:$4 sm:$0xff]  }
 0x28e   :  { %5032 = vmatprep.subr.bf16.mxu1 %v6935_v7  ;;  %v7036_v7 = vld [vmem:[#allocation8 + $0x5c0] ss:$16 sps:$4 sm:$0xff]  }
 0x28f   :  { %4920 = vmatpush1.bf16.msra.mxu0 %v6927_v6  ;;  %v7010_v6 = vld [vmem:[#allocation8 + $0x32c] ss:$16 sps:$4 sm:$0xff]  }
 0x290   :  { %4930 = vmatprep.subr.bf16.mxu0 %v6953_v9  ;;  %v7308_v9 = vld [vmem:[#allocation7] sm:$0xff] }
 0x291   :  { %5033 = vmatpush1.bf16.msra.mxu1 %v6933_v10  ;;  %v3183_v10 = vcombine.high %v7308_v9, %v7308_v9  ;;  %v7102_v9 = vld [vmem:[#allocation8 + $0x6a0] ss:$16 sps:$4 sm:$0xff]  }
 0x292   :  { %4922 = vmatmul.mubr.bf16.vlgmr.msra.gmra.mrb[16].mxu0 %v7818_v13  ;;  %5034 = vmatprep.subr.bf16.mxu1 %v6938_v11  ;;  %v7008_v11 = vld [vmem:[#allocation8 + $0x328] ss:$16 sps:$4 sm:$0xff]  }
 0x293   :  { %4931 = vmatpush1.bf16.msra.mxu0 %v6951_v12  ;;  %v7016_v12 = vld [vmem:[#allocation8 + $0x34c] ss:$16 sps:$4 sm:$0xff]  }
 0x294   :  { %4932 = vmatprep.subr.bf16.mxu0 %v6959_v14  ;;  %v7042_v14 = vld [vmem:[#allocation8 + $0x5e0] ss:$16 sps:$4 sm:$0xff]  }
 0x295   :  { %5035 = vmatpush1.bf16.msra.mxu1 %v6936_v15  ;;  %v7074_v15 = vld [vmem:[#allocation8 + $0x604] ss:$16 sps:$4 sm:$0xff]  }
 0x296   :  { %5036 = vmatprep.subr.bf16.mxu1 %v6941_v57  ;;  %v3197_v57 = vrot.slane %v3183_v10, %v7764_v62  ;;  %v7063_v10 = vld [vmem:[#allocation8 + $0x4a8] ss:$16 sps:$4 sm:$0xff]  }
 0x297   :  { %4933 = vmatpush1.bf16.msra.mxu0 %v6957_v19  ;;  %v7014_v19 = vld [vmem:[#allocation8 + $0x348] ss:$16 sps:$4 sm:$0xff]  }
 0x298   :  { %4934 = vmatprep.subr.bf16.mxu0 %v6965_v20  ;;  %v7022_v20 = vld [vmem:[#allocation8 + $0x36c] ss:$16 sps:$4 sm:$0xff]  }
 0x299   :  { %5037 = vmatpush1.bf16.msra.mxu1 %v6939_v22  ;;  %v3199_v22 = vcombine.high %v3197_v57, %v3197_v57 }
 0x29a   :  { %5038 = vmatprep.subr.bf16.mxu1 %v6944_v23  ;;  %v7020_v23 = vld [vmem:[#allocation8 + $0x368] ss:$16 sps:$4 sm:$0xff]  }
 0x29b   :  { %4935 = vmatpush1.bf16.msra.mxu0 %v6963_v25  ;;  %v7028_v25 = vld [vmem:[#allocation8 + $0x38c] ss:$16 sps:$4 sm:$0xff]  }
 0x29c   :  { %4936 = vmatprep.subr.bf16.mxu0 %v6971_v26  ;;  %v7825_v26 = vrot.slane %v3197_v57, %v7764_v62  ;;  %v7116_v57 = vld [vmem:[#allocation8 + $0x6e4] ss:$16 sps:$4 sm:$0xff]  }
 0x29d   :  { %5039 = vmatpush1.bf16.msra.mxu1 %v6942_v27  ;;  %v7828_v27 = vrot.slane %v3199_v22, %v7764_v62  ;;  %v7069_v22 = vld [vmem:[#allocation8 + $0x4e8] ss:$16 sps:$4 sm:$0xff]  }
 0x29e   :  { %5040 = vmatprep.subr.bf16.mxu1 %v6947_v33  ;;  %v7026_v33 = vld [vmem:[#allocation8 + $0x388] ss:$16 sps:$4 sm:$0xff]  }
 0x29f   :  { %4937 = vmatpush1.bf16.msra.mxu0 %v6969_v28  ;;  %v7035_v28 = vld [vmem:[#allocation8 + $0x3ac] ss:$16 sps:$4 sm:$0xff]  }
 0x2a0   :  { %4938 = vmatprep.subr.bf16.mxu0 %v6977_v63  ;;  %v3261_v63 = vpack.i.b16 %v7825_v26, %v7825_v26 }
 0x2a1   :  { %5041 = vmatpush1.bf16.msra.mxu1 %v6945_v30  ;;  %v3268_v30 = vpack.i.b16 %v7828_v27, %v7828_v27 }
 0x2a2   :  { %5042 = vmatprep.subr.bf16.mxu1 %v6950_v31  ;;  %v7033_v31 = vld [vmem:[#allocation8 + $0x3a8] ss:$16 sps:$4 sm:$0xff]  }
 0x2a3   :  { %4939 = vmatpush1.bf16.msra.mxu0 %v6975_v32  ;;  %v7041_v32 = vld [vmem:[#allocation8 + $0x3cc] ss:$16 sps:$4 sm:$0xff]  }
 0x2a4   :  { %4940 = vmatprep.subr.bf16.mxu0 %v6983_v34  ;;  %v3266_v34 = vrot.slane %v3261_v63, %v7776_v24  ;;  %v7128_v63 = vld [vmem:[#allocation8 + $0x724] ss:$16 sps:$4 sm:$0xff]  }
 0x2a5   :  { %5043 = vmatpush1.bf16.msra.mxu1 %v6948_v16 }
 0x2a6   :  { %5053 = vmatprep.subr.bf16.mxu1 %v6956_v35  ;;  %v3273_v35 = vrot.slane %v3268_v30, %v7776_v24  ;;  %v7083_v30 = vld [vmem:[#allocation8 + $0x52c] ss:$16 sps:$4 sm:$0xff]  }
 0x2a7   :  { %4941 = vmatpush1.bf16.msra.mxu0 %v6981_v36 }
 0x2a8   :  { %4942 = vmatprep.subr.bf16.mxu0 %v6989_v37  ;;  %5045 = vmatmul.mubr.bf16.vlgmr.msra.gmra.mrb[12].mxu1 %v7802_v44  ;;  %v6972_v44 = vld [vmem:[#allocation8 + $0x268] ss:$16 sps:$4 sm:$0xff]  }
 0x2a9   :  { %5054 = vmatpush1.bf16.msra.mxu1 %v6954_v38  ;;  %5085 = vmatprep.mubr.bf16.mxu1 %v7815_v1  ;;  %v7031_v1 = vld [vmem:[#allocation8 + $0x5a4] ss:$16 sps:$4 sm:$0xff]   ;;  %v7039_v38 = vld [vmem:[#allocation8 + $0x3c8] ss:$16 sps:$4 sm:$0xff]  }
 0x2aa   :  { %5055 = vmatprep.subr.bf16.mxu1 %v6962_v61 }
 0x2ab   :  { %4943 = vmatpush1.bf16.msra.mxu0 %v6987_v39 }
 0x2ac   :  { %4944 = vmatprep.subr.bf16.mxu0 %v6995_v40  ;;  %v7047_v40 = vld [vmem:[#allocation8 + $0x3ec] ss:$16 sps:$4 sm:$0xff]  }
 0x2ad   :  { %5056 = vmatpush1.bf16.msra.mxu1 %v6960_v17 }
 0x2ae   :  { %5057 = vmatprep.subr.bf16.mxu1 %v6968_v43 }
 0x2af   :  { %4945 = vmatpush1.bf16.msra.mxu0 %v6993_v41 }
 0x2b0   :  { %4946 = vmatprep.subr.bf16.mxu0 %v7001_v18 }
 0x2b1   :  { %5058 = vmatpush1.bf16.msra.mxu1 %v6966_v45  ;;  %v7045_v45 = vld [vmem:[#allocation8 + $0x3e8] ss:$16 sps:$4 sm:$0xff]  }
 0x2b2   :  { %5059 = vmatprep.subr.bf16.mxu1 %v6974_v47 }
 0x2b3   :  { %4947 = vmatpush1.bf16.msra.mxu0 %v6999_v49  ;;  %v7050_v49 = vld [vmem:[#allocation8 + $0x40c] ss:$16 sps:$4 sm:$0xff]  }
 0x2b4   :  { %4948 = vmatprep.subr.bf16.mxu0 %v7007_v50 }
 0x2b5   :  { %5060 = vmatpush1.bf16.msra.mxu1 %v6972_v44  ;;  %v7072_v44 = vld [vmem:[#allocation8 + $0x600] ss:$16 sps:$4 sm:$0xff]  }
 0x2b6   :  { %5061 = vmatprep.subr.bf16.mxu1 %v6980_v21 }
 0x2b7   :  { %4949 = vmatpush1.bf16.msra.mxu0 %v7005_v46 }
 0x2b8   :  { %4950 = vmatprep.subr.bf16.mxu0 %v7013_v51  ;;  %v7048_v51 = vld [vmem:[#allocation8 + $0x408] ss:$16 sps:$4 sm:$0xff]  }
 0x2b9   :  { %5062 = vmatpush1.bf16.msra.mxu1 %v6978_v29 }
 0x2ba   :  { %5063 = vmatprep.subr.bf16.mxu1 %v6986_v53  ;;  %v7053_v53 = vld [vmem:[#allocation8 + $0x42c] ss:$16 sps:$4 sm:$0xff]  }
 0x2bb   :  { %4951 = vmatpush1.bf16.msra.mxu0 %v7011_v48  ;;  %v7080_v48 = vld [vmem:[#allocation8 + $0x624] ss:$16 sps:$4 sm:$0xff]  }
 0x2bc   :  { %4952 = vmatprep.subr.bf16.mxu0 %v7019_v54 }
 0x2bd   :  { %5064 = vmatpush1.bf16.msra.mxu1 %v6984_v58 }
 0x2be   :  { %5065 = vmatprep.subr.bf16.mxu1 %v6992_v55  ;;  %v7078_v55 = vld [vmem:[#allocation8 + $0x620] ss:$16 sps:$4 sm:$0xff]  }
 0x2bf   :  { %4953 = vmatpush1.bf16.msra.mxu0 %v7017_v56  ;;  %v7051_v56 = vld [vmem:[#allocation8 + $0x428] ss:$16 sps:$4 sm:$0xff]  }
 0x2c0   :  { %4954 = vmatprep.subr.bf16.mxu0 %v7025_v59  ;;  %v7086_v59 = vld [vmem:[#allocation8 + $0x644] ss:$16 sps:$4 sm:$0xff]  }
 0x2c1   :  { %5066 = vmatpush1.bf16.msra.mxu1 %v6990_v42  ;;  %v7056_v42 = vld [vmem:[#allocation8 + $0x44c] ss:$16 sps:$4 sm:$0xff]  }
 0x2c2   :  { %5067 = vmatprep.subr.bf16.mxu1 %v6998_v60  ;;  %v7084_v60 = vld [vmem:[#allocation8 + $0x640] ss:$16 sps:$4 sm:$0xff]  }
 0x2c3   :  { %4955 = vmatpush1.bf16.msra.mxu0 %v7023_v0  ;;  %v7054_v0 = vld [vmem:[#allocation8 + $0x448] ss:$16 sps:$4 sm:$0xff]  }
 0x2c4   :  { %4956 = vmatprep.subr.bf16.mxu0 %v7031_v1  ;;  %v7092_v1 = vld [vmem:[#allocation8 + $0x664] ss:$16 sps:$4 sm:$0xff]  }
 0x2c5   :  { %5068 = vmatpush1.bf16.msra.mxu1 %v6996_v2  ;;  %v7059_v2 = vld [vmem:[#allocation8 + $0x46c] ss:$16 sps:$4 sm:$0xff]  }
 0x2c6   :  { %5069 = vmatprep.subr.bf16.mxu1 %v7004_v3  ;;  %v7090_v3 = vld [vmem:[#allocation8 + $0x660] ss:$16 sps:$4 sm:$0xff]  }
 0x2c7   :  { %4957 = vmatpush1.bf16.msra.mxu0 %v7029_v4  ;;  %v7098_v4 = vld [vmem:[#allocation8 + $0x684] ss:$16 sps:$4 sm:$0xff]  }
 0x2c8   :  { %4958 = vmatprep.subr.bf16.mxu0 %v7038_v5  ;;  %v7062_v5 = vld [vmem:[#allocation8 + $0x48c] ss:$16 sps:$4 sm:$0xff]  }
 0x2c9   :  { %5070 = vmatpush1.bf16.msra.mxu1 %v7002_v52  ;;  %v7096_v52 = vld [vmem:[#allocation8 + $0x680] ss:$16 sps:$4 sm:$0xff]  }
 0x2ca   :  { %5071 = vmatprep.subr.bf16.mxu1 %v7010_v6  ;;  %v7060_v6 = vld [vmem:[#allocation8 + $0x488] ss:$16 sps:$4 sm:$0xff]  }
 0x2cb   :  { %4959 = vmatpush1.bf16.msra.mxu0 %v7036_v7  ;;  %v7104_v7 = vld [vmem:[#allocation8 + $0x6a4] ss:$16 sps:$4 sm:$0xff]  }
 0x2cc   :  { %4960 = vmatprep.subr.bf16.mxu0 %v7044_v8  ;;  %v7065_v8 = vld [vmem:[#allocation8 + $0x4ac] ss:$16 sps:$4 sm:$0xff]  }
 0x2cd   :  { %5072 = vmatpush1.bf16.msra.mxu1 %v7008_v11  ;;  %v7110_v11 = vld [vmem:[#allocation8 + $0x6c4] ss:$16 sps:$4 sm:$0xff]  }
 0x2ce   :  { %5073 = vmatprep.subr.bf16.mxu1 %v7016_v12  ;;  %v7068_v12 = vld [vmem:[#allocation8 + $0x4cc] ss:$16 sps:$4 sm:$0xff]  }
 0x2cf   :  { %4961 = vmatpush1.bf16.msra.mxu0 %v7042_v14  ;;  %v7108_v14 = vld [vmem:[#allocation8 + $0x6c0] ss:$16 sps:$4 sm:$0xff]  }
 0x2d0   :  { %4971 = vmatprep.subr.bf16.mxu0 %v7074_v15  ;;  %v7066_v15 = vld [vmem:[#allocation8 + $0x4c8] ss:$16 sps:$4 sm:$0xff]  }
 0x2d1   :  { %5074 = vmatpush1.bf16.msra.mxu1 %v7014_v19  ;;  %v7071_v19 = vld [vmem:[#allocation8 + $0x4ec] ss:$16 sps:$4 sm:$0xff]  }
 0x2d2   :  { %5075 = vmatprep.subr.bf16.mxu1 %v7022_v20  ;;  %v7114_v20 = vld [vmem:[#allocation8 + $0x6e0] ss:$16 sps:$4 sm:$0xff]  }
 0x2d5   :  { %5076 = vmatpush1.bf16.msra.mxu1 %v7020_v23  ;;  %v7122_v23 = vld [vmem:[#allocation8 + $0x704] ss:$16 sps:$4 sm:$0xff]  }
 0x2d6   :  { %5077 = vmatprep.subr.bf16.mxu1 %v7028_v25  ;;  %v7077_v25 = vld [vmem:[#allocation8 + $0x50c] ss:$16 sps:$4 sm:$0xff]  }
 0x2d9   :  { %5078 = vmatpush1.bf16.msra.mxu1 %v7026_v33  ;;  %v7120_v33 = vld [vmem:[#allocation8 + $0x700] ss:$16 sps:$4 sm:$0xff]  }
 0x2da   :  { %5079 = vmatprep.subr.bf16.mxu1 %v7035_v28  ;;  %v7075_v28 = vld [vmem:[#allocation8 + $0x508] ss:$16 sps:$4 sm:$0xff]  }
 0x2dd   :  { %v3002_v16 = vpop.f32.mrb[8].mxu0  ;;  %5080 = vmatpush1.bf16.msra.mxu1 %v7033_v31  ;;  %v7126_v31 = vld [vmem:[#allocation8 + $0x720] ss:$16 sps:$4 sm:$0xff]  }
 0x2de   :  { %v3178_v36 = vpack.c.bf16 %v3002_v16, %v3002_v16  ;;  %v3004_v37 = vpop.f32.mrb[9].mxu0  ;;  %5081 = vmatprep.subr.bf16.mxu1 %v7041_v32  ;;  %v7081_v32 = vld [vmem:[#allocation8 + $0x528] ss:$16 sps:$4 sm:$0xff]   ;;  %v7089_v16 = vld [vmem:[#allocation8 + $0x54c] ss:$16 sps:$4 sm:$0xff]  }
 0x2df   :  { %v3179_v61 = vpack.c.bf16 %v3004_v37, %v3004_v37  ;;  %v3006_v39 = vpop.f32.mrb[10].mxu0  ;;  %v7140_v37 = vld [vmem:[#allocation8 + $0x764] ss:$16 sps:$4 sm:$0xff]  }
 0x2e0   :  { %v3292_v17 = vadd.bf16 %v3266_v34, %v3178_v36  ;;  %v3007_v43 = vpop.f32.mrb[11].mxu0  ;;  %v7134_v34 = vld [vmem:[#allocation8 + $0x744] ss:$16 sps:$4 sm:$0xff]   ;;  %v7087_v36 = vld [vmem:[#allocation8 + $0x548] ss:$16 sps:$4 sm:$0xff]  }
 0x2e1   :  { %v3293_v41 = vadd.bf16 %v3273_v35, %v3179_v61  ;;  %5082 = vmatpush1.bf16.msra.mxu1 %v7039_v38  ;;  %v7132_v35 = vld [vmem:[#allocation8 + $0x740] ss:$16 sps:$4 sm:$0xff]   ;;  %v7095_v38 = vld [vmem:[#allocation8 + $0x56c] ss:$16 sps:$4 sm:$0xff]   ;;  %v7093_v39 = vld [vmem:[#allocation8 + $0x568] ss:$16 sps:$4 sm:$0xff]  }
 0x2e2   :  { %v3300_v18 = vmul.bf16 1009007652, %v3292_v17  ;;  %5083 = vmatprep.subr.bf16.mxu1 %v7047_v40  ;;  %v7138_v61 = vld [vmem:[#allocation8 + $0x760] ss:$16 sps:$4 sm:$0xff]   ;;  %v7146_v40 = vld [vmem:[#allocation8 + $0x784] ss:$16 sps:$4 sm:$0xff]  }
 0x2e3   :  { %v3301_v47 = vmul.bf16 1009007652, %v3293_v41  ;;  %v7144_v43 = vld [vmem:[#allocation8 + $0x780] ss:$16 sps:$4 sm:$0xff]  }
 0x2e4   :  { %v7838_v46 = vmax.bf16 %v3300_v18, %v3292_v17  ;;  %v7101_v17 = vld [vmem:[#allocation8 + $0x58c] ss:$16 sps:$4 sm:$0xff]   ;;  %v7152_v18 = vld [vmem:[#allocation8 + $0x7a4] ss:$16 sps:$4 sm:$0xff]  }
 0x2e5   :  { %v3309_v50 = vmax.bf16 %v3301_v47, %v3293_v41  ;;  %v7836_v21 = vpop.f32.mrb[12].mxu0  ;;  %5084 = vmatpush1.bf16.msra.mxu1 %v7045_v45  ;;  %v7099_v41 = vld [vmem:[#allocation8 + $0x588] ss:$16 sps:$4 sm:$0xff]   ;;  %v7107_v45 = vld [vmem:[#allocation8 + $0x5ac] ss:$16 sps:$4 sm:$0xff]  }
 0x2e6   :  { %v7840_v29 = vpop.f32.mrb[13].mxu0  ;;  %5094 = vmatprep.subr.bf16.mxu1 %v7050_v49  ;;  %v7150_v47 = vld [vmem:[#allocation8 + $0x7a0] ss:$16 sps:$4 sm:$0xff]   ;;  %v7105_v49 = vld [vmem:[#allocation8 + $0x5a8] ss:$16 sps:$4 sm:$0xff]  }
 0x2e7   :  { %4962 = vmatprep.mubr.bf16.mxu0 %v3309_v50  ;;  %v3170_v54 = vpop.f32.mrb[14].mxu0 }
 0x2e8   :  { %4963 = vmatmul.mubr.bf16.vlgmr.msra.gmra.mrb[16].mxu0 %v7838_v46  ;;  %v3171_v58 = vpop.f32.mrb[15].mxu0  ;;  %5086 = vmatmul.mubr.bf16.vlgmr.msra.gmra.mrb[12].mxu1 %v7818_v13  ;;  %v7057_v13 = vld [vmem:[#allocation8 + $0x468] ss:$16 sps:$4 sm:$0xff]   ;;  %v7119_v54 = vld [vmem:[#allocation8 + $0x5ec] ss:$16 sps:$4 sm:$0xff]  }
 0x2e9   :  { %4972 = vmatpush1.bf16.msra.mxu0 %v7072_v44  ;;  %5095 = vmatpush1.bf16.msra.mxu1 %v7048_v51  ;;  %v7113_v44 = vld [vmem:[#allocation8 + $0x5cc] ss:$16 sps:$4 sm:$0xff]   ;;  %v7156_v51 = vld [vmem:[#allocation8 + $0x7c0] ss:$16 sps:$4 sm:$0xff]  }
 0x2ea   :  { %5126 = vmatprep.mubr.bf16.mxu1 %v3309_v50  ;;  %5096 = vmatprep.subr.bf16.mxu1 %v7053_v53  ;;  %v7158_v50 = vld [vmem:[#allocation8 + $0x7c4] ss:$16 sps:$4 sm:$0xff]   ;;  %v7111_v53 = vld [vmem:[#allocation8 + $0x5c8] ss:$16 sps:$4 sm:$0xff]   ;;  %v7162_v58 = vld [vmem:[#allocation8 + $0x7e0] ss:$16 sps:$4 sm:$0xff]  }
 0x2eb   :  { %4973 = vmatprep.subr.bf16.mxu0 %v7080_v48  ;;  %v7164_v48 = vld [vmem:[#allocation8 + $0x7e4] ss:$16 sps:$4 sm:$0xff]  }
 0x2ed   :  { %4974 = vmatpush1.bf16.msra.mxu0 %v7078_v55  ;;  %5097 = vmatpush1.bf16.msra.mxu1 %v7051_v56  ;;  %v7117_v55 = vld [vmem:[#allocation8 + $0x5e8] ss:$16 sps:$4 sm:$0xff]  }
 0x2ee   :  { %4975 = vmatprep.subr.bf16.mxu0 %v7086_v59  ;;  %5098 = vmatprep.subr.bf16.mxu1 %v7056_v42  ;;  %v7194_v56 = vld [vmem:[#allocation11 + $0x4] ss:$8 sps:$4 sm:$0xff]   ;;  %v7125_v59 = vld [vmem:[#allocation8 + $0x60c] ss:$16 sps:$4 sm:$0xff]  }
 0x2ef   :  { %v7123_v42 = vld [vmem:[#allocation8 + $0x608] ss:$16 sps:$4 sm:$0xff]  }
 0x2f1   :  { %4976 = vmatpush1.bf16.msra.mxu0 %v7084_v60  ;;  %5099 = vmatpush1.bf16.msra.mxu1 %v7054_v0  ;;  %v7131_v60 = vld [vmem:[#allocation8 + $0x62c] ss:$16 sps:$4 sm:$0xff]   ;;  %v7129_v0 = vld [vmem:[#allocation8 + $0x628] ss:$16 sps:$4 sm:$0xff]  }
 0x2f2   :  { %4977 = vmatprep.subr.bf16.mxu0 %v7092_v1  ;;  %5100 = vmatprep.subr.bf16.mxu1 %v7059_v2  ;;  %v7137_v1 = vld [vmem:[#allocation8 + $0x64c] ss:$16 sps:$4 sm:$0xff]   ;;  %v7135_v2 = vld [vmem:[#allocation8 + $0x648] ss:$16 sps:$4 sm:$0xff]  }
 0x2f5   :  { %4978 = vmatpush1.bf16.msra.mxu0 %v7090_v3  ;;  %5101 = vmatpush1.bf16.msra.mxu1 %v7057_v13  ;;  %v7143_v3 = vld [vmem:[#allocation8 + $0x66c] ss:$16 sps:$4 sm:$0xff]   ;;  %v7141_v13 = vld [vmem:[#allocation8 + $0x668] ss:$16 sps:$4 sm:$0xff]  }
 0x2f6   :  { %4979 = vmatprep.subr.bf16.mxu0 %v7098_v4  ;;  %5102 = vmatprep.subr.bf16.mxu1 %v7062_v5  ;;  %v7149_v4 = vld [vmem:[#allocation8 + $0x68c] ss:$16 sps:$4 sm:$0xff]   ;;  %v3229_v5 = vcombine.high %v7825_v26, %v7825_v26 }
 0x2f9   :  { %4980 = vmatpush1.bf16.msra.mxu0 %v7096_v52  ;;  %5103 = vmatpush1.bf16.msra.mxu1 %v7060_v6  ;;  %v7147_v52 = vld [vmem:[#allocation8 + $0x688] ss:$16 sps:$4 sm:$0xff]   ;;  %v7155_v6 = vld [vmem:[#allocation8 + $0x6ac] ss:$16 sps:$4 sm:$0xff]  }
 0x2fa   :  { %4981 = vmatprep.subr.bf16.mxu0 %v7104_v7  ;;  %5104 = vmatprep.subr.bf16.mxu1 %v7065_v8  ;;  %v3275_v7 = vpack.i.b16 %v3229_v5, %v3229_v5  ;;  %v7224_v5 = vld [vmem:[#allocation11 + $0xa4] ss:$8 sps:$4 sm:$0xff]  }
 0x2fd   :  { %4982 = vmatpush1.bf16.msra.mxu0 %v7102_v9  ;;  %5105 = vmatpush1.bf16.msra.mxu1 %v7063_v10  ;;  %v7153_v9 = vld [vmem:[#allocation8 + $0x6a8] ss:$16 sps:$4 sm:$0xff]   ;;  %v7161_v10 = vld [vmem:[#allocation8 + $0x6cc] ss:$16 sps:$4 sm:$0xff]  }
 0x2fe   :  { %4983 = vmatprep.subr.bf16.mxu0 %v7110_v11  ;;  %5106 = vmatprep.subr.bf16.mxu1 %v7068_v12 }
 0x301   :  { %4984 = vmatpush1.bf16.msra.mxu0 %v7108_v14  ;;  %5107 = vmatpush1.bf16.msra.mxu1 %v7066_v15  ;;  %v3280_v14 = vrot.slane %v3275_v7, %v7776_v24  ;;  %v7230_v7 = vld [vmem:[#allocation11 + $0xc4] ss:$8 sps:$4 sm:$0xff]  }
 0x302   :  { %4985 = vmatprep.subr.bf16.mxu0 %v7116_v57  ;;  %5108 = vmatprep.subr.bf16.mxu1 %v7071_v19 }
 0x305   :  { %4986 = vmatpush1.bf16.msra.mxu0 %v7114_v20  ;;  %5109 = vmatpush1.bf16.msra.mxu1 %v7069_v22 }
 0x306   :  { %4987 = vmatprep.subr.bf16.mxu0 %v7122_v23  ;;  %5110 = vmatprep.subr.bf16.mxu1 %v7077_v25  ;;  %v7167_v23 = vld [vmem:[#allocation8 + $0x6ec] ss:$16 sps:$4 sm:$0xff]  }
 0x309   :  { %4988 = vmatpush1.bf16.msra.mxu0 %v7120_v33  ;;  %5111 = vmatpush1.bf16.msra.mxu1 %v7075_v28 }
 0x30a   :  { %4989 = vmatprep.subr.bf16.mxu0 %v7128_v63  ;;  %5112 = vmatprep.subr.bf16.mxu1 %v7083_v30  ;;  %v7165_v63 = vld [vmem:[#allocation8 + $0x6e8] ss:$16 sps:$4 sm:$0xff]   ;;  %v7170_v30 = vld [vmem:[#allocation8 + $0x70c] ss:$16 sps:$4 sm:$0xff]  }
 0x30d   :  { %4990 = vmatpush1.bf16.msra.mxu0 %v7126_v31  ;;  %5113 = vmatpush1.bf16.msra.mxu1 %v7081_v32  ;;  %v7168_v32 = vld [vmem:[#allocation8 + $0x708] ss:$16 sps:$4 sm:$0xff]  }
 0x30e   :  { %4991 = vmatprep.subr.bf16.mxu0 %v7134_v34  ;;  %5114 = vmatprep.subr.bf16.mxu1 %v7089_v16  ;;  %v7192_v34 = vld [vmem:[#allocation11] ss:$8 sps:$4 sm:$0xff]  }
 0x311   :  { %4992 = vmatpush1.bf16.msra.mxu0 %v7132_v35  ;;  %5115 = vmatpush1.bf16.msra.mxu1 %v7087_v36  ;;  %v7173_v35 = vld [vmem:[#allocation8 + $0x72c] ss:$16 sps:$4 sm:$0xff]   ;;  %v7197_v36 = vld [vmem:[#allocation11 + $0x14] ss:$8 sps:$4 sm:$0xff]  }
 0x312   :  { %4993 = vmatprep.subr.bf16.mxu0 %v7140_v37  ;;  %5116 = vmatprep.subr.bf16.mxu1 %v7095_v38  ;;  %v7171_v37 = vld [vmem:[#allocation8 + $0x728] ss:$16 sps:$4 sm:$0xff]   ;;  %v7195_v38 = vld [vmem:[#allocation11 + $0x10] ss:$8 sps:$4 sm:$0xff]  }
 0x315   :  { %4994 = vmatpush1.bf16.msra.mxu0 %v7138_v61  ;;  %5117 = vmatpush1.bf16.msra.mxu1 %v7093_v39  ;;  %v7176_v61 = vld [vmem:[#allocation8 + $0x74c] ss:$16 sps:$4 sm:$0xff]   ;;  %v7200_v39 = vld [vmem:[#allocation11 + $0x24] ss:$8 sps:$4 sm:$0xff]  }
 0x316   :  { %4995 = vmatprep.subr.bf16.mxu0 %v7146_v40  ;;  %5118 = vmatprep.subr.bf16.mxu1 %v7101_v17  ;;  %v7174_v40 = vld [vmem:[#allocation8 + $0x748] ss:$16 sps:$4 sm:$0xff]   ;;  %v7198_v17 = vld [vmem:[#allocation11 + $0x20] ss:$8 sps:$4 sm:$0xff]  }
 0x319   :  { %4996 = vmatpush1.bf16.msra.mxu0 %v7144_v43  ;;  %5119 = vmatpush1.bf16.msra.mxu1 %v7099_v41  ;;  %v7179_v43 = vld [vmem:[#allocation8 + $0x76c] ss:$16 sps:$4 sm:$0xff]   ;;  %v7203_v41 = vld [vmem:[#allocation11 + $0x34] ss:$8 sps:$4 sm:$0xff]  }
 0x31a   :  { %4997 = vmatprep.subr.bf16.mxu0 %v7152_v18  ;;  %5120 = vmatprep.subr.bf16.mxu1 %v7107_v45  ;;  %v7177_v18 = vld [vmem:[#allocation8 + $0x768] ss:$16 sps:$4 sm:$0xff]   ;;  %v7201_v45 = vld [vmem:[#allocation11 + $0x30] ss:$8 sps:$4 sm:$0xff]  }
 0x31d   :  { %4998 = vmatpush1.bf16.msra.mxu0 %v7150_v47  ;;  %5121 = vmatpush1.bf16.msra.mxu1 %v7105_v49  ;;  %v7182_v47 = vld [vmem:[#allocation8 + $0x78c] ss:$16 sps:$4 sm:$0xff]   ;;  %v7206_v49 = vld [vmem:[#allocation11 + $0x44] ss:$8 sps:$4 sm:$0xff]  }
 0x31e   :  { %4999 = vmatprep.subr.bf16.mxu0 %v7158_v50  ;;  %5122 = vmatprep.subr.bf16.mxu1 %v7113_v44  ;;  %v7180_v50 = vld [vmem:[#allocation8 + $0x788] ss:$16 sps:$4 sm:$0xff]   ;;  %v7204_v44 = vld [vmem:[#allocation11 + $0x40] ss:$8 sps:$4 sm:$0xff]  }
 0x321   :  { %5000 = vmatpush1.bf16.msra.mxu0 %v7156_v51  ;;  %5123 = vmatpush1.bf16.msra.mxu1 %v7111_v53  ;;  %v7185_v51 = vld [vmem:[#allocation8 + $0x7ac] ss:$16 sps:$4 sm:$0xff]   ;;  %v7209_v53 = vld [vmem:[#allocation11 + $0x54] ss:$8 sps:$4 sm:$0xff]  }
 0x322   :  { %5001 = vmatprep.subr.bf16.mxu0 %v7164_v48  ;;  %5124 = vmatprep.subr.bf16.mxu1 %v7119_v54  ;;  %v7183_v48 = vld [vmem:[#allocation8 + $0x7a8] ss:$16 sps:$4 sm:$0xff]   ;;  %v7207_v54 = vld [vmem:[#allocation11 + $0x50] ss:$8 sps:$4 sm:$0xff]  }
 0x325   :  { %5002 = vmatpush1.bf16.msra.mxu0 %v7162_v58  ;;  %5125 = vmatpush1.bf16.msra.mxu1 %v7117_v55  ;;  %v7188_v58 = vld [vmem:[#allocation8 + $0x7cc] ss:$16 sps:$4 sm:$0xff]   ;;  %v7212_v55 = vld [vmem:[#allocation11 + $0x64] ss:$8 sps:$4 sm:$0xff]  }
 0x326   :  { %5630 = vmatprep.subr.bf16.mxu0 %v7194_v56  ;;  %5135 = vmatprep.subr.bf16.mxu1 %v7125_v59  ;;  %v7186_v56 = vld [vmem:[#allocation8 + $0x7c8] ss:$16 sps:$4 sm:$0xff]   ;;  %v7210_v59 = vld [vmem:[#allocation11 + $0x60] ss:$8 sps:$4 sm:$0xff]  }
 0x328   :  { %5127 = vmatmul.mubr.bf16.vlgmr.msra.gmra.mrb[12].mxu1 %v7838_v46  ;;  %v3231_v46 = vcombine.high %v7828_v27, %v7828_v27  ;;  %v7159_v27 = vld [vmem:[#allocation8 + $0x6c8] ss:$16 sps:$4 sm:$0xff]  }
 0x329   :  { %5136 = vmatpush1.bf16.msra.mxu1 %v7123_v42  ;;  %v7191_v42 = vld [vmem:[#allocation8 + $0x7ec] ss:$16 sps:$4 sm:$0xff]  }
 0x32a   :  { %5137 = vmatprep.subr.bf16.mxu1 %v7131_v60  ;;  %v3282_v8 = vpack.i.b16 %v3231_v46, %v3231_v46  ;;  %v7215_v60 = vld [vmem:[#allocation11 + $0x74] ss:$8 sps:$4 sm:$0xff]  }
 0x32b   :  { %v7227_v46 = vld [vmem:[#allocation11 + $0xb4] ss:$8 sps:$4 sm:$0xff]  }
 0x32c   :  { %v3287_v57 = vrot.slane %v3282_v8, %v7776_v24  ;;  %v7228_v8 = vld [vmem:[#allocation11 + $0xc0] ss:$8 sps:$4 sm:$0xff]  }
 0x32d   :  { %5138 = vmatpush1.bf16.msra.mxu1 %v7129_v0  ;;  %v7189_v0 = vld [vmem:[#allocation8 + $0x7e8] ss:$16 sps:$4 sm:$0xff]  }
 0x32e   :  { %5139 = vmatprep.subr.bf16.mxu1 %v7137_v1  ;;  %v7213_v1 = vld [vmem:[#allocation11 + $0x70] ss:$8 sps:$4 sm:$0xff]  }
 0x331   :  { %5140 = vmatpush1.bf16.msra.mxu1 %v7135_v2  ;;  %v7218_v2 = vld [vmem:[#allocation11 + $0x84] ss:$8 sps:$4 sm:$0xff]  }
 0x332   :  { %5141 = vmatprep.subr.bf16.mxu1 %v7143_v3  ;;  %v7216_v3 = vld [vmem:[#allocation11 + $0x80] ss:$8 sps:$4 sm:$0xff]  }
 0x335   :  { %5142 = vmatpush1.bf16.msra.mxu1 %v7141_v13  ;;  %v7221_v13 = vld [vmem:[#allocation11 + $0x94] ss:$8 sps:$4 sm:$0xff]  }
 0x336   :  { %5143 = vmatprep.subr.bf16.mxu1 %v7149_v4  ;;  %v7219_v4 = vld [vmem:[#allocation11 + $0x90] ss:$8 sps:$4 sm:$0xff]  }
 0x339   :  { %5144 = vmatpush1.bf16.msra.mxu1 %v7147_v52  ;;  %v7222_v52 = vld [vmem:[#allocation11 + $0xa0] ss:$8 sps:$4 sm:$0xff]  }
 0x33a   :  { %5145 = vmatprep.subr.bf16.mxu1 %v7155_v6  ;;  %v7225_v6 = vld [vmem:[#allocation11 + $0xb0] ss:$8 sps:$4 sm:$0xff]  }
 0x33b   :  { %v3125_v11 = vpop.f32.mrb[8].mxu1 }
 0x33c   :  { %v6721_v12 = vadd.f32 %v7836_v21, %v3125_v11  ;;  %v3127_v15 = vpop.f32.mrb[9].mxu1  ;;  %v7236_v11 = vld [vmem:[#allocation11 + $0xe4] ss:$8 sps:$4 sm:$0xff]  }
 0x33d   :  { %v6722_v26 = vadd.f32 %v7840_v29, %v3127_v15  ;;  %v3129_v19 = vpop.f32.mrb[10].mxu1  ;;  %5146 = vmatpush1.bf16.msra.mxu1 %v7153_v9  ;;  %v7233_v9 = vld [vmem:[#allocation11 + $0xd4] ss:$8 sps:$4 sm:$0xff]  }
 0x33e   :  { %v3180_v20 = vpack.c.bf16 %v6721_v12, %v6721_v12  ;;  %v3130_v22 = vpop.f32.mrb[11].mxu1  ;;  %5147 = vmatprep.subr.bf16.mxu1 %v7161_v10  ;;  %v7231_v10 = vld [vmem:[#allocation11 + $0xd0] ss:$8 sps:$4 sm:$0xff]   ;;  %v7234_v12 = vld [vmem:[#allocation11 + $0xe0] ss:$8 sps:$4 sm:$0xff]  }
 0x33f   :  { %v3181_v25 = vpack.c.bf16 %v6722_v26, %v6722_v26  ;;  %v7239_v15 = vld [vmem:[#allocation11 + $0xf4] ss:$8 sps:$4 sm:$0xff]   ;;  %v7242_v26 = vld [vmem:[#allocation11 + $0x104] ss:$8 sps:$4 sm:$0xff]  }
 0x340   :  { %v3294_v33 = vadd.bf16 %v3280_v14, %v3180_v20  ;;  %v7237_v14 = vld [vmem:[#allocation11 + $0xf0] ss:$8 sps:$4 sm:$0xff]   ;;  %v7289_v19 = vld [vmem:[#allocation14] sm:$0xff]  }
 0x341   :  { %v3295_v28 = vadd.bf16 %v3287_v57, %v3181_v25  ;;  %5148 = vmatpush1.bf16.msra.mxu1 %v7159_v27  ;;  %v7288_v57 = vld [vmem:[#allocation14 + $0x40] sm:$0xff]   ;;  %v7290_v27 = vld [vmem:[#allocation14 + $0x48] sm:$0xff]   ;;  %v7292_v22 = vld [vmem:[#allocation14 + $0x50] sm:$0xff]  }
 0x342   :  { %v3302_v21 = vmul.bf16 1009007652, %v3294_v33  ;;  %5149 = vmatprep.subr.bf16.mxu1 %v7167_v23  ;;  %v7291_v20 = vld [vmem:[#allocation14 + $0x8] sm:$0xff]   ;;  %v7293_v23 = vld [vmem:[#allocation14 + $0x10] sm:$0xff]   ;;  %v7294_v25 = vld [vmem:[#allocation14 + $0x58] sm:$0xff]  }
 0x343   :  { %v3303_v31 = vmul.bf16 1009007652, %v3295_v28 }
 0x344   :  { %v7853_v16 = vmax.bf16 %v3302_v21, %v3294_v33  ;;  %v7295_v33 = vld [vmem:[#allocation14 + $0x18] sm:$0xff]   ;;  %v7298_v21 = vld [vmem:[#allocation14 + $0x68] sm:$0xff]  }
 0x345   :  { %5150 = vmatpush1.bf16.msra.mxu1 %v7165_v63  ;;  %v3311_v29 = vmax.bf16 %v3303_v31, %v3295_v28  ;;  %v7296_v28 = vld [vmem:[#allocation14 + $0x60] sm:$0xff]  }
 0x346   :  { %5151 = vmatprep.subr.bf16.mxu1 %v7170_v30  ;;  %v7297_v63 = vld [vmem:[#allocation14 + $0x20] sm:$0xff]   ;;  %v6611_v30 = vld.sshfl [vmem:[#allocation10] sm:$0x33 pattern:$0x75316420] }
 0x347   :  { %5003 = vmatprep.mubr.bf16.mxu0 %v3311_v29  ;;  %5167 = vmatprep.mubr.bf16.mxu1 %v3311_v29  ;;  %v5189_v31 = vcombine.high %v6611_v30, %v6611_v30  ;;  %v7858_v29 = vrot.slane %v6611_v30, %v7764_v62  ;;  %v7284_v30 = vld [vmem:[#allocation11 + $0x1e4] ss:$8 sps:$4 sm:$0xff]  }
 0x348   :  { %5004 = vmatmul.mubr.bf16.vlgmr.msra.gmra.mrb[16].mxu0 %v7853_v16 }
 0x349   :  { %5152 = vmatpush1.bf16.msra.mxu1 %v7168_v32  ;;  %5631 = vmatpush1.bf16.msra.mxu0 %v7192_v34  ;;  %v5203_v32 = vrot.slane %v5189_v31, %v7764_v62  ;;  %v5207_v34 = vpack.i.b16 %v7858_v29, %v7858_v29  ;;  %v7282_v31 = vld [vmem:[#allocation11 + $0x1e0] ss:$8 sps:$4 sm:$0xff]  }
 0x34a   :  { %5153 = vmatprep.subr.bf16.mxu1 %v7173_v35  ;;  %5632 = vmatprep.subr.bf16.mxu0 %v7197_v36 }
 0x34b   :  { %v5212_v35 = vrot.slane %v5207_v34, %v7776_v24  ;;  %v7287_v34 = vld [vmem:[#allocation11 + $0x1f4] ss:$8 sps:$4 sm:$0xff]  }
 0x34d   :  { %5154 = vmatpush1.bf16.msra.mxu1 %v7171_v37  ;;  %5633 = vmatpush1.bf16.msra.mxu0 %v7195_v38 }
 0x34e   :  { %5155 = vmatprep.subr.bf16.mxu1 %v7176_v61  ;;  %5634 = vmatprep.subr.bf16.mxu0 %v7200_v39 }
 0x351   :  { %5156 = vmatpush1.bf16.msra.mxu1 %v7174_v40  ;;  %5635 = vmatpush1.bf16.msra.mxu0 %v7198_v17 }
 0x352   :  { %5157 = vmatprep.subr.bf16.mxu1 %v7179_v43  ;;  %5636 = vmatprep.subr.bf16.mxu0 %v7203_v41 }
 0x355   :  { %5158 = vmatpush1.bf16.msra.mxu1 %v7177_v18  ;;  %5637 = vmatpush1.bf16.msra.mxu0 %v7201_v45 }
 0x356   :  { %5159 = vmatprep.subr.bf16.mxu1 %v7182_v47  ;;  %5638 = vmatprep.subr.bf16.mxu0 %v7206_v49  ;;  %v7240_v49 = vld [vmem:[#allocation11 + $0x100] ss:$8 sps:$4 sm:$0xff]  }
 0x359   :  { %5160 = vmatpush1.bf16.msra.mxu1 %v7180_v50  ;;  %5639 = vmatpush1.bf16.msra.mxu0 %v7204_v44  ;;  %v7245_v44 = vld [vmem:[#allocation11 + $0x114] ss:$8 sps:$4 sm:$0xff]  }
 0x35a   :  { %5161 = vmatprep.subr.bf16.mxu1 %v7185_v51  ;;  %5640 = vmatprep.subr.bf16.mxu0 %v7209_v53  ;;  %v7243_v51 = vld [vmem:[#allocation11 + $0x110] ss:$8 sps:$4 sm:$0xff]   ;;  %v7248_v53 = vld [vmem:[#allocation11 + $0x124] ss:$8 sps:$4 sm:$0xff]  }
 0x35d   :  { %5162 = vmatpush1.bf16.msra.mxu1 %v7183_v48  ;;  %5641 = vmatpush1.bf16.msra.mxu0 %v7207_v54  ;;  %v7246_v48 = vld [vmem:[#allocation11 + $0x120] ss:$8 sps:$4 sm:$0xff]   ;;  %v7251_v54 = vld [vmem:[#allocation11 + $0x134] ss:$8 sps:$4 sm:$0xff]  }
 0x35e   :  { %5163 = vmatprep.subr.bf16.mxu1 %v7188_v58  ;;  %5642 = vmatprep.subr.bf16.mxu0 %v7212_v55  ;;  %v7249_v58 = vld [vmem:[#allocation11 + $0x130] ss:$8 sps:$4 sm:$0xff]   ;;  %v7254_v55 = vld [vmem:[#allocation11 + $0x144] ss:$8 sps:$4 sm:$0xff]  }
 0x361   :  { %5164 = vmatpush1.bf16.msra.mxu1 %v7186_v56  ;;  %5643 = vmatpush1.bf16.msra.mxu0 %v7210_v59  ;;  %v7252_v56 = vld [vmem:[#allocation11 + $0x140] ss:$8 sps:$4 sm:$0xff]   ;;  %v5205_v59 = vcombine.high %v5203_v32, %v5203_v32 }
 0x362   :  { %5165 = vmatprep.subr.bf16.mxu1 %v7191_v42  ;;  %5644 = vmatprep.subr.bf16.mxu0 %v7215_v60  ;;  %v7257_v42 = vld [vmem:[#allocation11 + $0x154] ss:$8 sps:$4 sm:$0xff]   ;;  %v7255_v60 = vld [vmem:[#allocation11 + $0x150] ss:$8 sps:$4 sm:$0xff]  }
 0x365   :  { %5166 = vmatpush1.bf16.msra.mxu1 %v7189_v0  ;;  %5645 = vmatpush1.bf16.msra.mxu0 %v7213_v1  ;;  %v5228_v0 = vpack.i.b16 %v5205_v59, %v5205_v59  ;;  %v7260_v1 = vld [vmem:[#allocation11 + $0x164] ss:$8 sps:$4 sm:$0xff]  }
 0x366   :  { %5646 = vmatprep.subr.bf16.mxu0 %v7218_v2  ;;  %6695 = vmatprep.subr.bf16.mxu1 %v7288_v57  ;;  %v7270_v57 = vld [vmem:[#allocation11 + $0x1a0] ss:$8 sps:$4 sm:$0xff]  }
 0x368   :  { %5168 = vmatmul.mubr.bf16.vlgmr.msra.gmra.mrb[12].mxu1 %v7853_v16  ;;  %v5214_v16 = vpack.i.b16 %v5203_v32, %v5203_v32 }
 0x369   :  { %5647 = vmatpush1.bf16.msra.mxu0 %v7216_v3  ;;  %6696 = vmatpush3.bf16.msra.mxu1 %v7289_v19  ;;  %v5233_v3 = vrot.slane %v5228_v0, %v7776_v24  ;;  %v7275_v19 = vld [vmem:[#allocation11 + $0x1b4] ss:$8 sps:$4 sm:$0xff]   ;;  %v6677_v0 = vld [vmem:[#allocation16] ss:$0 sm:$0xff] }
 0x36a   :  { %5648 = vmatprep.subr.bf16.mxu0 %v7221_v13  ;;  %6697 = vmatprep.subr.bf16.mxu1 %v7290_v27  ;;  %v5219_v37 = vrot.slane %v5214_v16, %v7776_v24  ;;  %v7258_v13 = vld [vmem:[#allocation11 + $0x160] ss:$8 sps:$4 sm:$0xff]   ;;  %v7273_v27 = vld [vmem:[#allocation11 + $0x1b0] ss:$8 sps:$4 sm:$0xff]  }
 0x36d   :  { %5649 = vmatpush1.bf16.msra.mxu0 %v7219_v4  ;;  %6698 = vmatpush3.bf16.msra.mxu1 %v7291_v20  ;;  %v5204_v20 = vcombine.high %v7858_v29, %v7858_v29  ;;  %v7285_v29 = vld [vmem:[#allocation11 + $0x1f0] ss:$8 sps:$4 sm:$0xff]  }
 0x36e   :  { %5650 = vmatprep.subr.bf16.mxu0 %v7224_v5  ;;  %6699 = vmatprep.subr.bf16.mxu1 %v7292_v22  ;;  %v7263_v5 = vld [vmem:[#allocation11 + $0x174] ss:$8 sps:$4 sm:$0xff]   ;;  %v7278_v22 = vld [vmem:[#allocation11 + $0x1c4] ss:$8 sps:$4 sm:$0xff]  }
 0x371   :  { %5651 = vmatpush1.bf16.msra.mxu0 %v7222_v52  ;;  %6700 = vmatpush3.bf16.msra.mxu1 %v7293_v23  ;;  %v7276_v23 = vld [vmem:[#allocation11 + $0x1c0] ss:$8 sps:$4 sm:$0xff]  }
 0x372   :  { %5652 = vmatprep.subr.bf16.mxu0 %v7227_v46  ;;  %6701 = vmatprep.subr.bf16.mxu1 %v7294_v25  ;;  %v5221_v25 = vpack.i.b16 %v5204_v20, %v5204_v20 }
 0x375   :  { %5653 = vmatpush1.bf16.msra.mxu0 %v7225_v6  ;;  %6702 = vmatpush3.bf16.msra.mxu1 %v7295_v33  ;;  %v7281_v33 = vld [vmem:[#allocation11 + $0x1d4] ss:$8 sps:$4 sm:$0xff]  }
 0x376   :  { %5654 = vmatprep.subr.bf16.mxu0 %v7230_v7  ;;  %6703 = vmatprep.subr.bf16.mxu1 %v7296_v28  ;;  %v7279_v28 = vld [vmem:[#allocation11 + $0x1d0] ss:$8 sps:$4 sm:$0xff]  }
 0x379   :  { %5655 = vmatpush1.bf16.msra.mxu0 %v7228_v8  ;;  %6704 = vmatpush3.bf16.msra.mxu1 %v7297_v63  ;;  %v7261_v8 = vld [vmem:[#allocation11 + $0x170] ss:$8 sps:$4 sm:$0xff]  }
 0x37a   :  { %5656 = vmatprep.subr.bf16.mxu0 %v7233_v9  ;;  %6705 = vmatprep.subr.bf16.mxu1 %v7298_v21  ;;  %v7266_v9 = vld [vmem:[#allocation11 + $0x184] ss:$8 sps:$4 sm:$0xff]   ;;  %v5226_v21 = vrot.slane %v5221_v25, %v7776_v24 }
 0x37d   :  { %5657 = vmatpush1.bf16.msra.mxu0 %v7231_v10 }
 0x37e   :  { %5658 = vmatprep.subr.bf16.mxu0 %v7236_v11  ;;  %v7264_v11 = vld [vmem:[#allocation11 + $0x180] ss:$8 sps:$4 sm:$0xff]  }
 0x381   :  { %5659 = vmatpush1.bf16.msra.mxu0 %v7234_v12 }
 0x382   :  { %5660 = vmatprep.subr.bf16.mxu0 %v7239_v15  ;;  %v7267_v15 = vld [vmem:[#allocation11 + $0x190] ss:$8 sps:$4 sm:$0xff]  }
 0x385   :  { %5661 = vmatpush1.bf16.msra.mxu0 %v7237_v14  ;;  %v7269_v14 = vld [vmem:[#allocation11 + $0x194] ss:$8 sps:$4 sm:$0xff]  }
 0x386   :  { %5671 = vmatprep.subr.bf16.mxu0 %v7242_v26  ;;  %v7272_v26 = vld [vmem:[#allocation11 + $0x1a4] ss:$8 sps:$4 sm:$0xff]  }
 0x41b   :  { %v5005_v36 = vpop.f32.mrb[16].mxu0 }
 0x41c   :  { %v5177_v38 = vpack.c.bf16 %v5005_v36, %v5005_v36  ;;  %v5007_v61 = vpop.f32.mrb[17].mxu0  ;;  %v7299_v36 = vld [vmem:[#allocation14 + $0x28] sm:$0xff]  }
 0x41d   :  { %v5178_v39 = vpack.c.bf16 %v5007_v61, %v5007_v61  ;;  %v5009_v40 = vpop.f32.mrb[18].mxu0  ;;  %6706 = vmatpush3.bf16.msra.mxu1 %v7299_v36  ;;  %v7302_v61 = vld [vmem:[#allocation14 + $0x78] sm:$0xff]  }
 0x41e   :  { %v5234_v17 = vadd.bf16 %v5212_v35, %v5177_v38  ;;  %v5010_v43 = vpop.f32.mrb[19].mxu0  ;;  %v7301_v38 = vld [vmem:[#allocation14 + $0x30] sm:$0xff]   ;;  %v6676_v40 = vld.sshfl [vmem:[#allocation13] sm:$0x11 pattern:$0x75316420] }
 0x41f   :  { %v5235_v41 = vadd.bf16 %v5219_v37, %v5178_v39  ;;  %v7300_v37 = vld [vmem:[#allocation14 + $0x70] sm:$0xff]   ;;  %v7303_v39 = vld [vmem:[#allocation14 + $0x38] sm:$0xff]   ;;  %v5730_v43 = vrot.slane %v6676_v40, %v7764_v62 }
 0x420   :  { %v5238_v18 = vmul.bf16 1009007652, %v5234_v17  ;;  %6707 = vmatprep.subr.bf16.mxu1 %v7300_v37 }
 0x421   :  { %v5239_v45 = vmul.bf16 1009007652, %v5235_v41  ;;  %6708 = vmatpush3.bf16.msra.mxu1 %v7301_v38 }
 0x422   :  { %v5242_v50 = vmax.bf16 %v5238_v18, %v5234_v17  ;;  %6709 = vmatprep.subr.bf16.mxu1 %v7302_v61  ;;  %v5723_v17 = vcombine.high %v6676_v40, %v6676_v40  ;;  %v5739_v18 = vpack.i.b16 %v5730_v43, %v5730_v43 }
 0x423   :  { %v5243_v47 = vmax.bf16 %v5239_v45, %v5235_v41 }
 0x424   :  { %v5737_v41 = vrot.slane %v5723_v17, %v7764_v62 }
 0x425   :  { %5662 = vmatprep.mubr.bf16.mxu0 %v5243_v47  ;;  %6710 = vmatpush3.bf16.msra.mxu1 %v7303_v39  ;;  %v5744_v47 = vrot.slane %v5739_v18, %v7776_v24 }
 0x426   :  { %5663 = vmatmul.mubr.bf16.vlgmr.msra.gmra.mrb[20].mxu0 %v5242_v50  ;;  %v5746_v45 = vpack.i.b16 %v5737_v41, %v5737_v41 }
 0x427   :  { %5672 = vmatpush1.bf16.msra.mxu0 %v7240_v49 }
 0x428   :  { %5673 = vmatprep.subr.bf16.mxu0 %v7245_v44  ;;  %v5751_v50 = vrot.slane %v5746_v45, %v7776_v24 }
 0x42b   :  { %5674 = vmatpush1.bf16.msra.mxu0 %v7243_v51 }
 0x42c   :  { %5675 = vmatprep.subr.bf16.mxu0 %v7248_v53 }
 0x42f   :  { %5676 = vmatpush1.bf16.msra.mxu0 %v7246_v48 }
 0x430   :  { %5677 = vmatprep.subr.bf16.mxu0 %v7251_v54 }
 0x433   :  { %5678 = vmatpush1.bf16.msra.mxu0 %v7249_v58 }
 0x434   :  { %5679 = vmatprep.subr.bf16.mxu0 %v7254_v55 }
 0x437   :  { %5680 = vmatpush1.bf16.msra.mxu0 %v7252_v56 }
 0x438   :  { %5681 = vmatprep.subr.bf16.mxu0 %v7257_v42 }
 0x43b   :  { %5682 = vmatpush1.bf16.msra.mxu0 %v7255_v60  ;;  %v5169_v2 = vpop.f32.mrb[12].mxu1 }
 0x43c   :  { %v5171_v4 = vpop.f32.mrb[13].mxu1  ;;  %5683 = vmatprep.subr.bf16.mxu0 %v7260_v1  ;;  %v5179_v63 = vpack.c.bf16 %v5169_v2, %v5169_v2 }
 0x43d   :  { %v5180_v52 = vpack.c.bf16 %v5171_v4, %v5171_v4  ;;  %v5173_v46 = vpop.f32.mrb[14].mxu1 }
 0x43e   :  { %v5174_v6 = vpop.f32.mrb[15].mxu1  ;;  %v5236_v32 = vadd.bf16 %v5226_v21, %v5179_v63 }
 0x43f   :  { %v5237_v7 = vadd.bf16 %v5233_v3, %v5180_v52  ;;  %5684 = vmatpush1.bf16.msra.mxu0 %v7258_v13 }
 0x440   :  { %5685 = vmatprep.subr.bf16.mxu0 %v7263_v5  ;;  %v5240_v16 = vmul.bf16 1009007652, %v5236_v32 }
 0x441   :  { %v5241_v10 = vmul.bf16 1009007652, %v5237_v7 }
 0x442   :  { %v5244_v35 = vmax.bf16 %v5240_v16, %v5236_v32 }
 0x443   :  { %5686 = vmatpush1.bf16.msra.mxu0 %v7261_v8  ;;  %v5245_v12 = vmax.bf16 %v5241_v10, %v5237_v7 }
 0x444   :  { %5687 = vmatprep.subr.bf16.mxu0 %v7266_v9 }
 0x445   :  { %5703 = vmatprep.mubr.bf16.mxu0 %v5245_v12 }
 0x447   :  { %5688 = vmatpush1.bf16.msra.mxu0 %v7264_v11 }
 0x448   :  { %5689 = vmatprep.subr.bf16.mxu0 %v7269_v14 }
 0x44b   :  { %5690 = vmatpush1.bf16.msra.mxu0 %v7267_v15 }
 0x44c   :  { %5691 = vmatprep.subr.bf16.mxu0 %v7272_v26 }
 0x44f   :  { %5692 = vmatpush1.bf16.msra.mxu0 %v7270_v57 }
 0x450   :  { %5693 = vmatprep.subr.bf16.mxu0 %v7275_v19 }
 0x453   :  { %5694 = vmatpush1.bf16.msra.mxu0 %v7273_v27 }
 0x454   :  { %5695 = vmatprep.subr.bf16.mxu0 %v7278_v22 }
 0x457   :  { %5696 = vmatpush1.bf16.msra.mxu0 %v7276_v23 }
 0x458   :  { %5697 = vmatprep.subr.bf16.mxu0 %v7281_v33 }
 0x45b   :  { %5698 = vmatpush1.bf16.msra.mxu0 %v7279_v28 }
 0x45c   :  { %5699 = vmatprep.subr.bf16.mxu0 %v7284_v30 }
 0x45f   :  { %5700 = vmatpush1.bf16.msra.mxu0 %v7282_v31 }
 0x460   :  { %5701 = vmatprep.subr.bf16.mxu0 %v7287_v34 }
 0x463   :  { %5702 = vmatpush1.bf16.msra.mxu0 %v7285_v29 }
 0x466   :  { %5704 = vmatmul.mubr.bf16.vlgmr.msra.gmra.mrb[20].mxu0 %v5244_v35 }
 0x539   :  { %v5705_v49 = vpop.f32.mrb[20].mxu0 }
 0x53a   :  { %v5713_v44 = vpack.c.bf16 %v5705_v49, %v5705_v49  ;;  %v5707_v51 = vpop.f32.mrb[21].mxu0 }
 0x53b   :  { %v5714_v53 = vpack.c.bf16 %v5707_v51, %v5707_v51  ;;  %v5709_v48 = vpop.f32.mrb[22].mxu0 }
 0x53c   :  { %v5752_v54 = vadd.bf16 %v5744_v47, %v5713_v44  ;;  %v5710_v58 = vpop.f32.mrb[23].mxu0 }
 0x53d   :  { %v5753_v55 = vadd.bf16 %v5751_v50, %v5714_v53 }
 0x53e   :  { %v5754_v56 = vmul.bf16 1009007652, %v5752_v54 }
 0x53f   :  { %v5755_v59 = vmul.bf16 1009007652, %v5753_v55 }
 0x540   :  { %v5756_v60 = vmax.bf16 %v5754_v56, %v5752_v54 }
 0x541   :  { %v5757_v42 = vmax.bf16 %v5755_v59, %v5753_v55 }
 0x543   :  { %5925 = vmatprep.mubr.bf16.mxu1 %v5757_v42 }
 0x544   :  { %5926 = vmatmul.mubr.bf16.vlgmr.msra.gmra.mrb[16].mxu1 %v5756_v60 }
 0x617   :  { %v6711_v62 = vpop.f32.mrb[16].mxu1 }
 0x618   :  { %v6712_v1 = vpop.f32.mrb[17].mxu1 }
 0x619   :  { %v6713_v2 = vadd.f32 %v6712_v1, %v6711_v62  ;;  %v6714_v3 = vpop.f32.mrb[18].mxu1 }
 0x61a   :  { %v6715_v13 = vpop.f32.mrb[19].mxu1 }
 0x61b   :  { %v5928_v24 = vadd.f32 %v6713_v2, %v6677_v0 }
 0x61d   :  { %v6694_v4 = vmul.f32 -1.442695, %v5928_v24 }
 0x61f   :  { %7304 = vpow2.f32 %v6694_v4 }
 0x629   :  { %v7305_v5 = vpop.eup %7304 }
 0x62a   :  { %v5936_v52 = vadd.f32 1.0, %v7305_v5 }
 0x62c   :  { %7306 = vrcp.f32 %v5936_v52 }
 0x636   :  { %v7307_v46 = vpop.eup %7306 }
 0x637   :  { %5939 = vst [vmem:[#allocation17] sm:$0xff] %v7307_v46 }
 0x638   :  { %7519 = shalt.err (!%p7516_p6)
}
 0x639   :  { %s7520_s22 = scalar_lea.hbm %s7894_s9, 128 }
 0x63a   :  { %p7521_p7 = scmp.ne.s32.totalorder %s7894_s9, %s7520_s22  ;;  %p7524_p8 = scmp.lt.u32.totalorder %s7520_s22, %s7894_s9 }
 0x63c   :  { %p7526_p9 = pnand %p7524_p8, %p7521_p7 }
 0x63e   :  { %7529 = shalt.err (!%p7526_p9)
}
 0x63f   :  { %5949 = dma.vmem_to_hbm [thread:$0]  %s5947_s24, 128, %s7894_s9, [#allocation4]  }
 0x640   :  { %7540 = dma.done.wait [#allocation4], 128  }
 0x641   :  { %7541 = vsyncadd [#allocation4], 4294967168 }
 0x642   :  { %5953 = vsyncpa [#allocation3], 1 }
 0x643   :  { %5954 = vsyncpa [#allocation6], 1 }
 0x644   :  { %5955 = vsyncpa [#allocation9], 1 }
 0x645   :  { %5956 = vsyncpa [#allocation12], 1 }
 0x646   :  { %5957 = vsyncpa [#allocation15], 1 }
 0x647   :  { %5958 = vsyncpa [#allocation4], 1 }

</bundles_post_ra>
